<compile_context>
chip_gen: v7x
topology: tpu7x:2x2x1
jax: 0.10.0
libtpu: 0.0.40
codegen_flags: <defaults>
</compile_context>

<pallas_src>
import jax
import jax.numpy as jnp
from jax.experimental import pallas as pl
from jax.experimental.pallas import tpu as pltpu

SHIFT = 1

H = 28
W = 28
HW = H * W              # 784
HW_PAD = 896            # 7 * 128  (lane-dense)
C_OUT = 128
K = 128                 # flattened (c64, c2):  k = c64*2 + c2
P = 3                   # unfold taps along the W axis


# ----------------------------- Pallas kernel -------------------------------- #
def _conv3_kernel(w_ref, z_ref, o_ref):
    """3-tap 1-D conv as three MXU matmuls on a fully VMEM-resident problem.

    w_ref: (3, 128, 128) f32   weights per tap, K = c64*2 + c2
    z_ref: (128, 896)    f32   activations, rows = K, cols = h*28 + w (padded)
    o_ref: (128, 896)    f32   output, rows = out-channel, cols = h*28 + w
    """
    z = z_ref[...]
    col = jax.lax.broadcasted_iota(jnp.int32, z.shape, 1) % W

    # tap 1 (center):  A1[k, (h,o)] = z[k, h, o]
    acc = jnp.dot(w_ref[1], z, preferred_element_type=jnp.float32)

    # tap 0:  A0[k, (h,o)] = z[k, h, o-1], zero at o == 0 (unfold zero padding)
    z_m1 = jnp.where(col == 0, 0.0, pltpu.roll(z, shift=1, axis=1))
    acc += jnp.dot(w_ref[0], z_m1, preferred_element_type=jnp.float32)

    # tap 2:  A2[k, (h,o)] = z[k, h, o+1], zero at o == W-1
    z_p1 = jnp.where(col == W - 1, 0.0, pltpu.roll(z, shift=HW_PAD - 1, axis=1))
    acc += jnp.dot(w_ref[2], z_p1, preferred_element_type=jnp.float32)

    o_ref[...] = acc


def pallas_conv(wk, zk):
    """wk: (3, 128, 128) f32, zk: (128, 896) f32  ->  (128, 896) f32."""
    return pl.pallas_call(
        _conv3_kernel,
        out_shape=jax.ShapeDtypeStruct((C_OUT, HW_PAD), jnp.float32),
        in_specs=[
            pl.BlockSpec(memory_space=pltpu.MemorySpace.VMEM),
            pl.BlockSpec(memory_space=pltpu.MemorySpace.VMEM),
        ],
        out_specs=pl.BlockSpec(memory_space=pltpu.MemorySpace.VMEM),
    )(wk, zk)


# ------------------------------- Forward ------------------------------------ #
@jax.jit
def forward(x, w):
    """Reproduces kernel_generated_2.forward.  x: (1,128,28,28), w: (128,64,2,3)."""
    shift = SHIFT  # python constant -> branch resolved at trace time

    # Net effect of the torch transpose/reshape/roll chain, written directly:
    #   z[k = c64*2 + c2, h, w]:
    #     c2 = 0 (even k) sources channels 64+c64, c2 = 1 (odd k) sources c64,
    #     one channel half gets an extra H-roll, everything gets a W-roll.
    xw = jnp.roll(x[0], shift, axis=2)          # torch.roll(..., shift, dim=4)
    lo, hi = xw[:64], xw[64:]
    if shift == 1:
        hi = jnp.roll(hi, 1, axis=1)            # the (H, c2)-merged roll
    else:
        lo = jnp.roll(lo, -1, axis=1)
    zk = jnp.stack([hi, lo], axis=1).reshape(K, HW)      # k = c64*2 + c2
    zk = jnp.pad(zk, ((0, 0), (0, HW_PAD - HW)))         # lane-dense 784 -> 896

    # Weights (i, c64, c2, tap) -> (tap, i, c64*2 + c2)   (input-independent)
    wk = jnp.transpose(w, (3, 0, 1, 2)).reshape(P, C_OUT, K)

    out = pallas_conv(wk, zk)                            # (128, 896)
    return out[:, :HW].reshape(1, C_OUT, H, W)


# --------------------- Pure-JAX reference (mirrors torch) ------------------- #
def torch_reference(x, w, shift):
    t = jnp.einsum('ilkj->iklj', x)                      # (1, 28, 128, 28)
    t = t.reshape(1, 28, 2, 64, 28)
    t = t.reshape(1, 56, 64, 28)
    t = jnp.roll(t, shift, axis=1)
    t = t.reshape(1, 28, 2, 64, 28)
    t = jnp.roll(t, shift, axis=4)
    t = t.reshape(1, 3584, 28, 1)
    # F.unfold(kernel=(3,1), padding=(1,0)):
    tp = jnp.pad(t, ((0, 0), (0, 0), (1, 1), (0, 0)))
    cols = jnp.stack([tp[:, :, p:p + 28, 0] for p in range(3)], axis=2)
    t = cols.reshape(1, 3584 * 3, 28)
    t = t.reshape(1, 28, 2, 64, 3, 28)
    t = jnp.transpose(t, (0, 1, 3, 2, 4, 5))
    y = jnp.einsum('mnjklo,ijkl->mino', t, w,
                   precision=jax.lax.Precision.HIGHEST)
    return y


if __name__ == "__main__":
    key = jax.random.PRNGKey(0)
    kx, kw = jax.random.split(key)
    # Shapes are fixed by the module's hard-coded reshapes: x must be (1,128,28,28).
    x = jax.random.normal(kx, (1, 128, 28, 28), dtype=jnp.float32)
    w = jax.random.normal(kw, (128, 64, 2, 3), dtype=jnp.float32)

    y = jax.block_until_ready(forward(x, w))

    y_ref = torch_reference(x, w, SHIFT)
    assert y.shape == (1, 128, 28, 28), y.shape
    max_err = float(jnp.max(jnp.abs(y - y_ref)))
    if not jnp.allclose(y, y_ref, rtol=2e-2, atol=2e-2):
        raise AssertionError(f"mismatch vs reference, max abs err = {max_err}")
    print("KERNEL_OK")
</pallas_src>

<mosaic_0001>
module attributes {stable_mosaic.version = 11 : i64} {
  func.func @_conv3_kernel(%arg0: memref<3x128x128xf32, #tpu.memory_space<vmem>>, %arg1: memref<128x896xf32, #tpu.memory_space<vmem>>, %arg2: memref<128x896xf32, #tpu.memory_space<vmem>>) attributes {dimension_semantics = [], scalar_prefetch = 0 : i64, scratch_operands = 0 : i64, tpu.core_type = #tpu.core_type<tc>} {
    %c0 = arith.constant 0 : index
    %c0_0 = arith.constant 0 : index
    %0 = vector.load %arg1[%c0, %c0_0] : memref<128x896xf32, #tpu.memory_space<vmem>>, vector<128x896xf32>
    %1 = tpu.iota {dimensions = array<i32: 1>} : vector<128x896xi32>
    %c28_i32 = arith.constant 28 : i32
    %c0_i32 = arith.constant 0 : i32
    %2 = arith.cmpi eq, %c28_i32, %c0_i32 : i32
    %c1_i32 = arith.constant 1 : i32
    %3 = arith.select %2, %c1_i32, %c28_i32 : i32
    %4 = vector.broadcast %3 : i32 to vector<128x896xi32>
    %5 = arith.remsi %1, %4 : vector<128x896xi32>
    %c0_i32_1 = arith.constant 0 : i32
    %6 = vector.broadcast %c0_i32_1 : i32 to vector<128x896xi32>
    %7 = arith.cmpi ne, %5, %6 : vector<128x896xi32>
    %c0_i32_2 = arith.constant 0 : i32
    %8 = vector.broadcast %c0_i32_2 : i32 to vector<128x896xi32>
    %9 = arith.cmpi slt, %5, %8 : vector<128x896xi32>
    %c0_i32_3 = arith.constant 0 : i32
    %10 = arith.cmpi slt, %3, %c0_i32_3 : i32
    %11 = vector.broadcast %10 : i1 to vector<128x896xi1>
    %12 = vector.broadcast %11 : vector<128x896xi1> to vector<128x896xi1>
    %13 = arith.xori %9, %12 : vector<128x896xi1>
    %14 = arith.andi %13, %7 : vector<128x896xi1>
    %15 = vector.broadcast %3 : i32 to vector<128x896xi32>
    %16 = arith.addi %5, %15 : vector<128x896xi32>
    %17 = arith.select %14, %16, %5 : vector<128x896xi1>, vector<128x896xi32>
    %c1 = arith.constant 1 : index
    %c0_4 = arith.constant 0 : index
    %c0_5 = arith.constant 0 : index
    %18 = vector.load %arg0[%c1, %c0_4, %c0_5] : memref<3x128x128xf32, #tpu.memory_space<vmem>>, vector<1x128x128xf32>
    %19 = vector.shape_cast %18 : vector<1x128x128xf32> to vector<128x128xf32>
    %cst = arith.constant dense<0.000000e+00> : vector<128x896xf32>
    %20 = tpu.matmul %19, %0, %cst {dimension_numbers = #tpu.dot_dimension_numbers<[1], [0], [0], [1], [0, 0, 1, 1], [], []>} : vector<128x128xf32>, vector<128x896xf32>, vector<128x896xf32> -> vector<128x896xf32>
    %c0_i32_6 = arith.constant 0 : i32
    %21 = vector.broadcast %c0_i32_6 : i32 to vector<128x896xi32>
    %22 = arith.cmpi eq, %17, %21 : vector<128x896xi32>
    %c1_i32_7 = arith.constant 1 : i32
    %23 = tpu.dynamic_rotate %0 by %c1_i32_7 dim 1 : vector<128x896xf32>, i32 -> vector<128x896xf32>
    %cst_8 = arith.constant 0.000000e+00 : f32
    %24 = vector.broadcast %cst_8 : f32 to vector<128x896xf32>
    %25 = arith.select %22, %24, %23 : vector<128x896xi1>, vector<128x896xf32>
    %c0_9 = arith.constant 0 : index
    %c0_10 = arith.constant 0 : index
    %c0_11 = arith.constant 0 : index
    %26 = vector.load %arg0[%c0_9, %c0_10, %c0_11] : memref<3x128x128xf32, #tpu.memory_space<vmem>>, vector<1x128x128xf32>
    %27 = vector.shape_cast %26 : vector<1x128x128xf32> to vector<128x128xf32>
    %cst_12 = arith.constant dense<0.000000e+00> : vector<128x896xf32>
    %28 = tpu.matmul %27, %25, %cst_12 {dimension_numbers = #tpu.dot_dimension_numbers<[1], [0], [0], [1], [0, 0, 1, 1], [], []>} : vector<128x128xf32>, vector<128x896xf32>, vector<128x896xf32> -> vector<128x896xf32>
    %29 = arith.addf %20, %28 : vector<128x896xf32>
    %c27_i32 = arith.constant 27 : i32
    %30 = vector.broadcast %c27_i32 : i32 to vector<128x896xi32>
    %31 = arith.cmpi eq, %17, %30 : vector<128x896xi32>
    %c895_i32 = arith.constant 895 : i32
    %32 = tpu.dynamic_rotate %0 by %c895_i32 dim 1 : vector<128x896xf32>, i32 -> vector<128x896xf32>
    %cst_13 = arith.constant 0.000000e+00 : f32
    %33 = vector.broadcast %cst_13 : f32 to vector<128x896xf32>
    %34 = arith.select %31, %33, %32 : vector<128x896xi1>, vector<128x896xf32>
    %c2 = arith.constant 2 : index
    %c0_14 = arith.constant 0 : index
    %c0_15 = arith.constant 0 : index
    %35 = vector.load %arg0[%c2, %c0_14, %c0_15] : memref<3x128x128xf32, #tpu.memory_space<vmem>>, vector<1x128x128xf32>
    %36 = vector.shape_cast %35 : vector<1x128x128xf32> to vector<128x128xf32>
    %cst_16 = arith.constant dense<0.000000e+00> : vector<128x896xf32>
    %37 = tpu.matmul %36, %34, %cst_16 {dimension_numbers = #tpu.dot_dimension_numbers<[1], [0], [0], [1], [0, 0, 1, 1], [], []>} : vector<128x128xf32>, vector<128x896xf32>, vector<128x896xf32> -> vector<128x896xf32>
    %38 = arith.addf %29, %37 : vector<128x896xf32>
    %c0_17 = arith.constant 0 : index
    %c0_18 = arith.constant 0 : index
    %39 = vector.load %arg2[%c0_17, %c0_18] : memref<128x896xf32, #tpu.memory_space<vmem>>, vector<128x896xf32>
    tpu.vector_store %arg2[%c0_17, %c0_18], %38 {strides = array<i32>} : memref<128x896xf32, #tpu.memory_space<vmem>>, vector<128x896xf32>,
    return
  }
}

</mosaic_0001>

<bundles_post_ra>
// kernel: forward.1
= control target key start
LH: loop header
LB: loop body
LE: loop exit
PB: predicated region body
PF: predicated region fallthrough
CT: control target
= control target key end

     0   :  { %v123_v0 = vlaneseq  ;;  %s5538_s25 = smov 1   ;;  %v5539_v28 = vmov 0   ;;  %s5541_s17 = smov 127   ;;  %s9398_s1 = inlined_call_operand.vmem [shape: f32[128,896], index: 1, kind: input, shape index: {}]   ;;  %s9399_s0 = inlined_call_operand.vmem [shape: f32[3,128,128], index: 0, kind: input, shape index: {}]   ;;  %s9400_s2 = inlined_call_operand.vmem [shape: f32[128,896], index: 2, kind: output, shape index: {}]  }
   0x1   :  { %v5560_v1 = vld [vmem:[%s9398_s1 + $0x10] sm:$0xff]  ;;  %v5565_v2 = vld [vmem:[%s9398_s1 + $0x48] sm:$0xff]  ;;  %v11_v3 = vld [vmem:[%s9398_s1] sm:$0xff] }
   0x2   :  { %v5572_v4 = vpack.i.bf16 %v5565_v2, %v5560_v1  ;;  %v18_v6 = vld [vmem:[%s9398_s1 + $0x38] sm:$0xff]  ;;  %v21_v8 = vld [vmem:[%s9398_s1 + $0x50] sm:$0xff]  ;;  %v5585_v9 = vand.u32 127, %v123_v0  ;;  %v12_v11 = vld [vmem:[%s9398_s1 + $0x8] sm:$0xff] }
   0x3   :  { %v14_v7 = vld [vmem:[%s9398_s1 + $0x18] sm:$0xff]  ;;  %v5587_v10 = vpack.i.bf16 %v18_v6, %v11_v3  ;;  %v19_v12 = vld [vmem:[%s9398_s1 + $0x40] sm:$0xff]  ;;  %v25_v16 = vld [vmem:[%s9398_s1 + $0x70] sm:$0xff] }
   0x4   :  { %4877 = vrot.lane.b32.xlu1 %v5572_v4, %s5538_s25  ;;  %v5597_v13 = vpack.i.bf16 %v21_v8, %v14_v7  ;;  %v130_v14 = vadd.s32 768, %v5585_v9  ;;  %v5602_v15 = vpack.i.bf16 %v19_v12, %v12_v11  ;;  %v32_v17 = vld [vmem:[%s9398_s1 + $0xa8] sm:$0xff]  ;;  %v17_v18 = vld [vmem:[%s9398_s1 + $0x30] sm:$0xff]  ;;  %v27_v24 = vld [vmem:[%s9398_s1 + $0x80] sm:$0xff] }
   0x5   :  { %4867 = vrot.lane.b32.xlu0 %v5587_v10, %s5538_s25  ;;  %v24_v19 = vld [vmem:[%s9398_s1 + $0x68] sm:$0xff]  ;;  %v4891_v22 = vpack.i.bf16 %v32_v17, %v25_v16  ;;  %v34_v25 = vld [vmem:[%s9398_s1 + $0xb8] sm:$0xff]  ;;  %v33_v27 = vld [vmem:[%s9398_s1 + $0xb0] sm:$0xff] }
   0x6   :  { %v5616_v20 = vmul.u32.u64.low 2454267026, %v130_v14  ;;  %v5617_v21 = vmul.u32.u64.high 2454267026, %v130_v14, %v5616_v20  ;;  %v5623_v23 = vpack.i.bf16 %v24_v19, %v17_v18  ;;  %v26_v26 = vld [vmem:[%s9398_s1 + $0x78] sm:$0xff]  ;;  %v5640_v31 = vpack.i.bf16 %v34_v25, %v27_v24  ;;  %v31_v33 = vld [vmem:[%s9398_s1 + $0xa0] sm:$0xff]  ;;  %v28_v36 = vld [vmem:[%s9398_s1 + $0x88] sm:$0xff] }
   0x7   :  { %v5644_v32 = vpack.i.bf16 %v33_v27, %v26_v26  ;;  %v38_v34 = vld [vmem:[%s9398_s1 + $0xd8] sm:$0xff]  ;;  %v35_v37 = vld [vmem:[%s9398_s1 + $0xc0] sm:$0xff]  ;;  %v40_v41 = vld [vmem:[%s9398_s1 + $0xe8] sm:$0xff] }
   0x8   :  { %4882 = vrot.lane.b32.xlu1 %v5597_v13, %s5538_s25  ;;  %vm221_vm0 = vc.u32 %v5616_v20, 2454267026  ;;  %v5660_v39 = vpack.i.bf16 %v38_v34, %v31_v33  ;;  %v5664_v40 = vpack.i.bf16 %v35_v37, %v28_v36  ;;  %v47_v42 = vld [vmem:[%s9398_s1 + $0x120] sm:$0xff]  ;;  %v46_v45 = vld [vmem:[%s9398_s1 + $0x118] sm:$0xff]  ;;  %v49_v49 = vld [vmem:[%s9398_s1 + $0x130] sm:$0xff] }
   0x9   :  { %4872 = vrot.lane.b32.xlu0 %v5602_v15, %s5538_s25  ;;  %v222_v29 = vsel %vm221_vm0, 1, %v5539_v28  ;;  %v39_v44 = vld [vmem:[%s9398_s1 + $0xe0] sm:$0xff]  ;;  %v5682_v46 = vpack.i.bf16 %v47_v42, %v40_v41  ;;  %v42_v48 = vld [vmem:[%s9398_s1 + $0xf8] sm:$0xff]  ;;  %v41_v50 = vld [vmem:[%s9398_s1 + $0xf0] sm:$0xff] }
   0xa   :  { %v223_v30 = vadd.s32 %v5617_v21, %v222_v29  ;;  %v4916_v47 = vpack.i.bf16 %v46_v45, %v39_v44  ;;  %v48_v51 = vld [vmem:[%s9398_s1 + $0x128] sm:$0xff]  ;;  %v5700_v52 = vpack.i.bf16 %v49_v49, %v42_v48  ;;  %v53_v54 = vld [vmem:[%s9398_s1 + $0x150] sm:$0xff]  ;;  %v55_v60 = vld [vmem:[%s9398_s1 + $0x160] sm:$0xff] }
   0xb   :  { %v5703_v53 = vpack.i.bf16 %v48_v51, %v41_v50  ;;  %v60_v55 = vld [vmem:[%s9398_s1 + $0x188] sm:$0xff]  ;;  %v45_v56 = vld [vmem:[%s9398_s1 + $0x110] sm:$0xff]  ;;  %v62_v61 = vld [vmem:[%s9398_s1 + $0x198] sm:$0xff] }
   0xc   :  { %4892 = vrot.lane.b32.xlu1 %v4891_v22, %s5538_s25  ;;  %v224_v35 = vshrl.u32 %v223_v30, 4  ;;  %v52_v57 = vld [vmem:[%s9398_s1 + $0x148] sm:$0xff]  ;;  %v4941_v58 = vpack.i.bf16 %v60_v55, %v53_v54  ;;  %v54_v62 = vld [vmem:[%s9398_s1 + $0x158] sm:$0xff]  ;;  %v61_v63 = vld [vmem:[%s9398_s1 + $0x190] sm:$0xff]  ;;  %v5734_v0 = vpack.i.bf16 %v62_v61, %v55_v60  ;;  %v129_v60 = vadd.s32 640, %v5585_v9 }
   0xd   :  { %4887 = vrot.lane.b32.xlu0 %v5623_v23, %s5538_s25  ;;  %v4936_v59 = vpack.i.bf16 %v52_v57, %v45_v56  ;;  %v4946_v3 = vpack.i.bf16 %v61_v63, %v54_v62  ;;  %v59_v6 = vld [vmem:[%s9398_s1 + $0x180] sm:$0xff]  ;;  %v66_v7 = vld [vmem:[%s9398_s1 + $0x1b8] sm:$0xff]  ;;  %v56_v8 = vld [vmem:[%s9398_s1 + $0x168] sm:$0xff]  ;;  %v128_v62 = vadd.s32 512, %v5585_v9 }
   0xe   :  { %v225_v38 = vmul.u32 28, %v224_v35  ;;  %v63_v11 = vld [vmem:[%s9398_s1 + $0x1a0] sm:$0xff]  ;;  %v4961_v12 = vpack.i.bf16 %v66_v7, %v59_v6  ;;  %v68_v16 = vld [vmem:[%s9398_s1 + $0x1c8] sm:$0xff]  ;;  %v74_v19 = vld [vmem:[%s9398_s1 + $0x1f8] sm:$0xff] }
   0xf   :  { %v75_v17 = vld [vmem:[%s9398_s1 + $0x200] sm:$0xff]  ;;  %v70_v22 = vld [vmem:[%s9398_s1 + $0x1d8] sm:$0xff]  ;;  %v77_v24 = vld [vmem:[%s9398_s1 + $0x210] sm:$0xff] }
  0x10   :  { %4902 = vrot.lane.b32.xlu1 %v5640_v31, %s5538_s25  ;;  %v5672_v43 = vsub.s32 %v130_v14, %v225_v38  ;;  %v5752_v14 = vpack.i.bf16 %v63_v11, %v56_v8  ;;  %v67_v18 = vld [vmem:[%s9398_s1 + $0x1c0] sm:$0xff]  ;;  %v4971_v20 = vpack.i.bf16 %v75_v17, %v68_v16  ;;  %v69_v25 = vld [vmem:[%s9398_s1 + $0x1d0] sm:$0xff]  ;;  %v76_v26 = vld [vmem:[%s9398_s1 + $0x208] sm:$0xff]  ;;  %v5782_v27 = vpack.i.bf16 %v77_v24, %v70_v22 }
  0x11   :  { %4897 = vrot.lane.b32.xlu0 %v5644_v32, %s5538_s25  ;;  %v4966_v21 = vpack.i.bf16 %v74_v19, %v67_v18  ;;  %v5785_v29 = vpack.i.bf16 %v76_v26, %v69_v25  ;;  %v81_v30 = vld [vmem:[%s9398_s1 + $0x230] sm:$0xff]  ;;  %v88_v33 = vld [vmem:[%s9398_s1 + $0x268] sm:$0xff]  ;;  %v83_v38 = vld [vmem:[%s9398_s1 + $0x240] sm:$0xff]  ;;  %v5859_v7 = vmul.u32.u64.low 2454267026, %v129_v60  ;;  %v5860_v8 = vmul.u32.u64.high 2454267026, %v129_v60, %v5859_v7 }
  0x12   :  { %v73_v34 = vld [vmem:[%s9398_s1 + $0x1f0] sm:$0xff]  ;;  %v80_v35 = vld [vmem:[%s9398_s1 + $0x228] sm:$0xff]  ;;  %v4991_v36 = vpack.i.bf16 %v88_v33, %v81_v30  ;;  %v90_v41 = vld [vmem:[%s9398_s1 + $0x278] sm:$0xff]  ;;  %v5868_v16 = vmul.u32.u64.low 2454267026, %v128_v62  ;;  %v5869_v17 = vmul.u32.u64.high 2454267026, %v128_v62, %v5868_v16 }
  0x13   :  { %v4986_v37 = vpack.i.bf16 %v80_v35, %v73_v34  ;;  %v82_v42 = vld [vmem:[%s9398_s1 + $0x238] sm:$0xff]  ;;  %v89_v44 = vld [vmem:[%s9398_s1 + $0x270] sm:$0xff]  ;;  %v5816_v45 = vpack.i.bf16 %v90_v41, %v83_v38  ;;  %v87_v48 = vld [vmem:[%s9398_s1 + $0x260] sm:$0xff]  ;;  %vm207_vm1 = vc.u32 %v5859_v7, 2454267026 }
  0x14   :  { %4912 = vrot.lane.b32.xlu1 %v5660_v39, %s5538_s25  ;;  %v94_v49 = vld [vmem:[%s9398_s1 + $0x298] sm:$0xff]  ;;  %v84_v50 = vld [vmem:[%s9398_s1 + $0x248] sm:$0xff]  ;;  %v91_v51 = vld [vmem:[%s9398_s1 + $0x280] sm:$0xff]  ;;  %v208_v19 = vsel %vm207_vm1, 1, %v5539_v28  ;;  %vm193_vm2 = vc.u32 %v5868_v16, 2454267026 }
  0x15   :  { %4907 = vrot.lane.b32.xlu0 %v5664_v40, %s5538_s25  ;;  %v5011_v54 = vpack.i.bf16 %v94_v49, %v87_v48  ;;  %v5834_v55 = vpack.i.bf16 %v91_v51, %v84_v50  ;;  %v96_v56 = vld [vmem:[%s9398_s1 + $0x2a8] sm:$0xff]  ;;  %v103_v57 = vld [vmem:[%s9398_s1 + $0x2e0] sm:$0xff]  ;;  %v105_v6 = vld [vmem:[%s9398_s1 + $0x2f0] sm:$0xff]  ;;  %v209_v24 = vadd.s32 %v5860_v8, %v208_v19  ;;  %v194_v25 = vsel %vm193_vm2, 1, %v5539_v28 }
  0x16   :  { %v5021_v61 = vpack.i.bf16 %v103_v57, %v96_v56  ;;  %v97_v11 = vld [vmem:[%s9398_s1 + $0x2b0] sm:$0xff]  ;;  %v116_v22 = vld [vmem:[%s9398_s1 + $0x348] sm:$0xff]  ;;  %v195_v33 = vadd.s32 %v5869_v17, %v194_v25  ;;  %v111_v38 = vld [vmem:[%s9398_s1 + $0x320] sm:$0xff]  ;;  %v5962_v17 = vadd.s32 128, %v5585_v9 }
  0x17   :  { %v101_v26 = vld [vmem:[%s9398_s1 + $0x2d0] sm:$0xff]  ;;  %v108_v30 = vld [vmem:[%s9398_s1 + $0x308] sm:$0xff]  ;;  %v210_v34 = vshrl.u32 %v209_v24, 4  ;;  %v118_v41 = vld [vmem:[%s9398_s1 + $0x358] sm:$0xff]  ;;  %v5974_v24 = vadd.s32 256, %v5585_v9 }
  0x18   :  { %4922 = vrot.lane.b32.xlu1 %v5682_v46, %s5538_s25  ;;  %v5912_v50 = vpack.i.bf16 %v118_v41, %v111_v38  ;;  %v115_v56 = vld [vmem:[%s9398_s1 + $0x340] sm:$0xff]  ;;  %v122_v57 = vld [vmem:[%s9398_s1 + $0x378] sm:$0xff]  ;;  %v37_v16 = vld [vmem:[%s9398_s1 + $0xd0] sm:$0xff] }
  0x19   :  { %4917 = vrot.lane.b32.xlu0 %v4916_v47, %s5538_s25  ;;  %v4996_v47 = vpack.i.bf16 %v89_v44, %v82_v42  ;;  %v211_v42 = vmul.u32 28, %v210_v34  ;;  %v110_v44 = vld [vmem:[%s9398_s1 + $0x318] sm:$0xff]  ;;  %v29_v19 = vld [vmem:[%s9398_s1 + $0x90] sm:$0xff] }
  0x1a   :  { %v22_v7 = vld [vmem:[%s9398_s1 + $0x58] sm:$0xff] }
  0x1b   :  { %v5909_v49 = vsub.s32 %v129_v60, %v211_v42  ;;  %v5061_v60 = vpack.i.bf16 %v122_v57, %v115_v56  ;;  %v65_v56 = vld [vmem:[%s9398_s1 + $0x1b0] sm:$0xff] }
  0x1c   :  { %4932 = vrot.lane.b32.xlu1 %v5700_v52, %s5538_s25  ;;  %v57_v57 = vld [vmem:[%s9398_s1 + $0x170] sm:$0xff] }
  0x1d   :  { %4927 = vrot.lane.b32.xlu0 %v5703_v53, %s5538_s25 }
  0x20   :  { %4942 = vrot.lane.b32.xlu1 %v4941_v58, %s5538_s25  ;;  %v95_v58 = vld [vmem:[%s9398_s1 + $0x2a0] sm:$0xff] }
  0x21   :  { %4937 = vrot.lane.b32.xlu0 %v4936_v59, %s5538_s25  ;;  %v102_v59 = vld [vmem:[%s9398_s1 + $0x2d8] sm:$0xff] }
  0x22   :  { %v5016_v63 = vpack.i.bf16 %v102_v59, %v95_v58  ;;  %v112_v58 = vld [vmem:[%s9398_s1 + $0x328] sm:$0xff]  ;;  %v119_v59 = vld [vmem:[%s9398_s1 + $0x360] sm:$0xff] }
  0x24   :  { %4952 = vrot.lane.b32.xlu1 %v5734_v0, %s5538_s25 }
  0x25   :  { %4947 = vrot.lane.b32.xlu0 %v4946_v3, %s5538_s25  ;;  %v98_v3 = vld [vmem:[%s9398_s1 + $0x2b8] sm:$0xff] }
  0x26   :  { %v5872_v18 = vpack.i.bf16 %v105_v6, %v98_v3  ;;  %v23_v3 = vld [vmem:[%s9398_s1 + $0x60] sm:$0xff] }
  0x27   :  { %v15_v6 = vld [vmem:[%s9398_s1 + $0x20] sm:$0xff] }
  0x28   :  { %4962 = vrot.lane.b32.xlu1 %v4961_v12, %s5538_s25  ;;  %v104_v12 = vld [vmem:[%s9398_s1 + $0x2e8] sm:$0xff] }
  0x29   :  { %4957 = vrot.lane.b32.xlu0 %v5752_v14, %s5538_s25 }
  0x2c   :  { %4972 = vrot.lane.b32.xlu1 %v4971_v20, %s5538_s25  ;;  %v5876_v20 = vpack.i.bf16 %v104_v12, %v97_v11  ;;  %v5953_v11 = vpack.i.bf16 %v22_v7, %v15_v6  ;;  %v30_v12 = vld [vmem:[%s9398_s1 + $0x98] sm:$0xff]  ;;  %v72_v7 = vld [vmem:[%s9398_s1 + $0x1e8] sm:$0xff] }
  0x2d   :  { %4967 = vrot.lane.b32.xlu0 %v4966_v21, %s5538_s25  ;;  %v109_v21 = vld [vmem:[%s9398_s1 + $0x310] sm:$0xff]  ;;  %v5978_v25 = vpack.i.bf16 %v37_v16, %v30_v12  ;;  %v79_v12 = vld [vmem:[%s9398_s1 + $0x220] sm:$0xff] }
  0x2e   :  { %v5041_v35 = vpack.i.bf16 %v116_v22, %v109_v21  ;;  %v36_v21 = vld [vmem:[%s9398_s1 + $0xc8] sm:$0xff]  ;;  %v5971_v22 = vadd.s32 384, %v5585_v9 }
  0x30   :  { %4982 = vrot.lane.b32.xlu1 %v5782_v27, %s5538_s25  ;;  %v6001_v38 = vmul.u32.u64.low 2454267026, %v5971_v22  ;;  %v6002_v41 = vmul.u32.u64.high 2454267026, %v5971_v22, %v6001_v38 }
  0x31   :  { %4977 = vrot.lane.b32.xlu0 %v5785_v29, %s5538_s25 }
  0x32   :  { %vm179_vm4 = vc.u32 %v6001_v38, 2454267026  ;;  %v86_v38 = vld [vmem:[%s9398_s1 + $0x258] sm:$0xff] }
  0x33   :  { %v180_v16 = vsel %vm179_vm4, 1, %v5539_v28 }
  0x34   :  { %4992 = vrot.lane.b32.xlu1 %v4991_v36, %s5538_s25  ;;  %v196_v36 = vshrl.u32 %v195_v33, 4  ;;  %v51_v33 = vld [vmem:[%s9398_s1 + $0x140] sm:$0xff] }
  0x35   :  { %4987 = vrot.lane.b32.xlu0 %v4986_v37, %s5538_s25  ;;  %v5036_v37 = vpack.i.bf16 %v108_v30, %v101_v26  ;;  %v5982_v26 = vpack.i.bf16 %v36_v21, %v29_v19  ;;  %v44_v30 = vld [vmem:[%s9398_s1 + $0x108] sm:$0xff]  ;;  %v71_v19 = vld [vmem:[%s9398_s1 + $0x1e0] sm:$0xff]  ;;  %v78_v21 = vld [vmem:[%s9398_s1 + $0x218] sm:$0xff] }
  0x36   :  { %v197_v48 = vmul.u32 28, %v196_v36  ;;  %v43_v36 = vld [vmem:[%s9398_s1 + $0x100] sm:$0xff] }
  0x38   :  { %5002 = vrot.lane.b32.xlu1 %v5816_v45, %s5538_s25  ;;  %v5914_v51 = vsub.s32 %v128_v62, %v197_v48  ;;  %v5933_v62 = vpack.i.bf16 %v119_v59, %v112_v58  ;;  %v64_v58 = vld [vmem:[%s9398_s1 + $0x1a8] sm:$0xff] }
  0x39   :  { %4997 = vrot.lane.b32.xlu0 %v4996_v47, %s5538_s25  ;;  %v117_v47 = vld [vmem:[%s9398_s1 + $0x350] sm:$0xff]  ;;  %v6039_v6 = vpack.i.bf16 %v64_v58, %v57_v57 }
  0x3c   :  { %5012 = vrot.lane.b32.xlu1 %v5011_v54, %s5538_s25  ;;  %v5046_v54 = vpack.i.bf16 %v117_v47, %v110_v44  ;;  %v6005_v42 = vmul.u32.u64.low 2454267026, %v5974_v24  ;;  %v6006_v44 = vmul.u32.u64.high 2454267026, %v5974_v24, %v6005_v42  ;;  %v6010_v47 = vpack.i.bf16 %v51_v33, %v44_v30 }
  0x3d   :  { %5007 = vrot.lane.b32.xlu0 %v5834_v55, %s5538_s25 }
  0x3e   :  { %vm165_vm5 = vc.u32 %v6005_v42, 2454267026 }
  0x3f   :  { %v166_v30 = vsel %vm165_vm5, 1, %v5539_v28 }
  0x40   :  { %5022 = vrot.lane.b32.xlu1 %v5021_v61, %s5538_s25  ;;  %v9403_v61 = vmov 0.0   ;;  %v167_v42 = vadd.s32 %v6006_v44, %v166_v30  ;;  %v100_v44 = vld [vmem:[%s9398_s1 + $0x2c8] sm:$0xff] }
  0x41   :  { %5017 = vrot.lane.b32.xlu0 %v5016_v63, %s5538_s25  ;;  %817 = vmatprep.mubr.f32.mxu0 %v9403_v61  ;;  %v16_v63 = vld [vmem:[%s9398_s1 + $0x28] sm:$0xff] }
  0x42   :  { %978 = vmatprep.mubr.f32.mxu1 %v9403_v61  ;;  %v5949_v8 = vpack.i.bf16 %v23_v3, %v16_v63 }
  0x44   :  { %5032 = vrot.lane.b32.xlu1 %v5872_v18, %s5538_s25 }
  0x45   :  { %5027 = vrot.lane.b32.xlu0 %v5876_v20, %s5538_s25 }
  0x48   :  { %5042 = vrot.lane.b32.xlu1 %v5041_v35, %s5538_s25  ;;  %v5991_v34 = vmul.u32.u64.low 2454267026, %v5962_v17  ;;  %v5992_v35 = vmul.u32.u64.high 2454267026, %v5962_v17, %v5991_v34 }
  0x49   :  { %5037 = vrot.lane.b32.xlu0 %v5036_v37, %s5538_s25  ;;  %v50_v37 = vld [vmem:[%s9398_s1 + $0x138] sm:$0xff] }
  0x4a   :  { %v6014_v48 = vpack.i.bf16 %v50_v37, %v43_v36  ;;  %vm151_vm3 = vc.u32 %v5991_v34, 2454267026  ;;  %v6058_v34 = vpack.i.bf16 %v79_v12, %v72_v7  ;;  %v181_v36 = vadd.s32 %v6002_v41, %v180_v16  ;;  %v85_v41 = vld [vmem:[%s9398_s1 + $0x250] sm:$0xff]  ;;  %v107_v7 = vld [vmem:[%s9398_s1 + $0x300] sm:$0xff] }
  0x4b   :  { %v152_v3 = vsel %vm151_vm3, 1, %v5539_v28  ;;  %v6063_v37 = vpack.i.bf16 %v78_v21, %v71_v19  ;;  %v168_v12 = vshrl.u32 %v167_v42, 4  ;;  %v99_v16 = vld [vmem:[%s9398_s1 + $0x2c0] sm:$0xff]  ;;  %v5131_v21 = vpack.i.bf16 %v107_v7, %v100_v44 }
  0x4c   :  { %5052 = vrot.lane.b32.xlu1 %v5912_v50, %s5538_s25  ;;  %v153_v33 = vadd.s32 %v5992_v35, %v152_v3  ;;  %v93_v35 = vld [vmem:[%s9398_s1 + $0x290] sm:$0xff]  ;;  %vm512_vm3 = vcmp.lt.s32.totalorder %v5585_v9, 1 }
  0x4d   :  { %5047 = vrot.lane.b32.xlu0 %v5046_v54, %s5538_s25  ;;  %v58_v54 = vld [vmem:[%s9398_s1 + $0x178] sm:$0xff]  ;;  %v5121_v58 = vpack.i.bf16 %v93_v35, %v86_v38  ;;  %v121_v35 = vld [vmem:[%s9398_s1 + $0x370] sm:$0xff]  ;;  %v169_v42 = vmul.u32 28, %v168_v12 }
  0x4e   :  { %v6034_v63 = vpack.i.bf16 %v65_v56, %v58_v54  ;;  %v92_v56 = vld [vmem:[%s9398_s1 + $0x288] sm:$0xff]  ;;  %v154_v57 = vshrl.u32 %v153_v33, 4  ;;  %v114_v38 = vld [vmem:[%s9398_s1 + $0x338] sm:$0xff] }
  0x4f   :  { %v170_v44 = vsub.s32 %v5974_v24, %v169_v42 }
  0x50   :  { %5062 = vrot.lane.b32.xlu1 %v5061_v60, %s5538_s25  ;;  %v6029_v59 = vmul.u32.u64.low 2454267026, %v5585_v9  ;;  %v6030_v60 = vmul.u32.u64.high 2454267026, %v5585_v9, %v6029_v59  ;;  %v155_v19 = vmul.u32 28, %v154_v57  ;;  %v5141_v57 = vpack.i.bf16 %v121_v35, %v114_v38 }
  0x51   :  { %5057 = vrot.lane.b32.xlu0 %v5933_v62, %s5538_s25  ;;  %vm231_vm11 = vcmp.ne.s32.totalorder %v170_v44, 0  ;;  %vm238_vm12 = vcmp.lt.s32.totalorder %v170_v44, 0  ;;  %v252_v12 = vadd.s32 28, %v170_v44 }
  0x52   :  { %vm137_vm6 = vc.u32 %v6029_v59, 2454267026  ;;  %v182_v59 = vshrl.u32 %v181_v36, 4  ;;  %vm245_vm15 = vmand %vm238_vm12, %vm231_vm11  ;;  %vm235_vm12 = vcmp.ne.s32.totalorder %v5672_v43, 0 }
  0x53   :  { %v138_v54 = vsel %vm137_vm6, 1, %v5539_v28  ;;  %v6084_v28 = vpack.i.bf16 %v92_v56, %v85_v41  ;;  %v120_v41 = vld [vmem:[%s9398_s1 + $0x368] sm:$0xff]  ;;  %v156_v56 = vsub.s32 %v5962_v17, %v155_v19 }
  0x54   :  { %5072 = vrot.lane.b32.xlu1 %v5949_v8, %s5538_s25  ;;  %v139_v3 = vadd.s32 %v6030_v60, %v138_v54  ;;  %v106_v60 = vld [vmem:[%s9398_s1 + $0x2f8] sm:$0xff]  ;;  %v183_v30 = vmul.u32 28, %v182_v59  ;;  %v113_v54 = vld [vmem:[%s9398_s1 + $0x330] sm:$0xff] }
  0x55   :  { %5067 = vrot.lane.b32.xlu0 %v5953_v11, %s5538_s25  ;;  %v6101_v36 = vpack.i.bf16 %v106_v60, %v99_v16  ;;  %vm230_vm7 = vcmp.ne.s32.totalorder %v156_v56, 0  ;;  %vm237_vm8 = vcmp.lt.s32.totalorder %v156_v56, 0 }
  0x56   :  { %v140_v33 = vshrl.u32 %v139_v3, 4  ;;  %v6120_v3 = vpack.i.bf16 %v120_v41, %v113_v54  ;;  %vm244_vm13 = vmand %vm237_vm8, %vm230_vm7 }
  0x58   :  { %5082 = vrot.lane.b32.xlu1 %v5978_v25, %s5538_s25  ;;  %v141_v59 = vmul.u32 28, %v140_v33 }
  0x59   :  { %5077 = vrot.lane.b32.xlu0 %v5982_v26, %s5538_s25 }
  0x5a   :  { %v142_v17 = vsub.s32 %v5585_v9, %v141_v59 }
  0x5c   :  { %5092 = vrot.lane.b32.xlu1 %v6010_v47, %s5538_s25  ;;  %vm229_vm0 = vcmp.ne.s32.totalorder %v142_v17, 0  ;;  %vm236_vm1 = vcmp.lt.s32.totalorder %v142_v17, 0  ;;  %v250_v60 = vadd.s32 28, %v142_v17 }
  0x5d   :  { %5087 = vrot.lane.b32.xlu0 %v6014_v48, %s5538_s25  ;;  %vm243_vm2 = vmand %vm236_vm1, %vm229_vm0  ;;  %vm233_vm0 = vcmp.ne.s32.totalorder %v5914_v51, 0  ;;  %vm240_vm1 = vcmp.lt.s32.totalorder %v5914_v51, 0 }
  0x60   :  { %5102 = vrot.lane.b32.xlu1 %v6034_v63, %s5538_s25 }
  0x61   :  { %5097 = vrot.lane.b32.xlu0 %v6039_v6, %s5538_s25 }
  0x64   :  { %5112 = vrot.lane.b32.xlu1 %v6058_v34, %s5538_s25 }
  0x65   :  { %5107 = vrot.lane.b32.xlu0 %v6063_v37, %s5538_s25 }
  0x68   :  { %5122 = vrot.lane.b32.xlu1 %v5121_v58, %s5538_s25  ;;  %v184_v58 = vsub.s32 %v5971_v22, %v183_v30  ;;  %v251_v22 = vadd.s32 28, %v156_v56  ;;  %v6135_v30 = vsel %vm245_vm15, %v252_v12, %v170_v44  ;;  %vm241_vm15 = vcmp.lt.s32.totalorder %v5909_v49, 0 }
  0x69   :  { %5117 = vrot.lane.b32.xlu0 %v6084_v28, %s5538_s25  ;;  %9537 = vst [vmem:[#allocation4_spill] sm:$0xff] %v6135_v30  ;;  %vm3821_vm6 = vcmp.ne.s32.totalorder %v6135_v30, 0 }
  0x6a   :  { %vm232_vm9 = vcmp.ne.s32.totalorder %v184_v58, 0  ;;  %vm239_vm10 = vcmp.lt.s32.totalorder %v184_v58, 0  ;;  %v253_v7 = vadd.s32 28, %v184_v58  ;;  %v6131_v16 = vsel %vm244_vm13, %v251_v22, %v156_v56 }
  0x6b   :  { %vm246_vm14 = vmand %vm239_vm10, %vm232_vm9  ;;  %9535 = vst [vmem:[#allocation2_spill] sm:$0xff] %v6131_v16  ;;  %vm3818_vm4 = vcmp.ne.s32.totalorder %v6131_v16, 0  ;;  %vm242_vm13 = vcmp.lt.s32.totalorder %v5672_v43, 0  ;;  %v7246_v16 = vld [vmem:[%s9398_s1 + $0x348] sm:$0xff] }
  0x6c   :  { %5132 = vrot.lane.b32.xlu1 %v5131_v21, %s5538_s25  ;;  %v6133_v21 = vsel %vm246_vm14, %v253_v7, %v184_v58  ;;  %vm6174_vm8 = vmpackc.low %vm3818_vm4, %vm3818_vm4  ;;  %vm234_vm14 = vcmp.ne.s32.totalorder %v5909_v49, 0 }
  0x6d   :  { %5127 = vrot.lane.b32.xlu0 %v6101_v36, %s5538_s25  ;;  %9536 = vst [vmem:[#allocation3_spill] sm:$0xff] %v6133_v21  ;;  %vm3820_vm5 = vcmp.ne.s32.totalorder %v6133_v21, 0  ;;  %vm6187_vm9 = vmpackc.low %vm3821_vm6, %vm3821_vm6 }
  0x6e   :  { %vm6161_vm7 = vmpackc.low %vm3820_vm5, %vm3820_vm5 }
  0x6f   :  { %vm248_vm4 = vmand %vm241_vm15, %vm234_vm14 }
  0x70   :  { %5142 = vrot.lane.b32.xlu1 %v5141_v57, %s5538_s25  ;;  %vm6606_vm5 = vmand %vm240_vm1, %vm233_vm0 }
  0x71   :  { %5137 = vrot.lane.b32.xlu0 %v6120_v3, %s5538_s25 }
  0x74   :  { %5152 = vrot.lane.b32.xlu1 %v5953_v11, %s5541_s17  ;;  %v6147_v11 = vsel %vm243_vm2, %v250_v60, %v142_v17  ;;  %vm6565_vm2 = vmand %vm242_vm13, %vm235_vm12 }
  0x75   :  { %5147 = vrot.lane.b32.xlu0 %v5597_v13, %s5541_s17  ;;  %9538 = vst [vmem:[#allocation5_spill] sm:$0xff] %v6147_v11  ;;  %vm3819_vm10 = vcmp.ne.s32.totalorder %v6147_v11, 0  ;;  %v7186_v11 = vld [vmem:[%s9398_s1 + $0x2d0] sm:$0xff] }
  0x76   :  { %v4878_v24 = vpop.permute.xlu1 %4877  ;;  %vm6212_vm11 = vmpackc.low %vm3819_vm10, %vm3819_vm10 }
  0x77   :  { %v4868_v19 = vpop.permute.xlu0 %4867  ;;  %v4880_v33 = vunpack.i.h.bf16 %v4878_v24  ;;  %v4879_v38 = vunpack.i.l.bf16 %v4878_v24 }
  0x78   :  { %5162 = vrot.lane.b32.xlu1 %v5664_v40, %s5541_s17  ;;  %v4870_v54 = vunpack.i.h.bf16 %v4868_v19  ;;  %v4869_v41 = vunpack.i.l.bf16 %v4868_v19  ;;  %v5449_v19 = vld [vmem:[%s9398_s1 + $0x40] sm:$0xff] }
  0x79   :  { %5157 = vrot.lane.b32.xlu0 %v5572_v4, %s5541_s17 }
  0x7a   :  { %v6143_v13 = vpop.permute.xlu1 %4882 }
  0x7b   :  { %v9428_v35 = vunpack.i.h.bf16 %v6143_v13  ;;  %v9427_v40 = vunpack.i.l.bf16 %v6143_v13  ;;  %v4873_v42 = vpop.permute.xlu0 %4872 }
  0x7c   :  { %v4875_v56 = vunpack.i.h.bf16 %v4873_v42  ;;  %v4874_v57 = vunpack.i.l.bf16 %v4873_v42  ;;  %5172 = vrot.lane.b32.xlu1 %v5640_v31, %s5541_s17 }
  0x7d   :  { %v561_v4 = vsel %vm512_vm3, %v4879_v38, %v9427_v40  ;;  %v562_v58 = vsel %vm512_vm3, %v4880_v33, %v9428_v35  ;;  %5167 = vrot.lane.b32.xlu0 %v5982_v26, %s5541_s17  ;;  %v6653_v35 = vld [vmem:[%s9398_s1 + $0x1c0] sm:$0xff] }
  0x7e   :  { %v4893_v44 = vpop.permute.xlu1 %4892  ;;  %v593_v31 = vsel %vm512_vm3, %v4869_v41, %v4874_v57  ;;  %v594_v17 = vsel %vm512_vm3, %v4870_v54, %v4875_v56  ;;  %v4144_v7 = vpack.c.bf16 %v562_v58, %v561_v4  ;;  %v577_v12 = vsel %vm512_vm3, %v4874_v57, %v4879_v38 }
  0x7f   :  { %v6180_v24 = vpop.permute.xlu0 %4887  ;;  %v4096_v26 = vpack.c.bf16 %v594_v17, %v593_v31  ;;  %v578_v60 = vsel %vm512_vm3, %v4875_v56, %v4880_v33  ;;  %v4895_v58 = vunpack.i.h.bf16 %v4893_v44  ;;  %v4894_v17 = vunpack.i.l.bf16 %v4893_v44 }
  0x80   :  { %v9429_v42 = vunpack.i.h.bf16 %v6180_v24  ;;  %v9430_v4 = vunpack.i.l.bf16 %v6180_v24  ;;  %4146 = vmatprep.subr.msk.bf16.mxu1 %vm6161_vm7, %v4144_v7  ;;  %v4147_v38 = vpack.c.bf16 %v578_v60, %v577_v12  ;;  %5182 = vrot.lane.b32.xlu1 %v6014_v48, %s5541_s17 }
  0x81   :  { %4098 = vmatprep.subr.msk.bf16.mxu0 %vm6174_vm8, %v4096_v26  ;;  %5177 = vrot.lane.b32.xlu0 %v5700_v52, %s5541_s17 }
  0x82   :  { %4149 = vmatpush1.bf16.msk.msra.mxu1 %vm6187_vm9, %v4147_v38  ;;  %v4903_v33 = vpop.permute.xlu1 %4902  ;;  %v609_v56 = vsel %vm512_vm3, %v9430_v4, %v4869_v41  ;;  %v610_v48 = vsel %vm512_vm3, %v9429_v42, %v4870_v54 }
  0x83   :  { %v4898_v52 = vpop.permute.xlu0 %4897  ;;  %v4099_v31 = vpack.c.bf16 %v610_v48, %v609_v56  ;;  %v4905_v7 = vunpack.i.h.bf16 %v4903_v33  ;;  %v4904_v41 = vunpack.i.l.bf16 %v4903_v33 }
  0x84   :  { %v4900_v12 = vunpack.i.h.bf16 %v4898_v52  ;;  %v4899_v26 = vunpack.i.l.bf16 %v4898_v52  ;;  %5192 = vrot.lane.b32.xlu1 %v5752_v14, %s5541_s17 }
  0x85   :  { %4101 = vmatpush1.bf16.msk.msra.mxu0 %vm6212_vm11, %v4099_v31  ;;  %5187 = vrot.lane.b32.xlu0 %v5703_v53, %s5541_s17 }
  0x86   :  { %v596_v54 = vsel %vm512_vm3, %v4895_v58, %v4900_v12  ;;  %v595_v60 = vsel %vm512_vm3, %v4894_v17, %v4899_v26  ;;  %v6226_v44 = vpop.permute.xlu1 %4912  ;;  %v580_v48 = vsel %vm512_vm3, %v4900_v12, %v4905_v7  ;;  %v579_v31 = vsel %vm512_vm3, %v4899_v26, %v4904_v41 }
  0x87   :  { %v9401_v38 = vunpack.i.h.bf16 %v6226_v44  ;;  %v9402_v56 = vunpack.i.l.bf16 %v6226_v44  ;;  %v6230_v14 = vpop.permute.xlu0 %4907  ;;  %v4102_v33 = vpack.c.bf16 %v596_v54, %v595_v60 }
  0x88   :  { %v9425_v53 = vunpack.i.h.bf16 %v6230_v14  ;;  %v9426_v52 = vunpack.i.l.bf16 %v6230_v14  ;;  %5202 = vrot.lane.b32.xlu1 %v5734_v0, %s5541_s17 }
  0x89   :  { %v611_v5 = vsel %vm512_vm3, %v9402_v56, %v4894_v17  ;;  %v612_v12 = vsel %vm512_vm3, %v9401_v38, %v4895_v58  ;;  %4104 = vmatprep.subr.msk.bf16.mxu0 %vm6174_vm8, %v4102_v33  ;;  %5197 = vrot.lane.b32.xlu0 %v6039_v6, %s5541_s17  ;;  %v4153_v6 = vpack.c.bf16 %v580_v48, %v579_v31 }
  0x8a   :  { %v564_v0 = vsel %vm512_vm3, %v4905_v7, %v9425_v53  ;;  %v563_v17 = vsel %vm512_vm3, %v4904_v41, %v9426_v52  ;;  %v4923_v26 = vpop.permute.xlu1 %4922  ;;  %v4105_v54 = vpack.c.bf16 %v612_v12, %v611_v5 }
  0x8b   :  { %v4925_v60 = vunpack.i.h.bf16 %v4923_v26  ;;  %v4924_v58 = vunpack.i.l.bf16 %v4923_v26  ;;  %v4918_v38 = vpop.permute.xlu0 %4917  ;;  %v4150_v56 = vpack.c.bf16 %v564_v0, %v563_v17 }
  0x8c   :  { %v4920_v33 = vunpack.i.h.bf16 %v4918_v38  ;;  %v4919_v61 = vunpack.i.l.bf16 %v4918_v38  ;;  %4107 = vmatpush1.bf16.msk.msra.mxu0 %vm6212_vm11, %v4105_v54  ;;  %5212 = vrot.lane.b32.xlu1 %v6063_v37, %s5541_s17 }
  0x8d   :  { %4152 = vmatprep.subr.msk.bf16.mxu1 %vm6161_vm7, %v4150_v56  ;;  %5207 = vrot.lane.b32.xlu0 %v5782_v27, %s5541_s17 }
  0x8e   :  { %v598_v5 = vsel %vm512_vm3, %v4920_v33, %v4925_v60  ;;  %v597_v7 = vsel %vm512_vm3, %v4919_v61, %v4924_v58  ;;  %4155 = vmatpush1.bf16.msk.msra.mxu1 %vm6187_vm9, %v4153_v6  ;;  %v6274_v41 = vpop.permute.xlu1 %4932 }
  0x8f   :  { %v9420_v38 = vunpack.i.h.bf16 %v6274_v41  ;;  %v9407_v37 = vunpack.i.l.bf16 %v6274_v41  ;;  %v4928_v48 = vpop.permute.xlu0 %4927  ;;  %v4108_v56 = vpack.c.bf16 %v598_v5, %v597_v7 }
  0x90   :  { %v4930_v31 = vunpack.i.h.bf16 %v4928_v48  ;;  %v4929_v12 = vunpack.i.l.bf16 %v4928_v48  ;;  %5222 = vrot.lane.b32.xlu1 %v5834_v55, %s5541_s17 }
  0x91   :  { %4110 = vmatprep.subr.msk.bf16.mxu0 %vm6174_vm8, %v4108_v56  ;;  %5217 = vrot.lane.b32.xlu0 %v5785_v29, %s5541_s17 }
  0x92   :  { %v566_v27 = vsel %vm512_vm3, %v4930_v31, %v9420_v38  ;;  %v582_v0 = vsel %vm512_vm3, %v4925_v60, %v4930_v31  ;;  %v565_v17 = vsel %vm512_vm3, %v4929_v12, %v9407_v37  ;;  %v581_v55 = vsel %vm512_vm3, %v4924_v58, %v4929_v12  ;;  %v4943_v26 = vpop.permute.xlu1 %4942 }
  0x93   :  { %v6296_v54 = vpop.permute.xlu0 %4937  ;;  %v4156_v29 = vpack.c.bf16 %v566_v27, %v565_v17  ;;  %v4159_v6 = vpack.c.bf16 %v582_v0, %v581_v55  ;;  %v4945_v48 = vunpack.i.h.bf16 %v4943_v26  ;;  %v4944_v12 = vunpack.i.l.bf16 %v4943_v26 }
  0x94   :  { %v9423_v5 = vunpack.i.h.bf16 %v6296_v54  ;;  %v9424_v7 = vunpack.i.l.bf16 %v6296_v54  ;;  %5232 = vrot.lane.b32.xlu1 %v5816_v45, %s5541_s17 }
  0x95   :  { %4158 = vmatprep.subr.msk.bf16.mxu1 %vm6161_vm7, %v4156_v29  ;;  %5227 = vrot.lane.b32.xlu0 %v6084_v28, %s5541_s17 }
  0x96   :  { %v613_v60 = vsel %vm512_vm3, %v9424_v7, %v4919_v61  ;;  %v614_v58 = vsel %vm512_vm3, %v9423_v5, %v4920_v33  ;;  %4161 = vmatpush1.bf16.msk.msra.mxu1 %vm6187_vm9, %v4159_v6  ;;  %v4953_v45 = vpop.permute.xlu1 %4952 }
  0x97   :  { %v4111_v56 = vpack.c.bf16 %v614_v58, %v613_v60  ;;  %v4948_v31 = vpop.permute.xlu0 %4947  ;;  %v4955_v27 = vunpack.i.h.bf16 %v4953_v45  ;;  %v4954_v61 = vunpack.i.l.bf16 %v4953_v45 }
  0x98   :  { %v4950_v28 = vunpack.i.h.bf16 %v4948_v31  ;;  %v4949_v0 = vunpack.i.l.bf16 %v4948_v31  ;;  %5242 = vrot.lane.b32.xlu1 %v6101_v36, %s5541_s17 }
  0x99   :  { %4113 = vmatpush1.bf16.msk.msra.mxu0 %vm6212_vm11, %v4111_v56  ;;  %5237 = vrot.lane.b32.xlu0 %v5872_v18, %s5541_s17 }
  0x9a   :  { %v600_v33 = vsel %vm512_vm3, %v4945_v48, %v4950_v28  ;;  %v599_v17 = vsel %vm512_vm3, %v4944_v12, %v4949_v0  ;;  %v6326_v55 = vpop.permute.xlu1 %4962  ;;  %v584_v60 = vsel %vm512_vm3, %v4950_v28, %v4955_v27  ;;  %v583_v45 = vsel %vm512_vm3, %v4949_v0, %v4954_v61 }
  0x9b   :  { %v4114_v26 = vpack.c.bf16 %v600_v33, %v599_v17  ;;  %v9405_v29 = vunpack.i.h.bf16 %v6326_v55  ;;  %v9406_v36 = vunpack.i.l.bf16 %v6326_v55  ;;  %v6330_v6 = vpop.permute.xlu0 %4957 }
  0x9c   :  { %v9418_v18 = vunpack.i.h.bf16 %v6330_v6  ;;  %v9419_v58 = vunpack.i.l.bf16 %v6330_v6  ;;  %5252 = vrot.lane.b32.xlu1 %v5933_v62, %s5541_s17 }
  0x9d   :  { %v615_v56 = vsel %vm512_vm3, %v9406_v36, %v4944_v12  ;;  %v616_v31 = vsel %vm512_vm3, %v9405_v29, %v4945_v48  ;;  %4116 = vmatprep.subr.msk.bf16.mxu0 %vm6174_vm8, %v4114_v26  ;;  %5247 = vrot.lane.b32.xlu0 %v5876_v20, %s5541_s17  ;;  %v4165_v26 = vpack.c.bf16 %v584_v60, %v583_v45 }
  0x9e   :  { %v4117_v62 = vpack.c.bf16 %v616_v31, %v615_v56  ;;  %v568_v28 = vsel %vm512_vm3, %v4955_v27, %v9418_v18  ;;  %v567_v12 = vsel %vm512_vm3, %v4954_v61, %v9419_v58  ;;  %v4973_v0 = vpop.permute.xlu1 %4972  ;;  %v254_v18 = vadd.s32 28, %v5914_v51 }
  0x9f   :  { %v4162_v33 = vpack.c.bf16 %v568_v28, %v567_v12  ;;  %v4975_v48 = vunpack.i.h.bf16 %v4973_v0  ;;  %v4974_v17 = vunpack.i.l.bf16 %v4973_v0  ;;  %v4968_v29 = vpop.permute.xlu0 %4967 }
  0xa0   :  { %v4970_v36 = vunpack.i.h.bf16 %v4968_v29  ;;  %v4969_v37 = vunpack.i.l.bf16 %v4968_v29  ;;  %4119 = vmatpush1.bf16.msk.msra.mxu0 %vm6212_vm11, %v4117_v62  ;;  %5262 = vrot.lane.b32.xlu1 %v5912_v50, %s5541_s17 }
  0xa1   :  { %4164 = vmatprep.subr.msk.bf16.mxu1 %vm6161_vm7, %v4162_v33  ;;  %5257 = vrot.lane.b32.xlu0 %v6120_v3, %s5541_s17 }
  0xa2   :  { %v602_v20 = vsel %vm512_vm3, %v4970_v36, %v4975_v48  ;;  %v601_v27 = vsel %vm512_vm3, %v4969_v37, %v4974_v17  ;;  %4167 = vmatpush1.bf16.msk.msra.mxu1 %vm6187_vm9, %v4165_v26  ;;  %v6374_v61 = vpop.permute.xlu1 %4982 }
  0xa3   :  { %v4120_v29 = vpack.c.bf16 %v602_v20, %v601_v27  ;;  %v9411_v50 = vunpack.i.h.bf16 %v6374_v61  ;;  %v9410_v60 = vunpack.i.l.bf16 %v6374_v61  ;;  %v4978_v45 = vpop.permute.xlu0 %4977 }
  0xa4   :  { %v4980_v56 = vunpack.i.h.bf16 %v4978_v45  ;;  %v4979_v31 = vunpack.i.l.bf16 %v4978_v45  ;;  %5272 = vrot.lane.b32.xlu1 %v5949_v8, %s5541_s17 }
  0xa5   :  { %4122 = vmatprep.subr.msk.bf16.mxu0 %vm6174_vm8, %v4120_v29  ;;  %5267 = vrot.lane.b32.xlu0 %v5602_v15, %s5541_s17 }
  0xa6   :  { %v570_v3 = vsel %vm512_vm3, %v4980_v56, %v9411_v50  ;;  %v586_v62 = vsel %vm512_vm3, %v4975_v48, %v4980_v56  ;;  %v569_v28 = vsel %vm512_vm3, %v4979_v31, %v9410_v60  ;;  %v585_v8 = vsel %vm512_vm3, %v4974_v17, %v4979_v31  ;;  %v4993_v12 = vpop.permute.xlu1 %4992 }
  0xa7   :  { %v4168_v0 = vpack.c.bf16 %v570_v3, %v569_v28  ;;  %v4171_v33 = vpack.c.bf16 %v586_v62, %v585_v8  ;;  %v6396_v15 = vpop.permute.xlu0 %4987  ;;  %v4995_v27 = vunpack.i.h.bf16 %v4993_v12  ;;  %v4994_v56 = vunpack.i.l.bf16 %v4993_v12 }
  0xa8   :  { %v9412_v26 = vunpack.i.h.bf16 %v6396_v15  ;;  %v9417_v20 = vunpack.i.l.bf16 %v6396_v15  ;;  %5282 = vrot.lane.b32.xlu1 %v5587_v10, %s5541_s17 }
  0xa9   :  { %4170 = vmatprep.subr.msk.bf16.mxu1 %vm6161_vm7, %v4168_v0  ;;  %5277 = vrot.lane.b32.xlu0 %v5623_v23, %s5541_s17  ;;  %v6419_v23 = vld [vmem:[%s9398_s1 + $0x70] sm:$0xff] }
  0xaa   :  { %v617_v48 = vsel %vm512_vm3, %v9417_v20, %v4969_v37  ;;  %v618_v17 = vsel %vm512_vm3, %v9412_v26, %v4970_v36  ;;  %4173 = vmatpush1.bf16.msk.msra.mxu1 %vm6187_vm9, %v4171_v33  ;;  %v5003_v10 = vpop.permute.xlu1 %5002  ;;  %v6424_v37 = vld [vmem:[%s9398_s1 + $0xa8] sm:$0xff] }
  0xab   :  { %v4123_v29 = vpack.c.bf16 %v618_v17, %v617_v48  ;;  %v4998_v45 = vpop.permute.xlu0 %4997  ;;  %v5301_v36 = vpack.i.bf16 %v6424_v37, %v6419_v23  ;;  %v5005_v31 = vunpack.i.h.bf16 %v5003_v10  ;;  %v5004_v28 = vunpack.i.l.bf16 %v5003_v10 }
  0xac   :  { %v5000_v3 = vunpack.i.h.bf16 %v4998_v45  ;;  %v4999_v62 = vunpack.i.l.bf16 %v4998_v45  ;;  %5292 = vrot.lane.b32.xlu1 %v5978_v25, %s5541_s17 }
  0xad   :  { %4125 = vmatpush1.bf16.msk.msra.mxu0 %vm6212_vm11, %v4123_v29  ;;  %5287 = vrot.lane.b32.xlu0 %v5644_v32, %s5541_s17 }
  0xae   :  { %v604_v8 = vsel %vm512_vm3, %v4995_v27, %v5000_v3  ;;  %v603_v0 = vsel %vm512_vm3, %v4994_v56, %v4999_v62  ;;  %v6438_v12 = vpop.permute.xlu1 %5012  ;;  %v588_v10 = vsel %vm512_vm3, %v5000_v3, %v5005_v31  ;;  %v587_v45 = vsel %vm512_vm3, %v4999_v62, %v5004_v28 }
  0xaf   :  { %v4126_v33 = vpack.c.bf16 %v604_v8, %v603_v0  ;;  %v9409_v48 = vunpack.i.h.bf16 %v6438_v12  ;;  %v9408_v25 = vunpack.i.l.bf16 %v6438_v12  ;;  %v6442_v17 = vpop.permute.xlu0 %5007 }
  0xb0   :  { %v9413_v32 = vunpack.i.h.bf16 %v6442_v17  ;;  %v9414_v29 = vunpack.i.l.bf16 %v6442_v17  ;;  %5302 = vrot.lane.b32.xlu1 %v5301_v36, %s5541_s17 }
  0xb1   :  { %v619_v8 = vsel %vm512_vm3, %v9408_v25, %v4994_v56  ;;  %v620_v0 = vsel %vm512_vm3, %v9409_v48, %v4995_v27  ;;  %4128 = vmatprep.subr.msk.bf16.mxu0 %vm6174_vm8, %v4126_v33  ;;  %5297 = vrot.lane.b32.xlu0 %v5660_v39, %s5541_s17  ;;  %v4177_v33 = vpack.c.bf16 %v588_v10, %v587_v45  ;;  %v6478_v39 = vld [vmem:[%s9398_s1 + $0xe0] sm:$0xff] }
  0xb2   :  { %v4129_v36 = vpack.c.bf16 %v620_v0, %v619_v8  ;;  %v572_v3 = vsel %vm512_vm3, %v5005_v31, %v9413_v32  ;;  %v571_v56 = vsel %vm512_vm3, %v5004_v28, %v9414_v29  ;;  %v5023_v62 = vpop.permute.xlu1 %5022  ;;  %v6483_v31 = vld [vmem:[%s9398_s1 + $0x118] sm:$0xff] }
  0xb3   :  { %v4174_v25 = vpack.c.bf16 %v572_v3, %v571_v56  ;;  %v5025_v27 = vunpack.i.h.bf16 %v5023_v62  ;;  %v5024_v48 = vunpack.i.l.bf16 %v5023_v62  ;;  %v5018_v60 = vpop.permute.xlu0 %5017  ;;  %v5321_v28 = vpack.i.bf16 %v6483_v31, %v6478_v39 }
  0xb4   :  { %v5020_v50 = vunpack.i.h.bf16 %v5018_v60  ;;  %v5019_v26 = vunpack.i.l.bf16 %v5018_v60  ;;  %4131 = vmatpush1.bf16.msk.msra.mxu0 %vm6212_vm11, %v4129_v36  ;;  %5312 = vrot.lane.b32.xlu1 %v6010_v47, %s5541_s17  ;;  %v5430_v47 = vld [vmem:[%s9398_s1 + $0x110] sm:$0xff]  ;;  %v5431_v60 = vld [vmem:[%s9398_s1 + $0x148] sm:$0xff] }
  0xb5   :  { %4176 = vmatprep.subr.msk.bf16.mxu1 %vm6161_vm7, %v4174_v25  ;;  %5307 = vrot.lane.b32.xlu0 %v5682_v46, %s5541_s17  ;;  %v5316_v10 = vpack.i.bf16 %v5431_v60, %v5430_v47 }
  0xb6   :  { %v606_v45 = vsel %vm512_vm3, %v5020_v50, %v5025_v27  ;;  %v605_v8 = vsel %vm512_vm3, %v5019_v26, %v5024_v48  ;;  %4179 = vmatpush1.bf16.msk.msra.mxu1 %vm6187_vm9, %v4177_v33  ;;  %v6503_v25 = vpop.permute.xlu1 %5032  ;;  %v6517_v33 = vld [vmem:[%s9398_s1 + $0x158] sm:$0xff] }
  0xb7   :  { %v4132_v46 = vpack.c.bf16 %v606_v45, %v605_v8  ;;  %v9416_v0 = vunpack.i.h.bf16 %v6503_v25  ;;  %v9415_v36 = vunpack.i.l.bf16 %v6503_v25  ;;  %v5028_v3 = vpop.permute.xlu0 %5027 }
  0xb8   :  { %v5030_v56 = vunpack.i.h.bf16 %v5028_v3  ;;  %v5029_v62 = vunpack.i.l.bf16 %v5028_v3  ;;  %5322 = vrot.lane.b32.xlu1 %v5321_v28, %s5541_s17  ;;  %v6522_v28 = vld [vmem:[%s9398_s1 + $0x190] sm:$0xff] }
  0xb9   :  { %4134 = vmatprep.subr.msk.bf16.mxu0 %vm6174_vm8, %v4132_v46  ;;  %5317 = vrot.lane.b32.xlu0 %v5316_v10, %s5541_s17  ;;  %v5326_v47 = vpack.i.bf16 %v6522_v28, %v6517_v33 }
  0xba   :  { %v574_v60 = vsel %vm512_vm3, %v5030_v56, %v9416_v0  ;;  %v590_v10 = vsel %vm512_vm3, %v5025_v27, %v5030_v56  ;;  %v573_v45 = vsel %vm512_vm3, %v5029_v62, %v9415_v36  ;;  %v589_v8 = vsel %vm512_vm3, %v5024_v48, %v5029_v62  ;;  %v6538_v46 = vpop.permute.xlu1 %5042  ;;  %v6552_v48 = vld [vmem:[%s9398_s1 + $0x150] sm:$0xff]  ;;  %v6557_v62 = vld [vmem:[%s9398_s1 + $0x188] sm:$0xff] }
  0xbb   :  { %v4180_v3 = vpack.c.bf16 %v574_v60, %v573_v45  ;;  %v4183_v32 = vpack.c.bf16 %v590_v10, %v589_v8  ;;  %v6540_v29 = vpop.permute.xlu0 %5037  ;;  %v5341_v60 = vpack.i.bf16 %v6557_v62, %v6552_v48  ;;  %v6576_v45 = vld [vmem:[%s9398_s1 + $0x180] sm:$0xff]  ;;  %v6581_v8 = vld [vmem:[%s9398_s1 + $0x1b8] sm:$0xff]  ;;  %v256_v0 = vadd.s32 28, %v5672_v43 }
  0xbc   :  { %v9421_v27 = vunpack.i.h.bf16 %v6540_v29  ;;  %v9422_v56 = vunpack.i.l.bf16 %v6540_v29  ;;  %5332 = vrot.lane.b32.xlu1 %v6034_v63, %s5541_s17  ;;  %v255_v63 = vadd.s32 28, %v5909_v49  ;;  %v5336_v36 = vpack.i.bf16 %v6581_v8, %v6576_v45 }
  0xbd   :  { %4182 = vmatprep.subr.msk.bf16.mxu1 %vm6161_vm7, %v4180_v3  ;;  %5327 = vrot.lane.b32.xlu0 %v5326_v47, %s5541_s17  ;;  %v5045_v58 = vunpack.i.h.bf16 %v6538_v46 }
  0xbe   :  { %v621_v47 = vsel %vm512_vm3, %v9422_v56, %v5019_v26  ;;  %v622_v3 = vsel %vm512_vm3, %v9421_v27, %v5020_v50  ;;  %4185 = vmatpush1.bf16.msk.msra.mxu1 %vm6187_vm9, %v4183_v32  ;;  %v5053_v20 = vpop.permute.xlu1 %5052  ;;  %v5044_v32 = vunpack.i.l.bf16 %v6538_v46  ;;  %v6626_v46 = vld [vmem:[%s9398_s1 + $0x200] sm:$0xff]  ;;  %v6671_v50 = vld [vmem:[%s9398_s1 + $0x1f0] sm:$0xff] }
  0xbf   :  { %v4135_v38 = vpack.c.bf16 %v622_v3, %v621_v47  ;;  %v5048_v26 = vpop.permute.xlu0 %5047  ;;  %v5055_v27 = vunpack.i.h.bf16 %v5053_v20  ;;  %v5054_v7 = vunpack.i.l.bf16 %v5053_v20  ;;  %v6615_v47 = vsel %vm248_vm4, %v255_v63, %v5909_v49  ;;  %v6621_v3 = vld [vmem:[%s9398_s1 + $0x1c8] sm:$0xff] }
  0xc0   :  { %v5050_v56 = vunpack.i.h.bf16 %v5048_v26  ;;  %v5049_v5 = vunpack.i.l.bf16 %v5048_v26  ;;  %5342 = vrot.lane.b32.xlu1 %v5341_v60, %s5541_s17  ;;  %9551 = vst [vmem:[#allocation6_spill] sm:$0xff] %v6615_v47  ;;  %v5346_v20 = vpack.i.bf16 %v6626_v46, %v6621_v3  ;;  %v6639_v60 = vsel %vm6565_vm2, %v256_v0, %v5672_v43  ;;  %v6658_v43 = vld [vmem:[%s9398_s1 + $0x1f8] sm:$0xff] }
  0xc1   :  { %4137 = vmatpush1.bf16.msk.msra.mxu0 %vm6212_vm11, %v4135_v38  ;;  %5337 = vrot.lane.b32.xlu0 %v5336_v36, %s5541_s17  ;;  %9552 = vst [vmem:[#allocation7_spill] sm:$0xff] %v6639_v60  ;;  %v6644_v63 = vsel %vm6606_vm5, %v254_v18, %v5914_v51  ;;  %v5361_v51 = vpack.i.bf16 %v6658_v43, %v6653_v35  ;;  %vm3824_vm6 = vcmp.ne.s32.totalorder %v6639_v60, 0 }
  0xc2   :  { %v608_v38 = vsel %vm512_vm3, %v5045_v58, %v5050_v56  ;;  %v607_v49 = vsel %vm512_vm3, %v5044_v32, %v5049_v5  ;;  %v6634_v36 = vpop.permute.xlu1 %5062  ;;  %9553 = vst [vmem:[#allocation8_spill] sm:$0xff] %v6644_v63  ;;  %v592_v18 = vsel %vm512_vm3, %v5050_v56, %v5055_v27  ;;  %vm3823_vm10 = vcmp.ne.s32.totalorder %v6644_v63, 0  ;;  %v7191_v63 = vld [vmem:[%s9398_s1 + $0x308] sm:$0xff] }
  0xc3   :  { %v4138_v26 = vpack.c.bf16 %v608_v38, %v607_v49  ;;  %v9432_v53 = vunpack.i.h.bf16 %v6634_v36  ;;  %v9431_v52 = vunpack.i.l.bf16 %v6634_v36  ;;  %v6648_v40 = vpop.permute.xlu0 %5057  ;;  %v6676_v38 = vld [vmem:[%s9398_s1 + $0x228] sm:$0xff]  ;;  %v591_v49 = vsel %vm512_vm3, %v5049_v5, %v5054_v7 }
  0xc4   :  { %v5060_v0 = vunpack.i.h.bf16 %v6648_v40  ;;  %v5059_v10 = vunpack.i.l.bf16 %v6648_v40  ;;  %5352 = vrot.lane.b32.xlu1 %v6058_v34, %s5541_s17  ;;  %v5356_v56 = vpack.i.bf16 %v6676_v38, %v6671_v50  ;;  %v7013_v40 = vld [vmem:[%s9399_s0 + $0x38] sm:$0xff] }
  0xc5   :  { %v623_v34 = vsel %vm512_vm3, %v9431_v52, %v5044_v32  ;;  %v624_v42 = vsel %vm512_vm3, %v9432_v53, %v5045_v58  ;;  %4140 = vmatprep.subr.msk.bf16.mxu0 %vm6174_vm8, %v4138_v26  ;;  %5347 = vrot.lane.b32.xlu0 %v5346_v20, %s5541_s17  ;;  %vm3822_vm8 = vcmp.ne.s32.totalorder %v6615_v47, 0  ;;  %v5396_v47 = vpack.i.bf16 %v7191_v63, %v7186_v11 }
  0xc6   :  { %v4141_v4 = vpack.c.bf16 %v624_v42, %v623_v34  ;;  %v576_v5 = vsel %vm512_vm3, %v5055_v27, %v5060_v0  ;;  %v575_v32 = vsel %vm512_vm3, %v5054_v7, %v5059_v10  ;;  %v5073_v52 = vpop.permute.xlu1 %5072  ;;  %v4189_v42 = vpack.c.bf16 %v592_v18, %v591_v49  ;;  %v6708_v27 = vld [vmem:[%s9399_s0] sm:$0xff] }
  0xc7   :  { %v4186_v58 = vpack.c.bf16 %v576_v5, %v575_v32  ;;  %v5075_v53 = vunpack.i.h.bf16 %v5073_v52  ;;  %v5074_v22 = vunpack.i.l.bf16 %v5073_v52  ;;  %v5068_v26 = vpop.permute.xlu0 %5067  ;;  %v9554_v52 = vunpack.i.l.bf16 %v6180_v24 }
  0xc8   :  { %v5070_v20 = vunpack.i.h.bf16 %v5068_v26  ;;  %v5069_v34 = vunpack.i.l.bf16 %v5068_v26  ;;  %4143 = vmatpush1.bf16.msk.msra.mxu0 %vm6212_vm11, %v4141_v4  ;;  %5362 = vrot.lane.b32.xlu1 %v5361_v51, %s5541_s17  ;;  %v9555_v18 = vunpack.i.h.bf16 %v6180_v24  ;;  %vm6725_vm11 = vmpackc.low %vm3824_vm6, %vm3824_vm6  ;;  %v9558_v24 = vunpack.i.h.bf16 %v6143_v13  ;;  %v5448_v4 = vld [vmem:[%s9398_s1 + $0x8] sm:$0xff] }
  0xc9   :  { %v513_v7 = vsel %vm512_vm3, %v5074_v22, %v9554_v52  ;;  %4188 = vmatprep.subr.msk.bf16.mxu1 %vm6161_vm7, %v4186_v58  ;;  %5357 = vrot.lane.b32.xlu0 %v5356_v56, %s5541_s17  ;;  %vm6743_vm7 = vmpackc.low %vm3822_vm8, %vm3822_vm8  ;;  %v7046_v56 = vld [vmem:[%s9399_s0 + $0x40] sm:$0xff] }
  0xca   :  { %v514_v57 = vsel %vm512_vm3, %v5075_v53, %v9555_v18  ;;  %v530_v49 = vsel %vm512_vm3, %v5070_v20, %v5075_v53  ;;  %v546_v5 = vsel %vm512_vm3, %v9558_v24, %v5070_v20  ;;  %v529_v59 = vsel %vm512_vm3, %v5069_v34, %v5074_v22  ;;  %4191 = vmatpush1.bf16.msk.msra.mxu1 %vm6187_vm9, %v4189_v42  ;;  %v5083_v32 = vpop.permute.xlu1 %5082  ;;  %vm6755_vm9 = vmpackc.low %vm3823_vm10, %vm3823_vm10 }
  0xcb   :  { %v4240_v51 = vpack.c.bf16 %v514_v57, %v513_v7  ;;  %v9561_v53 = vunpack.i.l.bf16 %v6143_v13  ;;  %v4192_v26 = vpack.c.bf16 %v530_v49, %v529_v59  ;;  %v5085_v20 = vunpack.i.h.bf16 %v5083_v32  ;;  %v5078_v22 = vpop.permute.xlu0 %5077  ;;  %818 = vmatmul.mubr.f32.vlgmr.msra.gmra.mrb[0].mxu0 %v6708_v27 }
  0xcc   :  { %v5084_v52 = vunpack.i.l.bf16 %v5083_v32  ;;  %v5080_v7 = vunpack.i.h.bf16 %v5078_v22  ;;  %v5079_v18 = vunpack.i.l.bf16 %v5078_v22  ;;  %v9564_v13 = vmov 0.0  }
  0xcd   :  { %v545_v58 = vsel %vm512_vm3, %v9561_v53, %v5069_v34  ;;  %4242 = vmatprep.subr.msk.bf16.mxu1 %vm6725_vm11, %v4240_v51  ;;  %823 = vmatprep.mubr.f32.mxu0 %v9564_v13  ;;  %v6765_v34 = vld [vmem:[%s9399_s0 + $0x8] sm:$0xff]  ;;  %v9565_v57 = vunpack.i.l.bf16 %v6226_v44  ;;  %v9566_v24 = vunpack.i.h.bf16 %v6226_v44 }
  0xce   :  { %v4195_v42 = vpack.c.bf16 %v546_v5, %v545_v58  ;;  %979 = vmatmul.mubr.f32.vlgmr.msra.gmra.mrb[0].mxu1 %v6708_v27  ;;  %4194 = vmatprep.subr.msk.bf16.mxu0 %vm6743_vm7, %v4192_v26  ;;  %v532_v32 = vsel %vm512_vm3, %v5080_v7, %v5085_v20  ;;  %v531_v53 = vsel %vm512_vm3, %v5079_v18, %v5084_v52  ;;  %v9567_v58 = vunpack.i.l.bf16 %v6230_v14  ;;  %v5093_v22 = vpop.permute.xlu1 %5092 }
  0xcf   :  { %v515_v49 = vsel %vm512_vm3, %v5084_v52, %v9565_v57  ;;  %v516_v5 = vsel %vm512_vm3, %v5085_v20, %v9566_v24  ;;  %v9568_v57 = vunpack.i.h.bf16 %v6230_v14  ;;  %4245 = vmatpush3.bf16.msk.msra.mxu1 %vm6725_vm11, %v4240_v51  ;;  %v5095_v20 = vunpack.i.h.bf16 %v5093_v22  ;;  %v5088_v24 = vpop.permute.xlu0 %5087  ;;  %824 = vmatmul.mubr.f32.gmra.mrb[2].mxu0 %v6765_v34 }
  0xd0   :  { %v4246_v59 = vpack.c.bf16 %v516_v5, %v515_v49  ;;  %v547_v44 = vsel %vm512_vm3, %v9567_v58, %v5079_v18  ;;  %4197 = vmatpush1.bf16.msk.msra.mxu0 %vm6755_vm9, %v4195_v42  ;;  %v4198_v49 = vpack.c.bf16 %v532_v32, %v531_v53  ;;  %v5094_v52 = vunpack.i.l.bf16 %v5093_v22  ;;  %984 = vmatprep.mubr.f32.mxu1 %v9564_v13  ;;  %v6812_v32 = vld [vmem:[%s9399_s0 + $0x10] sm:$0xff] }
  0xd1   :  { %v548_v26 = vsel %vm512_vm3, %v9568_v57, %v5080_v7  ;;  %v5090_v18 = vunpack.i.h.bf16 %v5088_v24  ;;  %v5089_v58 = vunpack.i.l.bf16 %v5088_v24  ;;  %v9569_v14 = vunpack.i.l.bf16 %v6296_v54  ;;  %829 = vmatprep.mubr.f32.mxu0 %v9564_v13 }
  0xd2   :  { %v4201_v5 = vpack.c.bf16 %v548_v26, %v547_v44  ;;  %4248 = vmatprep.subr.msk.bf16.mxu1 %vm6725_vm11, %v4246_v59  ;;  %v9570_v51 = vunpack.i.h.bf16 %v6296_v54  ;;  %985 = vmatmul.mubr.f32.gmra.mrb[2].mxu1 %v6765_v34  ;;  %v9571_v22 = vunpack.i.h.bf16 %v6274_v41  ;;  %v5103_v26 = vpop.permute.xlu1 %5102 }
  0xd3   :  { %v517_v42 = vsel %vm512_vm3, %v5094_v52, %v9569_v14  ;;  %4200 = vmatprep.subr.msk.bf16.mxu0 %vm6743_vm7, %v4198_v49  ;;  %v534_v44 = vsel %vm512_vm3, %v5090_v18, %v5095_v20  ;;  %v533_v57 = vsel %vm512_vm3, %v5089_v58, %v5094_v52  ;;  %v9572_v49 = vunpack.i.l.bf16 %v6274_v41  ;;  %4251 = vmatpush3.bf16.msk.msra.mxu1 %vm6725_vm11, %v4246_v59 }
  0xd4   :  { %v518_v7 = vsel %vm512_vm3, %v5095_v20, %v9570_v51  ;;  %v550_v54 = vsel %vm512_vm3, %v9571_v22, %v5090_v18  ;;  %4203 = vmatpush1.bf16.msk.msra.mxu0 %vm6755_vm9, %v4201_v5  ;;  %v4204_v14 = vpack.c.bf16 %v534_v44, %v533_v57  ;;  %v5105_v20 = vunpack.i.h.bf16 %v5103_v26  ;;  %v5098_v51 = vpop.permute.xlu0 %5097  ;;  %990 = vmatprep.mubr.f32.mxu1 %v9564_v13 }
  0xd5   :  { %v4252_v53 = vpack.c.bf16 %v518_v7, %v517_v42  ;;  %v549_v24 = vsel %vm512_vm3, %v9572_v49, %v5089_v58  ;;  %v5104_v42 = vunpack.i.l.bf16 %v5103_v26  ;;  %v5100_v52 = vunpack.i.h.bf16 %v5098_v51  ;;  %830 = vmatmul.mubr.f32.gmra.mrb[4].mxu0 %v6812_v32  ;;  %v6857_v49 = vld [vmem:[%s9399_s0 + $0x18] sm:$0xff] }
  0xd6   :  { %v4207_v18 = vpack.c.bf16 %v550_v54, %v549_v24  ;;  %v5099_v7 = vunpack.i.l.bf16 %v5098_v51  ;;  %v9573_v41 = vunpack.i.l.bf16 %v6326_v55  ;;  %v9574_v58 = vunpack.i.h.bf16 %v6326_v55  ;;  %991 = vmatmul.mubr.f32.gmra.mrb[4].mxu1 %v6812_v32  ;;  %4206 = vmatprep.subr.msk.bf16.mxu0 %vm6743_vm7, %v4204_v14  ;;  %v5113_v26 = vpop.permute.xlu1 %5112 }
  0xd7   :  { %v536_v22 = vsel %vm512_vm3, %v5100_v52, %v5105_v20  ;;  %v9575_v57 = vunpack.i.l.bf16 %v6330_v6  ;;  %4254 = vmatprep.subr.msk.bf16.mxu1 %vm6725_vm11, %v4252_v53  ;;  %v9576_v24 = vunpack.i.h.bf16 %v6330_v6  ;;  %v5114_v51 = vunpack.i.l.bf16 %v5113_v26  ;;  %835 = vmatprep.mubr.f32.mxu0 %v9564_v13 }
  0xd8   :  { %v519_v5 = vsel %vm512_vm3, %v5104_v42, %v9573_v41  ;;  %v520_v59 = vsel %vm512_vm3, %v5105_v20, %v9574_v58  ;;  %v535_v54 = vsel %vm512_vm3, %v5099_v7, %v5104_v42  ;;  %4209 = vmatpush1.bf16.msk.msra.mxu0 %vm6755_vm9, %v4207_v18  ;;  %4257 = vmatpush3.bf16.msk.msra.mxu1 %vm6725_vm11, %v4252_v53  ;;  %v5115_v42 = vunpack.i.h.bf16 %v5113_v26  ;;  %v6892_v26 = vld [vmem:[%s9399_s0 + $0x20] sm:$0xff] }
  0xd9   :  { %v4258_v44 = vpack.c.bf16 %v520_v59, %v519_v5  ;;  %v551_v55 = vsel %vm512_vm3, %v9575_v57, %v5099_v7  ;;  %v552_v14 = vsel %vm512_vm3, %v9576_v24, %v5100_v52  ;;  %v4210_v20 = vpack.c.bf16 %v536_v22, %v535_v54  ;;  %v5108_v7 = vpop.permute.xlu0 %5107  ;;  %996 = vmatprep.mubr.f32.mxu1 %v9564_v13 }
  0xda   :  { %v4213_v41 = vpack.c.bf16 %v552_v14, %v551_v55  ;;  %v5110_v5 = vunpack.i.h.bf16 %v5108_v7  ;;  %v5109_v58 = vunpack.i.l.bf16 %v5108_v7  ;;  %v9577_v6 = vunpack.i.l.bf16 %v6396_v15  ;;  %836 = vmatmul.mubr.f32.gmra.mrb[6].mxu0 %v6857_v49  ;;  %997 = vmatmul.mubr.f32.gmra.mrb[6].mxu1 %v6857_v49 }
  0xdb   :  { %v9578_v18 = vunpack.i.h.bf16 %v6396_v15  ;;  %v9579_v54 = vunpack.i.h.bf16 %v6374_v61  ;;  %4212 = vmatprep.subr.msk.bf16.mxu0 %vm6743_vm7, %v4210_v20  ;;  %v5123_v15 = vpop.permute.xlu1 %5122  ;;  %v9580_v24 = vunpack.i.l.bf16 %v6374_v61  ;;  %4260 = vmatprep.subr.msk.bf16.mxu1 %vm6725_vm11, %v4258_v44  ;;  %v9581_v61 = vunpack.i.l.bf16 %v6438_v12 }
  0xdc   :  { %v521_v52 = vsel %vm512_vm3, %v5114_v51, %v9577_v6  ;;  %v538_v22 = vsel %vm512_vm3, %v5110_v5, %v5115_v42  ;;  %v537_v55 = vsel %vm512_vm3, %v5109_v58, %v5114_v51  ;;  %4215 = vmatpush1.bf16.msk.msra.mxu0 %vm6755_vm9, %v4213_v41  ;;  %v5125_v51 = vunpack.i.h.bf16 %v5123_v15  ;;  %4263 = vmatpush3.bf16.msk.msra.mxu1 %vm6725_vm11, %v4258_v44 }
  0xdd   :  { %v522_v53 = vsel %vm512_vm3, %v5115_v42, %v9578_v18  ;;  %v554_v57 = vsel %vm512_vm3, %v9579_v54, %v5110_v5  ;;  %v553_v14 = vsel %vm512_vm3, %v9580_v24, %v5109_v58  ;;  %v4216_v42 = vpack.c.bf16 %v538_v22, %v537_v55  ;;  %v5118_v7 = vpop.permute.xlu0 %5117  ;;  %841 = vmatprep.mubr.f32.mxu0 %v9564_v13 }
  0xde   :  { %v4264_v59 = vpack.c.bf16 %v522_v53, %v521_v52  ;;  %v5124_v20 = vunpack.i.l.bf16 %v5123_v15  ;;  %v4219_v5 = vpack.c.bf16 %v554_v57, %v553_v14  ;;  %v5120_v6 = vunpack.i.h.bf16 %v5118_v7  ;;  %842 = vmatmul.mubr.f32.gmra.mrb[8].mxu0 %v6892_v26  ;;  %1002 = vmatprep.mubr.f32.mxu1 %v9564_v13 }
  0xdf   :  { %v5119_v52 = vunpack.i.l.bf16 %v5118_v7  ;;  %v9582_v18 = vunpack.i.h.bf16 %v6438_v12  ;;  %v9583_v22 = vunpack.i.l.bf16 %v6442_v17  ;;  %1003 = vmatmul.mubr.f32.gmra.mrb[8].mxu1 %v6892_v26  ;;  %v5133_v12 = vpop.permute.xlu1 %5132  ;;  %v9584_v57 = vunpack.i.h.bf16 %v6442_v17  ;;  %4218 = vmatprep.subr.msk.bf16.mxu0 %vm6743_vm7, %v4216_v42 }
  0xe0   :  { %v523_v58 = vsel %vm512_vm3, %v5124_v20, %v9581_v61  ;;  %v540_v44 = vsel %vm512_vm3, %v5120_v6, %v5125_v51  ;;  %4266 = vmatprep.subr.msk.bf16.mxu1 %vm6725_vm11, %v4264_v59  ;;  %v5135_v24 = vunpack.i.h.bf16 %v5133_v12  ;;  %v5134_v14 = vunpack.i.l.bf16 %v5133_v12  ;;  %4221 = vmatpush1.bf16.msk.msra.mxu0 %vm6755_vm9, %v4219_v5 }
  0xe1   :  { %v524_v41 = vsel %vm512_vm3, %v5125_v51, %v9582_v18  ;;  %v539_v53 = vsel %vm512_vm3, %v5119_v52, %v5124_v20  ;;  %v555_v54 = vsel %vm512_vm3, %v9583_v22, %v5119_v52  ;;  %v556_v55 = vsel %vm512_vm3, %v9584_v57, %v5120_v6  ;;  %v5128_v51 = vpop.permute.xlu0 %5127  ;;  %v6935_v20 = vld [vmem:[%s9399_s0 + $0x28] sm:$0xff]  ;;  %4269 = vmatpush3.bf16.msk.msra.mxu1 %vm6725_vm11, %v4264_v59 }
  0xe2   :  { %v4222_v15 = vpack.c.bf16 %v540_v44, %v539_v53  ;;  %v4270_v7 = vpack.c.bf16 %v524_v41, %v523_v58  ;;  %v4225_v17 = vpack.c.bf16 %v556_v55, %v555_v54  ;;  %v5130_v42 = vunpack.i.h.bf16 %v5128_v51  ;;  %847 = vmatprep.mubr.f32.mxu0 %v9564_v13  ;;  %1008 = vmatprep.mubr.f32.mxu1 %v9564_v13 }
  0xe3   :  { %v5129_v6 = vunpack.i.l.bf16 %v5128_v51  ;;  %v9585_v52 = vunpack.i.l.bf16 %v6540_v29  ;;  %v9586_v18 = vunpack.i.h.bf16 %v6540_v29  ;;  %v9587_v59 = vunpack.i.h.bf16 %v6503_v25  ;;  %848 = vmatmul.mubr.f32.gmra.mrb[10].mxu0 %v6935_v20  ;;  %v5143_v29 = vpop.permute.xlu1 %5142  ;;  %1009 = vmatmul.mubr.f32.gmra.mrb[10].mxu1 %v6935_v20 }
  0xe4   :  { %v542_v5 = vsel %vm512_vm3, %v5130_v42, %v5135_v24  ;;  %v9588_v53 = vunpack.i.l.bf16 %v6503_v25  ;;  %4224 = vmatprep.subr.msk.bf16.mxu0 %vm6743_vm7, %v4222_v15  ;;  %v5145_v12 = vunpack.i.h.bf16 %v5143_v29  ;;  %v5144_v57 = vunpack.i.l.bf16 %v5143_v29  ;;  %4272 = vmatprep.subr.msk.bf16.mxu1 %vm6725_vm11, %v4270_v7  ;;  %v7034_v29 = vld [vmem:[%s9398_s1 + $0x290] sm:$0xff] }
  0xe5   :  { %v525_v61 = vsel %vm512_vm3, %v5134_v14, %v9585_v52  ;;  %v526_v44 = vsel %vm512_vm3, %v5135_v24, %v9586_v18  ;;  %v558_v58 = vsel %vm512_vm3, %v9587_v59, %v5130_v42  ;;  %v541_v41 = vsel %vm512_vm3, %v5129_v6, %v5134_v14  ;;  %v5138_v55 = vpop.permute.xlu0 %5137  ;;  %v6970_v24 = vld [vmem:[%s9399_s0 + $0x30] sm:$0xff]  ;;  %4227 = vmatpush1.bf16.msk.msra.mxu0 %vm6755_vm9, %v4225_v17 }
  0xe6   :  { %v557_v22 = vsel %vm512_vm3, %v9588_v53, %v5129_v6  ;;  %v4228_v54 = vpack.c.bf16 %v542_v5, %v541_v41  ;;  %v4276_v14 = vpack.c.bf16 %v526_v44, %v525_v61  ;;  %v5140_v25 = vunpack.i.h.bf16 %v5138_v55  ;;  %4275 = vmatpush3.bf16.msk.msra.mxu1 %vm6725_vm11, %v4270_v7  ;;  %853 = vmatprep.mubr.f32.mxu0 %v9564_v13  ;;  %v7029_v41 = vld [vmem:[%s9398_s1 + $0x258] sm:$0xff] }
  0xe7   :  { %v5139_v51 = vunpack.i.l.bf16 %v5138_v55  ;;  %v4231_v42 = vpack.c.bf16 %v558_v58, %v557_v22  ;;  %v9589_v15 = vunpack.i.l.bf16 %v6634_v36  ;;  %v9590_v52 = vunpack.i.h.bf16 %v6634_v36  ;;  %854 = vmatmul.mubr.f32.gmra.mrb[12].mxu0 %v6970_v24  ;;  %v6996_v44 = vpop.permute.xlu1 %5152  ;;  %1014 = vmatprep.mubr.f32.mxu1 %v9564_v13  ;;  %9592 = vst [vmem:[#allocation10_spill] sm:$0xff] %v7029_v41  ;;  %9593 = vst [vmem:[#allocation11_spill] sm:$0xff] %v7034_v29 }
  0xe8   :  { %v544_v17 = vsel %vm512_vm3, %v5140_v25, %v5145_v12  ;;  %v560_v36 = vsel %vm512_vm3, %v5060_v0, %v5140_v25  ;;  %4230 = vmatprep.subr.msk.bf16.mxu0 %vm6743_vm7, %v4228_v54  ;;  %1015 = vmatmul.mubr.f32.gmra.mrb[12].mxu1 %v6970_v24  ;;  %v5371_v53 = vpack.i.bf16 %v7034_v29, %v7029_v41  ;;  %v7055_v54 = vld [vmem:[%s9398_s1 + $0x238] sm:$0xff]  ;;  %v5451_v25 = vld [vmem:[%s9398_s1 + $0x50] sm:$0xff] }
  0xe9   :  { %v527_v6 = vsel %vm512_vm3, %v5144_v57, %v9589_v15  ;;  %v528_v61 = vsel %vm512_vm3, %v5145_v12, %v9590_v52  ;;  %v543_v18 = vsel %vm512_vm3, %v5139_v51, %v5144_v57  ;;  %v559_v7 = vsel %vm512_vm3, %v5059_v10, %v5139_v51  ;;  %v7005_v59 = vpop.permute.xlu0 %5147  ;;  %4278 = vmatprep.subr.msk.bf16.mxu1 %vm6725_vm11, %v4276_v14  ;;  %v7060_v12 = vld [vmem:[%s9398_s1 + $0x270] sm:$0xff] }
  0xea   :  { %v4234_v5 = vpack.c.bf16 %v544_v17, %v543_v18  ;;  %v4282_v58 = vpack.c.bf16 %v528_v61, %v527_v6  ;;  %v4237_v0 = vpack.c.bf16 %v560_v36, %v559_v7  ;;  %4233 = vmatpush1.bf16.msk.msra.mxu0 %vm6755_vm9, %v4231_v42  ;;  %4281 = vmatpush3.bf16.msk.msra.mxu1 %vm6725_vm11, %v4276_v14  ;;  %v5450_v14 = vld [vmem:[%s9398_s1 + $0x18] sm:$0xff]  ;;  %v7085_v15 = vld [vmem:[%s9398_s1 + $0x230] sm:$0xff]  ;;  %v7090_v6 = vld [vmem:[%s9398_s1 + $0x268] sm:$0xff]  ;;  %vm2240_vm3 = vcmp.lt.s32.totalorder %v5585_v9, 127 }
  0xeb   :  { %859 = vmatprep.mubr.f32.mxu0 %v9564_v13  ;;  %1020 = vmatprep.mubr.f32.mxu1 %v9564_v13  ;;  %v7021_v10 = vpop.permute.xlu1 %5162  ;;  %v5366_v57 = vpack.i.bf16 %v7060_v12, %v7055_v54  ;;  %v4288_v55 = vpack.c.bf16 %v5449_v19, %v5448_v4  ;;  %v4320_v51 = vpack.c.bf16 %v5451_v25, %v5450_v14  ;;  %v7101_v17 = vld [vmem:[%s9399_s0 + $0x48] sm:$0xff]  ;;  %v7108_v18 = vld [vmem:[%s9398_s1 + $0x260] sm:$0xff]  ;;  %v7113_v7 = vld [vmem:[%s9398_s1 + $0x298] sm:$0xff] }
  0xec   :  { %9591 = vst [vmem:[#allocation9_spill] sm:$0xff] %v7021_v10  ;;  %860 = vmatmul.mubr.f32.gmra.mrb[14].mxu0 %v7013_v40  ;;  %4236 = vmatprep.subr.msk.bf16.mxu0 %vm6743_vm7, %v4234_v5  ;;  %v5381_v52 = vpack.i.bf16 %v7090_v6, %v7085_v15  ;;  %v5376_v36 = vpack.i.bf16 %v7113_v7, %v7108_v18  ;;  %v7140_v4 = vld [vmem:[%s9399_s0 + $0x50] sm:$0xff]  ;;  %v7147_v19 = vld [vmem:[%s9398_s1 + $0x2a8] sm:$0xff] }
  0xed   :  { %v7038_v22 = vpop.permute.xlu0 %5157  ;;  %1021 = vmatmul.mubr.f32.gmra.mrb[14].mxu1 %v7013_v40  ;;  %4284 = vmatprep.subr.msk.bf16.mxu1 %vm6725_vm11, %v4282_v58 }
  0xee   :  { %9594 = vst [vmem:[#allocation12_spill] sm:$0xff] %v7038_v22  ;;  %4239 = vmatpush1.bf16.msk.msra.mxu0 %vm6755_vm9, %v4237_v0  ;;  %4287 = vmatpush3.bf16.msk.msra.mxu1 %vm6725_vm11, %v4282_v58  ;;  %v7124_v58 = vld [vmem:[%s9398_s1 + $0x2c8] sm:$0xff]  ;;  %v7129_v0 = vld [vmem:[%s9398_s1 + $0x300] sm:$0xff]  ;;  %v7284_v22 = vld [vmem:[%s9399_s0 + $0x70] sm:$0xff] }
  0xef   :  { %865 = vmatprep.mubr.f32.mxu0 %v9564_v13  ;;  %1026 = vmatprep.mubr.f32.mxu1 %v9564_v13  ;;  %v7078_v42 = vpop.permute.xlu1 %5172  ;;  %9598 = vst [vmem:[#allocation16_spill] sm:$0xff] %v7124_v58  ;;  %9599 = vst [vmem:[#allocation17_spill] sm:$0xff] %v7129_v0 }
  0xf0   :  { %9595 = vst [vmem:[#allocation13_spill] sm:$0xff] %v7078_v42  ;;  %866 = vmatmul.mubr.f32.gmra.mrb[16].mxu0 %v7046_v56  ;;  %5372 = vrot.lane.b32.xlu1 %v5371_v53, %s5541_s17  ;;  %v5391_v53 = vpack.i.bf16 %v7129_v0, %v7124_v58 }
  0xf1   :  { %v7094_v61 = vpop.permute.xlu0 %5167  ;;  %1027 = vmatmul.mubr.f32.gmra.mrb[16].mxu1 %v7046_v56  ;;  %871 = vmatprep.mubr.f32.mxu0 %v9564_v13 }
  0xf2   :  { %9596 = vst [vmem:[#allocation14_spill] sm:$0xff] %v7094_v61  ;;  %1032 = vmatprep.mubr.f32.mxu1 %v9564_v13  ;;  %5367 = vrot.lane.b32.xlu0 %v5366_v57, %s5541_s17 }
  0xf3   :  { %4289 = vmatprep.subr.bf16.mxu0 %v4288_v55  ;;  %4321 = vmatprep.subr.bf16.mxu1 %v4320_v51  ;;  %v7117_v5 = vpop.permute.xlu1 %5182  ;;  %v7152_v55 = vld [vmem:[%s9398_s1 + $0x2e0] sm:$0xff] }
  0xf4   :  { %9597 = vst [vmem:[#allocation15_spill] sm:$0xff] %v7117_v5  ;;  %872 = vmatmul.mubr.f32.gmra.mrb[18].mxu0 %v7101_v17  ;;  %5382 = vrot.lane.b32.xlu1 %v5381_v52, %s5541_s17  ;;  %v5386_v14 = vpack.i.bf16 %v7152_v55, %v7147_v19  ;;  %v7163_v51 = vld [vmem:[%s9398_s1 + $0x2a0] sm:$0xff]  ;;  %v7168_v52 = vld [vmem:[%s9398_s1 + $0x2d8] sm:$0xff] }
  0xf5   :  { %v7133_v57 = vpop.permute.xlu0 %5177  ;;  %1033 = vmatmul.mubr.f32.gmra.mrb[18].mxu1 %v7101_v17  ;;  %877 = vmatprep.mubr.f32.mxu0 %v9564_v13 }
  0xf6   :  { %9600 = vst [vmem:[#allocation18_spill] sm:$0xff] %v7133_v57  ;;  %1038 = vmatprep.mubr.f32.mxu1 %v9564_v13  ;;  %5377 = vrot.lane.b32.xlu0 %v5376_v36, %s5541_s17  ;;  %v5401_v36 = vpack.i.bf16 %v7168_v52, %v7163_v51 }
  0xf7   :  { %v7156_v25 = vpop.permute.xlu1 %5192 }
  0xf8   :  { %9601 = vst [vmem:[#allocation19_spill] sm:$0xff] %v7156_v25  ;;  %878 = vmatmul.mubr.f32.gmra.mrb[20].mxu0 %v7140_v4  ;;  %5392 = vrot.lane.b32.xlu1 %v5391_v53, %s5541_s17  ;;  %v7179_v53 = vld [vmem:[%s9399_s0 + $0x58] sm:$0xff] }
  0xf9   :  { %v7172_v60 = vpop.permute.xlu0 %5187  ;;  %1039 = vmatmul.mubr.f32.gmra.mrb[20].mxu1 %v7140_v4  ;;  %883 = vmatprep.mubr.f32.mxu0 %v9564_v13 }
  0xfa   :  { %9602 = vst [vmem:[#allocation20_spill] sm:$0xff] %v7172_v60  ;;  %1044 = vmatprep.mubr.f32.mxu1 %v9564_v13  ;;  %5387 = vrot.lane.b32.xlu0 %v5386_v14, %s5541_s17  ;;  %v7202_v14 = vld [vmem:[%s9398_s1 + $0x338] sm:$0xff]  ;;  %v7207_v60 = vld [vmem:[%s9398_s1 + $0x370] sm:$0xff] }
  0xfb   :  { %v7195_v25 = vpop.permute.xlu1 %5202  ;;  %9604 = vst [vmem:[#allocation22_spill] sm:$0xff] %v7202_v14  ;;  %9605 = vst [vmem:[#allocation23_spill] sm:$0xff] %v7207_v60  ;;  %v5411_v57 = vpack.i.bf16 %v7207_v60, %v7202_v14 }
  0xfc   :  { %9603 = vst [vmem:[#allocation21_spill] sm:$0xff] %v7195_v25  ;;  %884 = vmatmul.mubr.f32.gmra.mrb[22].mxu0 %v7179_v53  ;;  %5402 = vrot.lane.b32.xlu1 %v5401_v36, %s5541_s17  ;;  %v7218_v36 = vld [vmem:[%s9399_s0 + $0x60] sm:$0xff]  ;;  %v7225_v25 = vld [vmem:[%s9398_s1 + $0x318] sm:$0xff] }
  0xfd   :  { %v7211_v5 = vpop.permute.xlu0 %5197  ;;  %1045 = vmatmul.mubr.f32.gmra.mrb[22].mxu1 %v7179_v53  ;;  %889 = vmatprep.mubr.f32.mxu0 %v9564_v13 }
  0xfe   :  { %9606 = vst [vmem:[#allocation24_spill] sm:$0xff] %v7211_v5  ;;  %1050 = vmatprep.mubr.f32.mxu1 %v9564_v13  ;;  %5397 = vrot.lane.b32.xlu0 %v5396_v47, %s5541_s17  ;;  %v7230_v5 = vld [vmem:[%s9398_s1 + $0x350] sm:$0xff] }
  0xff   :  { %v5406_v30 = vpack.i.bf16 %v7230_v5, %v7225_v25  ;;  %v7234_v61 = vpop.permute.xlu1 %5212  ;;  %v7241_v47 = vld [vmem:[%s9398_s1 + $0x310] sm:$0xff] }
 0x100   :  { %9607 = vst [vmem:[#allocation25_spill] sm:$0xff] %v7234_v61  ;;  %890 = vmatmul.mubr.f32.gmra.mrb[24].mxu0 %v7218_v36  ;;  %5412 = vrot.lane.b32.xlu1 %v5411_v57, %s5541_s17  ;;  %v5421_v42 = vpack.i.bf16 %v7246_v16, %v7241_v47  ;;  %v7257_v57 = vld [vmem:[%s9399_s0 + $0x68] sm:$0xff]  ;;  %v7264_v61 = vld [vmem:[%s9398_s1 + $0x340] sm:$0xff] }
 0x101   :  { %v7250_v60 = vpop.permute.xlu0 %5207  ;;  %1051 = vmatmul.mubr.f32.gmra.mrb[24].mxu1 %v7218_v36  ;;  %895 = vmatprep.mubr.f32.mxu0 %v9564_v13 }
 0x102   :  { %9608 = vst [vmem:[#allocation26_spill] sm:$0xff] %v7250_v60  ;;  %1056 = vmatprep.mubr.f32.mxu1 %v9564_v13  ;;  %5407 = vrot.lane.b32.xlu0 %v5406_v30, %s5541_s17  ;;  %v7269_v60 = vld [vmem:[%s9398_s1 + $0x378] sm:$0xff] }
 0x103   :  { %9609 = vst [vmem:[#allocation27_spill] sm:$0xff] %v7269_v60  ;;  %v5416_v14 = vpack.i.bf16 %v7269_v60, %v7264_v61  ;;  %v7273_v10 = vpop.permute.xlu1 %5222 }
 0x104   :  { %9610 = vst [vmem:[#allocation28_spill] sm:$0xff] %v7273_v10  ;;  %896 = vmatmul.mubr.f32.gmra.mrb[26].mxu0 %v7257_v57  ;;  %5422 = vrot.lane.b32.xlu1 %v5421_v42, %s5541_s17 }
 0x105   :  { %v7277_v30 = vpop.permute.xlu0 %5217  ;;  %1057 = vmatmul.mubr.f32.gmra.mrb[26].mxu1 %v7257_v57  ;;  %901 = vmatprep.mubr.f32.mxu0 %v9564_v13 }
 0x106   :  { %9611 = vst [vmem:[#allocation29_spill] sm:$0xff] %v7277_v30  ;;  %1062 = vmatprep.mubr.f32.mxu1 %v9564_v13  ;;  %5417 = vrot.lane.b32.xlu0 %v5416_v14, %s5541_s17  ;;  %v7298_v30 = vld [vmem:[%s9399_s0 + $0x78] sm:$0xff] }
 0x107   :  { %v7288_v10 = vpop.permute.xlu1 %5232 }
 0x108   :  { %9612 = vst [vmem:[#allocation30_spill] sm:$0xff] %v7288_v10  ;;  %902 = vmatmul.mubr.f32.gmra.mrb[28].mxu0 %v7284_v22  ;;  %v5472_v10 = vld [vmem:[%s9398_s1] sm:$0xff] }
 0x109   :  { %v7291_v42 = vpop.permute.xlu0 %5227  ;;  %1063 = vmatmul.mubr.f32.gmra.mrb[28].mxu1 %v7284_v22  ;;  %907 = vmatprep.mubr.f32.mxu0 %v9564_v13 }
 0x10a   :  { %9613 = vst [vmem:[#allocation31_spill] sm:$0xff] %v7291_v42  ;;  %1068 = vmatprep.mubr.f32.mxu1 %v9564_v13  ;;  %v5473_v42 = vld [vmem:[%s9398_s1 + $0x38] sm:$0xff] }
 0x10b   :  { %v7301_v0 = vpop.permute.xlu1 %5242  ;;  %v4290_v58 = vpack.c.bf16 %v5473_v42, %v5472_v10  ;;  %v5476_v10 = vld [vmem:[%s9398_s1 + $0x78] sm:$0xff]  ;;  %v5477_v42 = vld [vmem:[%s9398_s1 + $0xb0] sm:$0xff] }
 0x10c   :  { %9614 = vst [vmem:[#allocation32_spill] sm:$0xff] %v7301_v0  ;;  %908 = vmatmul.mubr.f32.gmra.mrb[30].mxu0 %v7298_v30  ;;  %v5474_v0 = vld [vmem:[%s9398_s1 + $0x88] sm:$0xff]  ;;  %v4292_v21 = vpack.c.bf16 %v5477_v42, %v5476_v10  ;;  %v4294_v42 = vpack.c.bf16 %v6424_v37, %v6419_v23 }
 0x10d   :  { %v7304_v14 = vpop.permute.xlu0 %5237  ;;  %1069 = vmatmul.mubr.f32.gmra.mrb[30].mxu1 %v7298_v30  ;;  %1139 = vmatprep.mubr.f32.mxu0 %v9564_v13  ;;  %v5485_v23 = vld [vmem:[%s9398_s1 + $0x128] sm:$0xff] }
 0x10e   :  { %9615 = vst [vmem:[#allocation33_spill] sm:$0xff] %v7304_v14  ;;  %3960 = vmatprep.mubr.f32.mxu1 %v6708_v27  ;;  %v5475_v14 = vld [vmem:[%s9398_s1 + $0xc0] sm:$0xff] }
 0x10f   :  { %v4324_v29 = vpack.c.bf16 %v5475_v14, %v5474_v0  ;;  %v7321_v41 = vpop.permute.xlu1 %5252  ;;  %v9617_v0 = vpack.c.bf16 %v5565_v2, %v5560_v1  ;;  %v5479_v14 = vld [vmem:[%s9398_s1 + $0xb8] sm:$0xff]  ;;  %v5481_v1 = vld [vmem:[%s9398_s1 + $0x130] sm:$0xff] }
 0x110   :  { %1140 = vmatmul.mubr.f32.vlgmr.msra.gmra.mrb[32].mxu0 %v6708_v27  ;;  %v5478_v27 = vld [vmem:[%s9398_s1 + $0x80] sm:$0xff] }
 0x111   :  { %v7330_v60 = vpop.permute.xlu0 %5247  ;;  %3961 = vmatmul.mubr.f32.vlgmr.msra.gmra.mrb[32].mxu1 %v6765_v34  ;;  %4291 = vmatpush1.bf16.msra.mxu0 %v4290_v58  ;;  %v4326_v10 = vpack.c.bf16 %v5479_v14, %v5478_v27  ;;  %v5480_v58 = vld [vmem:[%s9398_s1 + $0xf8] sm:$0xff]  ;;  %v5483_v27 = vld [vmem:[%s9398_s1 + $0x120] sm:$0xff] }
 0x112   :  { %9616 = vst [vmem:[#allocation34_spill] sm:$0xff] %v7330_v60  ;;  %4323 = vmatpush1.bf16.msra.mxu1 %v9617_v0  ;;  %1145 = vmatprep.mubr.f32.mxu0 %v9564_v13  ;;  %v4328_v2 = vpack.c.bf16 %v5481_v1, %v5480_v58  ;;  %v5154_v58 = vunpack.i.l.bf16 %v6996_v44  ;;  %v5487_v1 = vld [vmem:[%s9398_s1 + $0x1a0] sm:$0xff] }
 0x113   :  { %3963 = vmatprep.mubr.f32.mxu1 %v6812_v32  ;;  %4325 = vmatprep.subr.bf16.mxu1 %v4324_v29  ;;  %v7352_v0 = vpop.permute.xlu1 %5262  ;;  %v5482_v29 = vld [vmem:[%s9398_s1 + $0xe8] sm:$0xff] }
 0x114   :  { %1146 = vmatmul.mubr.f32.gmra.mrb[34].mxu0 %v6765_v34  ;;  %4293 = vmatprep.subr.bf16.mxu0 %v4292_v21  ;;  %v4296_v14 = vpack.c.bf16 %v5483_v27, %v5482_v29  ;;  %v5484_v21 = vld [vmem:[%s9398_s1 + $0xf0] sm:$0xff]  ;;  %v4298_v27 = vpack.c.bf16 %v6483_v31, %v6478_v39  ;;  %v5488_v39 = vld [vmem:[%s9398_s1 + $0x160] sm:$0xff]  ;;  %v5489_v31 = vld [vmem:[%s9398_s1 + $0x198] sm:$0xff] }
 0x115   :  { %v7361_v60 = vpop.permute.xlu0 %5257  ;;  %3964 = vmatmul.mubr.f32.gmra.mrb[34].mxu1 %v6857_v49  ;;  %1151 = vmatprep.mubr.f32.mxu0 %v9564_v13  ;;  %v4330_v37 = vpack.c.bf16 %v5485_v23, %v5484_v21 }
 0x116   :  { %4327 = vmatpush1.bf16.msra.mxu1 %v4326_v10  ;;  %3966 = vmatprep.mubr.f32.mxu1 %v6892_v26  ;;  %v5486_v10 = vld [vmem:[%s9398_s1 + $0x168] sm:$0xff] }
 0x117   :  { %4329 = vmatprep.subr.bf16.mxu1 %v4328_v2  ;;  %4295 = vmatpush1.bf16.msra.mxu0 %v4294_v42  ;;  %v4332_v29 = vpack.c.bf16 %v5487_v1, %v5486_v10  ;;  %v7383_v21 = vpop.permute.xlu1 %5272  ;;  %v4300_v2 = vpack.c.bf16 %v6522_v28, %v6517_v33  ;;  %v4334_v33 = vpack.c.bf16 %v5489_v31, %v5488_v39  ;;  %v5491_v10 = vld [vmem:[%s9398_s1 + $0x210] sm:$0xff] }
 0x118   :  { %1152 = vmatmul.mubr.f32.gmra.mrb[36].mxu0 %v6812_v32  ;;  %4297 = vmatprep.subr.bf16.mxu0 %v4296_v14  ;;  %v9488_v42 = vunpack.i.h.bf16 %v7383_v21  ;;  %v9471_v23 = vunpack.i.l.bf16 %v7383_v21  ;;  %v9618_v32 = vunpack.i.h.bf16 %v6996_v44  ;;  %v4302_v39 = vpack.c.bf16 %v6557_v62, %v6552_v48  ;;  %v5492_v48 = vld [vmem:[%s9398_s1 + $0x1d0] sm:$0xff]  ;;  %v5493_v62 = vld [vmem:[%s9398_s1 + $0x208] sm:$0xff] }
 0x119   :  { %v7390_v34 = vpop.permute.xlu0 %5267  ;;  %3967 = vmatmul.mubr.f32.gmra.mrb[36].mxu1 %v6935_v20  ;;  %1157 = vmatprep.mubr.f32.mxu0 %v9564_v13 }
 0x11a   :  { %4331 = vmatpush1.bf16.msra.mxu1 %v4330_v37  ;;  %3969 = vmatprep.mubr.f32.mxu1 %v6970_v24  ;;  %v2257_v28 = vsel %vm2240_vm3, %v5154_v58, %v9471_v23  ;;  %v2258_v14 = vsel %vm2240_vm3, %v9618_v32, %v9488_v42  ;;  %v5490_v37 = vld [vmem:[%s9398_s1 + $0x1d8] sm:$0xff] }
 0x11b   :  { %4333 = vmatprep.subr.bf16.mxu1 %v4332_v29  ;;  %v4336_v1 = vpack.c.bf16 %v5491_v10, %v5490_v37  ;;  %4299 = vmatpush1.bf16.msra.mxu0 %v4298_v27  ;;  %v7421_v31 = vpack.c.bf16 %v2258_v14, %v2257_v28  ;;  %v7423_v23 = vpop.permute.xlu1 %5282  ;;  %v4304_v29 = vpack.c.bf16 %v6626_v46, %v6621_v3  ;;  %v5494_v3 = vld [vmem:[%s9398_s1 + $0x248] sm:$0xff]  ;;  %v5495_v46 = vld [vmem:[%s9398_s1 + $0x280] sm:$0xff] }
 0x11c   :  { %1158 = vmatmul.mubr.f32.gmra.mrb[38].mxu0 %v6857_v49  ;;  %4301 = vmatprep.subr.bf16.mxu0 %v4300_v2  ;;  %v4338_v49 = vpack.c.bf16 %v5493_v62, %v5492_v48  ;;  %v4340_v27 = vpack.c.bf16 %v5495_v46, %v5494_v3  ;;  %v4306_v2 = vpack.c.bf16 %v6658_v43, %v6653_v35  ;;  %v5496_v35 = vld [vmem:[%s9398_s1 + $0x240] sm:$0xff]  ;;  %v5497_v43 = vld [vmem:[%s9398_s1 + $0x278] sm:$0xff] }
 0x11d   :  { %9619 = vst [vmem:[#allocation35_spill] sm:$0xff] %v7421_v31  ;;  %v7428_v32 = vpop.permute.xlu0 %5277  ;;  %3970 = vmatmul.mubr.f32.gmra.mrb[38].mxu1 %v7013_v40  ;;  %1163 = vmatprep.mubr.f32.mxu0 %v9564_v13  ;;  %v4308_v28 = vpack.c.bf16 %v7060_v12, %v7055_v54  ;;  %v5498_v54 = vld [vmem:[%s9398_s1 + $0x2b8] sm:$0xff]  ;;  %v5499_v12 = vld [vmem:[%s9398_s1 + $0x2f0] sm:$0xff]  ;;  %v4310_v10 = vpack.c.bf16 %v7090_v6, %v7085_v15  ;;  %v5501_v15 = vld [vmem:[%s9398_s1 + $0x2e8] sm:$0xff] }
 0x11e   :  { %4335 = vmatpush1.bf16.msra.mxu1 %v4334_v33  ;;  %3972 = vmatprep.mubr.f32.mxu1 %v7046_v56  ;;  %v4344_v37 = vpack.c.bf16 %v5499_v12, %v5498_v54  ;;  %v5503_v3 = vld [vmem:[%s9398_s1 + $0x360] sm:$0xff]  ;;  %v5507_v54 = vld [vmem:[%s9398_s1 + $0x68] sm:$0xff] }
 0x11f   :  { %4337 = vmatprep.subr.bf16.mxu1 %v4336_v1  ;;  %4303 = vmatpush1.bf16.msra.mxu0 %v4302_v39  ;;  %v7447_v33 = vpop.permute.xlu1 %5292  ;;  %v4312_v39 = vpack.c.bf16 %v7152_v55, %v7147_v19 }
 0x120   :  { %1164 = vmatmul.mubr.f32.gmra.mrb[40].mxu0 %v6892_v26  ;;  %4305 = vmatprep.subr.bf16.mxu0 %v4304_v29  ;;  %v4342_v26 = vpack.c.bf16 %v5497_v43, %v5496_v35  ;;  %v4316_v35 = vpack.c.bf16 %v7230_v5, %v7225_v25  ;;  %v5505_v5 = vld [vmem:[%s9398_s1 + $0x358] sm:$0xff] }
 0x121   :  { %v7452_v14 = vpop.permute.xlu0 %5287  ;;  %3973 = vmatmul.mubr.f32.gmra.mrb[40].mxu1 %v7101_v17  ;;  %1169 = vmatprep.mubr.f32.mxu0 %v9564_v13 }
 0x122   :  { %4339 = vmatpush1.bf16.msra.mxu1 %v4338_v49  ;;  %3975 = vmatprep.mubr.f32.mxu1 %v7140_v4  ;;  %v5502_v49 = vld [vmem:[%s9398_s1 + $0x328] sm:$0xff] }
 0x123   :  { %4341 = vmatprep.subr.bf16.mxu1 %v4340_v27  ;;  %4307 = vmatpush1.bf16.msra.mxu0 %v4306_v2  ;;  %v7471_v1 = vpop.permute.xlu1 %5302  ;;  %v4348_v46 = vpack.c.bf16 %v5503_v3, %v5502_v49  ;;  %v4314_v27 = vpack.c.bf16 %v7168_v52, %v7163_v51 }
 0x124   :  { %1170 = vmatmul.mubr.f32.gmra.mrb[42].mxu0 %v6935_v20  ;;  %4309 = vmatprep.subr.bf16.mxu0 %v4308_v28  ;;  %v9486_v48 = vunpack.i.h.bf16 %v7471_v1  ;;  %v5500_v20 = vld [vmem:[%s9398_s1 + $0x2b0] sm:$0xff]  ;;  %v9487_v19 = vunpack.i.l.bf16 %v7471_v1 }
 0x125   :  { %v7476_v29 = vpop.permute.xlu0 %5297  ;;  %3976 = vmatmul.mubr.f32.gmra.mrb[42].mxu1 %v7179_v53  ;;  %1175 = vmatprep.mubr.f32.mxu0 %v9564_v13  ;;  %v4346_v6 = vpack.c.bf16 %v5501_v15, %v5500_v20  ;;  %v5509_v20 = vld [vmem:[%s9398_s1 + $0x60] sm:$0xff] }
 0x126   :  { %v9485_v62 = vunpack.i.h.bf16 %v7476_v29  ;;  %4343 = vmatpush1.bf16.msra.mxu1 %v4342_v26  ;;  %3978 = vmatprep.mubr.f32.mxu1 %v7218_v36  ;;  %v9484_v55 = vunpack.i.l.bf16 %v7476_v29  ;;  %v5506_v26 = vld [vmem:[%s9398_s1 + $0x30] sm:$0xff] }
 0x127   :  { %4345 = vmatprep.subr.bf16.mxu1 %v4344_v37  ;;  %4311 = vmatpush1.bf16.msra.mxu0 %v4310_v10  ;;  %v7505_v28 = vpop.permute.xlu1 %5312  ;;  %v4384_v12 = vpack.c.bf16 %v5507_v54, %v5506_v26  ;;  %v4318_v37 = vpack.c.bf16 %v7246_v16, %v7241_v47  ;;  %v7556_v47 = vld [vmem:[%s9399_s0 + $0x80] sm:$0xff]  ;;  %v5512_v26 = vld [vmem:[%s9398_s1 + $0x110] sm:$0xff]  ;;  %v5513_v54 = vld [vmem:[%s9398_s1 + $0x148] sm:$0xff] }
 0x128   :  { %v2340_v2 = vsel %vm2240_vm3, %v9485_v62, %v9486_v48  ;;  %1176 = vmatmul.mubr.f32.gmra.mrb[44].mxu0 %v6970_v24  ;;  %4313 = vmatprep.subr.bf16.mxu0 %v4312_v39  ;;  %v2339_v51 = vsel %vm2240_vm3, %v9484_v55, %v9487_v19  ;;  %v5504_v24 = vld [vmem:[%s9398_s1 + $0x320] sm:$0xff]  ;;  %v5508_v39 = vld [vmem:[%s9398_s1 + $0x28] sm:$0xff] }
 0x129   :  { %v7516_v52 = vpop.permute.xlu0 %5307  ;;  %3979 = vmatmul.mubr.f32.gmra.mrb[44].mxu1 %v7257_v57  ;;  %1181 = vmatprep.mubr.f32.mxu0 %v9564_v13  ;;  %v7520_v43 = vpack.c.bf16 %v2340_v2, %v2339_v51  ;;  %v4350_v25 = vpack.c.bf16 %v5505_v5, %v5504_v24  ;;  %v4352_v15 = vpack.c.bf16 %v5509_v20, %v5508_v39  ;;  %v9648_v48 = vld [vmem:[#allocation22_spill] sm:$0xff]  ;;  %v9649_v19 = vld [vmem:[#allocation23_spill] sm:$0xff] }
 0x12a   :  { %4347 = vmatpush1.bf16.msra.mxu1 %v4346_v6  ;;  %3981 = vmatprep.mubr.f32.mxu1 %v7284_v22  ;;  %v4380_v42 = vpack.c.bf16 %v9649_v19, %v9648_v48  ;;  %v9652_v48 = vunpack.i.l.bf16 %v7005_v59 }
 0x12b   :  { %9620 = vst [vmem:[#allocation36_spill] sm:$0xff] %v7520_v43  ;;  %4349 = vmatprep.subr.bf16.mxu1 %v4348_v46  ;;  %4315 = vmatpush1.bf16.msra.mxu0 %v4314_v27  ;;  %v7537_v10 = vpop.permute.xlu1 %5322  ;;  %v5510_v46 = vld [vmem:[%s9398_s1 + $0xa0] sm:$0xff]  ;;  %v5511_v27 = vld [vmem:[%s9398_s1 + $0xd8] sm:$0xff]  ;;  %v9656_v43 = vunpack.i.h.bf16 %v7390_v34 }
 0x12c   :  { %1182 = vmatmul.mubr.f32.gmra.mrb[46].mxu0 %v7013_v40  ;;  %4317 = vmatprep.subr.bf16.mxu0 %v4316_v35  ;;  %v9482_v16 = vunpack.i.h.bf16 %v7537_v10  ;;  %v9483_v49 = vunpack.i.l.bf16 %v7537_v10  ;;  %v4388_v2 = vpack.c.bf16 %v5511_v27, %v5510_v46  ;;  %v7612_v46 = vld [vmem:[%s9399_s0 + $0x90] sm:$0xff] }
 0x12d   :  { %v7546_v6 = vpop.permute.xlu0 %5317  ;;  %3982 = vmatmul.mubr.f32.gmra.mrb[46].mxu1 %v7298_v30  ;;  %1187 = vmatprep.mubr.f32.mxu0 %v9564_v13  ;;  %9625 = vst [vmem:[#allocation41_spill] sm:$0xff] %v7612_v46 }
 0x12e   :  { %v9481_v40 = vunpack.i.h.bf16 %v7546_v6  ;;  %4351 = vmatpush1.bf16.msra.mxu1 %v4350_v25  ;;  %1606 = vmatprep.mubr.f32.mxu1 %v9564_v13  ;;  %v9480_v3 = vunpack.i.l.bf16 %v7546_v6 }
 0x12f   :  { %4385 = vmatprep.subr.bf16.mxu1 %v4384_v12  ;;  %4319 = vmatpush1.bf16.msra.mxu0 %v4318_v37  ;;  %v7572_v51 = vpop.permute.xlu1 %5332  ;;  %v4392_v37 = vpack.c.bf16 %v5513_v54, %v5512_v26 }
 0x130   :  { %v2342_v35 = vsel %vm2240_vm3, %v9481_v40, %v9482_v16  ;;  %1188 = vmatmul.mubr.f32.gmra.mrb[48].mxu0 %v7046_v56  ;;  %4353 = vmatprep.subr.bf16.mxu0 %v4352_v15  ;;  %v2341_v24 = vsel %vm2240_vm3, %v9480_v3, %v9483_v49  ;;  %v7591_v56 = vld [vmem:[%s9399_s0 + $0x88] sm:$0xff]  ;;  %v9645_v40 = vld [vmem:[#allocation12_spill] sm:$0xff] }
 0x131   :  { %v7581_v5 = vpop.permute.xlu0 %5327  ;;  %1607 = vmatmul.mubr.f32.vlgmr.msra.gmra.mrb[0].mxu1 %v7556_v47  ;;  %1193 = vmatprep.mubr.f32.mxu0 %v9564_v13  ;;  %v7585_v25 = vpack.c.bf16 %v2342_v35, %v2341_v24  ;;  %9622 = vst [vmem:[#allocation38_spill] sm:$0xff] %v7591_v56  ;;  %v4396_v35 = vpack.c.bf16 %v6581_v8, %v6576_v45  ;;  %v7643_v8 = vld [vmem:[%s9399_s0 + $0x98] sm:$0xff]  ;;  %v5159_v16 = vunpack.i.l.bf16 %v9645_v40  ;;  %v5160_v49 = vunpack.i.h.bf16 %v9645_v40  ;;  %v5536_v40 = vld [vmem:[%s9398_s1 + $0x330] sm:$0xff] }
 0x132   :  { %4387 = vmatpush3.bf16.msra.mxu1 %v4384_v12  ;;  %1612 = vmatprep.mubr.f32.mxu1 %v9564_v13 }
 0x133   :  { %9621 = vst [vmem:[#allocation37_spill] sm:$0xff] %v7585_v25  ;;  %4389 = vmatprep.subr.bf16.mxu1 %v4388_v2  ;;  %v7599_v39 = vpop.permute.xlu1 %5342  ;;  %v7884_v19 = vsel %vm2240_vm3, %v5159_v16, %v9652_v48  ;;  %v9655_v48 = vunpack.i.l.bf16 %v7390_v34 }
 0x134   :  { %9623 = vst [vmem:[#allocation39_spill] sm:$0xff] %v7599_v39  ;;  %1194 = vmatmul.mubr.f32.gmra.mrb[50].mxu0 %v7101_v17  ;;  %v9474_v20 = vunpack.i.h.bf16 %v7599_v39  ;;  %v9479_v17 = vunpack.i.l.bf16 %v7599_v39 }
 0x135   :  { %v7602_v12 = vpop.permute.xlu0 %5337  ;;  %1613 = vmatmul.mubr.f32.gmra.mrb[2].mxu1 %v7591_v56  ;;  %1199 = vmatprep.mubr.f32.mxu0 %v9564_v13  ;;  %v2305_v25 = vsel %vm2240_vm3, %v9655_v48, %v5159_v16  ;;  %v9658_v48 = vunpack.i.h.bf16 %v7005_v59 }
 0x136   :  { %9624 = vst [vmem:[#allocation40_spill] sm:$0xff] %v7602_v12  ;;  %v9473_v15 = vunpack.i.h.bf16 %v7602_v12  ;;  %1618 = vmatprep.mubr.f32.mxu1 %v9564_v13  ;;  %4391 = vmatpush3.bf16.msra.mxu1 %v4388_v2  ;;  %v9472_v27 = vunpack.i.l.bf16 %v7602_v12 }
 0x137   :  { %4393 = vmatprep.subr.bf16.mxu1 %v4392_v37  ;;  %v7624_v26 = vpop.permute.xlu1 %5352 }
 0x138   :  { %v2344_v24 = vsel %vm2240_vm3, %v9473_v15, %v9474_v20  ;;  %9626 = vst [vmem:[#allocation42_spill] sm:$0xff] %v7624_v26  ;;  %1200 = vmatmul.mubr.f32.gmra.mrb[52].mxu0 %v7140_v4  ;;  %v2343_v2 = vsel %vm2240_vm3, %v9472_v27, %v9479_v17  ;;  %v4400_v4 = vpack.c.bf16 %v6676_v38, %v6671_v50  ;;  %v7660_v50 = vld [vmem:[%s9399_s0 + $0xa0] sm:$0xff] }
 0x139   :  { %v7633_v54 = vpop.permute.xlu0 %5347  ;;  %1619 = vmatmul.mubr.f32.gmra.mrb[4].mxu1 %v7612_v46  ;;  %1205 = vmatprep.mubr.f32.mxu0 %v9564_v13  ;;  %v7637_v45 = vpack.c.bf16 %v2344_v24, %v2343_v2  ;;  %9631 = vst [vmem:[#allocation47_spill] sm:$0xff] %v7660_v50 }
 0x13a   :  { %9627 = vst [vmem:[#allocation43_spill] sm:$0xff] %v7633_v54  ;;  %1624 = vmatprep.mubr.f32.mxu1 %v9564_v13  ;;  %4395 = vmatpush3.bf16.msra.mxu1 %v4392_v37  ;;  %v4404_v37 = vpack.c.bf16 %v7113_v7, %v7108_v18  ;;  %v7687_v7 = vld [vmem:[%s9399_s0 + $0xa8] sm:$0xff] }
 0x13b   :  { %9628 = vst [vmem:[#allocation44_spill] sm:$0xff] %v7637_v45  ;;  %4397 = vmatprep.subr.bf16.mxu1 %v4396_v35  ;;  %v7648_v27 = vpop.permute.xlu1 %5362  ;;  %9633 = vst [vmem:[#allocation49_spill] sm:$0xff] %v7687_v7 }
 0x13c   :  { %1206 = vmatmul.mubr.f32.gmra.mrb[54].mxu0 %v7179_v53  ;;  %9629 = vst [vmem:[#allocation45_spill] sm:$0xff] %v7648_v27  ;;  %v9475_v24 = vunpack.i.h.bf16 %v7648_v27  ;;  %v9476_v38 = vunpack.i.l.bf16 %v7648_v27 }
 0x13d   :  { %v7650_v15 = vpop.permute.xlu0 %5357  ;;  %1625 = vmatmul.mubr.f32.gmra.mrb[6].mxu1 %v7643_v8  ;;  %1211 = vmatprep.mubr.f32.mxu0 %v9564_v13 }
 0x13e   :  { %9630 = vst [vmem:[#allocation46_spill] sm:$0xff] %v7650_v15  ;;  %v9478_v2 = vunpack.i.h.bf16 %v7650_v15  ;;  %1630 = vmatprep.mubr.f32.mxu1 %v9564_v13  ;;  %4399 = vmatpush3.bf16.msra.mxu1 %v4396_v35  ;;  %v9477_v53 = vunpack.i.l.bf16 %v7650_v15 }
 0x13f   :  { %4401 = vmatprep.subr.bf16.mxu1 %v4400_v4 }
 0x140   :  { %v2346_v20 = vsel %vm2240_vm3, %v9478_v2, %v9475_v24  ;;  %1212 = vmatmul.mubr.f32.gmra.mrb[56].mxu0 %v7218_v36  ;;  %v2345_v35 = vsel %vm2240_vm3, %v9477_v53, %v9476_v38  ;;  %v4408_v36 = vpack.c.bf16 %v7191_v63, %v7186_v11  ;;  %v9489_v24 = vunpack.i.h.bf16 %v7005_v59  ;;  %v9635_v11 = vld [vmem:[#allocation27_spill] sm:$0xff] }
 0x141   :  { %1631 = vmatmul.mubr.f32.gmra.mrb[8].mxu1 %v7660_v50  ;;  %1217 = vmatprep.mubr.f32.mxu0 %v9564_v13  ;;  %v7681_v18 = vpack.c.bf16 %v2346_v20, %v2345_v35  ;;  %v9490_v38 = vunpack.i.l.bf16 %v7005_v59  ;;  %v7700_v20 = vld [vmem:[%s9399_s0 + $0xb0] sm:$0xff]  ;;  %v4412_v63 = vpack.c.bf16 %v9635_v11, %v7264_v61  ;;  %v9637_v61 = vld [vmem:[#allocation3_spill] sm:$0xff]  ;;  %v7932_v59 = vld [vmem:[%s9399_s0 + $0xf8] sm:$0xff] }
 0x142   :  { %1636 = vmatprep.mubr.f32.mxu1 %v9564_v13  ;;  %4403 = vmatpush3.bf16.msra.mxu1 %v4400_v4  ;;  %9634 = vst [vmem:[#allocation50_spill] sm:$0xff] %v7700_v20  ;;  %v9636_v4 = vunpack.i.h.bf16 %v6996_v44  ;;  %vm3827_vm12 = vcmp.ne.s32.totalorder %v9637_v61, 27  ;;  %v5518_v61 = vld [vmem:[%s9398_s1 + $0x90] sm:$0xff] }
 0x143   :  { %9632 = vst [vmem:[#allocation48_spill] sm:$0xff] %v7681_v18  ;;  %4405 = vmatprep.subr.bf16.mxu1 %v4404_v37  ;;  %v2273_v35 = vsel %vm2240_vm3, %v9490_v38, %v5154_v58  ;;  %vm7727_vm13 = vmpackc.low %vm3827_vm12, %vm3827_vm12  ;;  %v5514_v58 = vld [vmem:[%s9398_s1 + $0x20] sm:$0xff]  ;;  %v7876_v18 = vld [vmem:[%s9399_s0 + $0xf0] sm:$0xff] }
 0x144   :  { %1218 = vmatmul.mubr.f32.gmra.mrb[58].mxu0 %v7257_v57  ;;  %v2274_v57 = vsel %vm2240_vm3, %v9489_v24, %v9636_v4  ;;  %v5516_v4 = vld [vmem:[%s9398_s1 + $0x98] sm:$0xff] }
 0x145   :  { %1637 = vmatmul.mubr.f32.gmra.mrb[10].mxu1 %v7687_v7  ;;  %1223 = vmatprep.mubr.f32.mxu0 %v9564_v13  ;;  %v4464_v44 = vpack.c.bf16 %v2274_v57, %v2273_v35  ;;  %v5517_v57 = vld [vmem:[%s9398_s1 + $0xd0] sm:$0xff] }
 0x146   :  { %1642 = vmatprep.mubr.f32.mxu1 %v9564_v13  ;;  %4407 = vmatpush3.bf16.msra.mxu1 %v4404_v37  ;;  %v7724_v37 = vld [vmem:[%s9399_s0 + $0xb8] sm:$0xff]  ;;  %v4356_v35 = vpack.c.bf16 %v5517_v57, %v5516_v4  ;;  %v5522_v57 = vld [vmem:[%s9398_s1 + $0x100] sm:$0xff] }
 0x147   :  { %4409 = vmatprep.subr.bf16.mxu1 %v4408_v36 }
 0x148   :  { %1224 = vmatmul.mubr.f32.gmra.mrb[60].mxu0 %v7284_v22  ;;  %v9742_v22 = vunpack.i.l.bf16 %v7476_v29 }
 0x149   :  { %1643 = vmatmul.mubr.f32.gmra.mrb[12].mxu1 %v7700_v20  ;;  %1229 = vmatprep.mubr.f32.mxu0 %v9564_v13 }
 0x14a   :  { %1648 = vmatprep.mubr.f32.mxu1 %v9564_v13  ;;  %4411 = vmatpush3.bf16.msra.mxu1 %v4408_v36  ;;  %v5515_v36 = vld [vmem:[%s9398_s1 + $0x58] sm:$0xff] }
 0x14b   :  { %4413 = vmatprep.subr.bf16.mxu1 %v4412_v63  ;;  %v4354_v11 = vpack.c.bf16 %v5515_v36, %v5514_v58  ;;  %v5519_v58 = vld [vmem:[%s9398_s1 + $0xc8] sm:$0xff] }
 0x14c   :  { %1230 = vmatmul.mubr.f32.gmra.mrb[62].mxu0 %v7298_v30  ;;  %v7743_v30 = vld [vmem:[%s9399_s0 + $0xc0] sm:$0xff]  ;;  %v4358_v36 = vpack.c.bf16 %v5519_v58, %v5518_v61  ;;  %v7786_v58 = vld [vmem:[%s9399_s0 + $0xd0] sm:$0xff] }
 0x14d   :  { %1649 = vmatmul.mubr.f32.gmra.mrb[14].mxu1 %v7724_v37  ;;  %1445 = vmatprep.mubr.f32.mxu0 %v9564_v13 }
 0x14e   :  { %1654 = vmatprep.mubr.f32.mxu1 %v9564_v13  ;;  %4415 = vmatpush3.bf16.msra.mxu1 %v4412_v63  ;;  %v7765_v63 = vld [vmem:[%s9399_s0 + $0xc8] sm:$0xff] }
 0x14f   :  { %4466 = vmatprep.subr.msk.bf16.mxu1 %vm7727_vm13, %v4464_v44  ;;  %v5520_v44 = vld [vmem:[%s9398_s1 + $0x108] sm:$0xff] }
 0x150   :  { %1446 = vmatmul.mubr.f32.vlgmr.msra.gmra.mrb[0].mxu0 %v7556_v47 }
 0x151   :  { %4355 = vmatpush1.bf16.msra.mxu0 %v4354_v11  ;;  %1655 = vmatmul.mubr.f32.gmra.mrb[16].mxu1 %v7743_v30  ;;  %v5521_v11 = vld [vmem:[%s9398_s1 + $0x140] sm:$0xff] }
 0x152   :  { %1451 = vmatprep.mubr.f32.mxu0 %v9564_v13  ;;  %4357 = vmatprep.subr.bf16.mxu0 %v4356_v35  ;;  %v4360_v4 = vpack.c.bf16 %v5521_v11, %v5520_v44  ;;  %v5523_v35 = vld [vmem:[%s9398_s1 + $0x138] sm:$0xff]  ;;  %v5525_v44 = vld [vmem:[%s9398_s1 + $0x1b0] sm:$0xff] }
 0x153   :  { %1660 = vmatprep.mubr.f32.mxu1 %v9564_v13  ;;  %v4362_v61 = vpack.c.bf16 %v5523_v35, %v5522_v57  ;;  %v5527_v57 = vld [vmem:[%s9398_s1 + $0x1a8] sm:$0xff] }
 0x154   :  { %1452 = vmatmul.mubr.f32.gmra.mrb[2].mxu0 %v7591_v56 }
 0x155   :  { %4359 = vmatpush1.bf16.msra.mxu0 %v4358_v36  ;;  %1661 = vmatmul.mubr.f32.gmra.mrb[18].mxu1 %v7765_v63  ;;  %v5524_v36 = vld [vmem:[%s9398_s1 + $0x178] sm:$0xff] }
 0x156   :  { %1457 = vmatprep.mubr.f32.mxu0 %v9564_v13  ;;  %4361 = vmatprep.subr.bf16.mxu0 %v4360_v4  ;;  %v4364_v11 = vpack.c.bf16 %v5525_v44, %v5524_v36  ;;  %v5526_v4 = vld [vmem:[%s9398_s1 + $0x170] sm:$0xff]  ;;  %v7807_v36 = vld [vmem:[%s9399_s0 + $0xd8] sm:$0xff]  ;;  %v5529_v44 = vld [vmem:[%s9398_s1 + $0x220] sm:$0xff] }
 0x157   :  { %1666 = vmatprep.mubr.f32.mxu1 %v9564_v13  ;;  %v4366_v35 = vpack.c.bf16 %v5527_v57, %v5526_v4  ;;  %v5531_v4 = vld [vmem:[%s9398_s1 + $0x218] sm:$0xff] }
 0x158   :  { %1458 = vmatmul.mubr.f32.gmra.mrb[4].mxu0 %v7612_v46 }
 0x159   :  { %4363 = vmatpush1.bf16.msra.mxu0 %v4362_v61  ;;  %1667 = vmatmul.mubr.f32.gmra.mrb[20].mxu1 %v7786_v58  ;;  %v5528_v61 = vld [vmem:[%s9398_s1 + $0x1e8] sm:$0xff] }
 0x15a   :  { %1463 = vmatprep.mubr.f32.mxu0 %v9564_v13  ;;  %4365 = vmatprep.subr.bf16.mxu0 %v4364_v11  ;;  %v4368_v53 = vpack.c.bf16 %v5529_v44, %v5528_v61  ;;  %v5530_v11 = vld [vmem:[%s9398_s1 + $0x1e0] sm:$0xff]  ;;  %v9641_v44 = vld [vmem:[#allocation11_spill] sm:$0xff] }
 0x15b   :  { %1672 = vmatprep.mubr.f32.mxu1 %v9564_v13  ;;  %v4370_v57 = vpack.c.bf16 %v5531_v4, %v5530_v11  ;;  %v7828_v61 = vld [vmem:[%s9399_s0 + $0xe0] sm:$0xff]  ;;  %v5532_v11 = vld [vmem:[%s9398_s1 + $0x250] sm:$0xff] }
 0x15c   :  { %1464 = vmatmul.mubr.f32.gmra.mrb[6].mxu0 %v7643_v8 }
 0x15d   :  { %4367 = vmatpush1.bf16.msra.mxu0 %v4366_v35  ;;  %1673 = vmatmul.mubr.f32.gmra.mrb[22].mxu1 %v7807_v36  ;;  %v9640_v35 = vld [vmem:[#allocation10_spill] sm:$0xff] }
 0x15e   :  { %1469 = vmatprep.mubr.f32.mxu0 %v9564_v13  ;;  %4369 = vmatprep.subr.bf16.mxu0 %v4368_v53  ;;  %v4372_v2 = vpack.c.bf16 %v9641_v44, %v9640_v35  ;;  %v5533_v53 = vld [vmem:[%s9398_s1 + $0x288] sm:$0xff]  ;;  %v9643_v44 = vld [vmem:[#allocation17_spill] sm:$0xff] }
 0x15f   :  { %1678 = vmatprep.mubr.f32.mxu1 %v9564_v13  ;;  %v4374_v4 = vpack.c.bf16 %v5533_v53, %v5532_v11  ;;  %v7845_v35 = vld [vmem:[%s9399_s0 + $0xe8] sm:$0xff]  ;;  %v9647_v53 = vld [vmem:[#allocation9_spill] sm:$0xff] }
 0x160   :  { %1470 = vmatmul.mubr.f32.gmra.mrb[8].mxu0 %v7660_v50  ;;  %v5165_v55 = vunpack.i.h.bf16 %v9647_v53  ;;  %v5164_v24 = vunpack.i.l.bf16 %v9647_v53  ;;  %v9650_v11 = vld [vmem:[#allocation13_spill] sm:$0xff] }
 0x161   :  { %4371 = vmatpush1.bf16.msra.mxu0 %v4370_v57  ;;  %1679 = vmatmul.mubr.f32.gmra.mrb[24].mxu1 %v7828_v61  ;;  %v9642_v57 = vld [vmem:[#allocation16_spill] sm:$0xff]  ;;  %v9659_v38 = vunpack.i.l.bf16 %v9650_v11  ;;  %v9660_v15 = vunpack.i.h.bf16 %v9650_v11 }
 0x162   :  { %1475 = vmatprep.mubr.f32.mxu0 %v9564_v13  ;;  %4373 = vmatprep.subr.bf16.mxu0 %v4372_v2  ;;  %v4376_v17 = vpack.c.bf16 %v9643_v44, %v9642_v57  ;;  %v7849_v3 = vpop.permute.xlu1 %5372  ;;  %v5534_v57 = vld [vmem:[%s9398_s1 + $0x2c0] sm:$0xff]  ;;  %v5535_v44 = vld [vmem:[%s9398_s1 + $0x2f8] sm:$0xff] }
 0x163   :  { %9644 = vst [vmem:[#allocation27_spill] sm:$0xff] %v7849_v3  ;;  %1684 = vmatprep.mubr.f32.mxu1 %v9564_v13  ;;  %v4378_v62 = vpack.c.bf16 %v5535_v44, %v5534_v57  ;;  %v9653_v44 = vld [vmem:[#allocation2_spill] sm:$0xff]  ;;  %v2306_v3 = vsel %vm2240_vm3, %v9656_v43, %v5160_v49  ;;  %v2290_v43 = vsel %vm2240_vm3, %v5160_v49, %v9658_v48  ;;  %v9661_v49 = vld [vmem:[#allocation4_spill] sm:$0xff] }
 0x164   :  { %1476 = vmatmul.mubr.f32.gmra.mrb[10].mxu0 %v7687_v7  ;;  %v7856_v2 = vpop.permute.xlu0 %5367  ;;  %vm3825_vm14 = vcmp.ne.s32.totalorder %v9653_v44, 27  ;;  %vm3828_vm15 = vcmp.ne.s32.totalorder %v9661_v49, 27  ;;  %v9670_v44 = vld [vmem:[#allocation18_spill] sm:$0xff]  ;;  %v4416_v39 = vpack.c.bf16 %v2306_v3, %v2305_v25  ;;  %v9676_v25 = vld [vmem:[#allocation19_spill] sm:$0xff] }
 0x165   :  { %9646 = vst [vmem:[#allocation3_spill] sm:$0xff] %v7856_v2  ;;  %4375 = vmatpush1.bf16.msra.mxu0 %v4374_v4  ;;  %1685 = vmatmul.mubr.f32.gmra.mrb[26].mxu1 %v7845_v35  ;;  %v9654_v4 = vld [vmem:[#allocation14_spill] sm:$0xff]  ;;  %vm7943_vm0 = vmpackc.low %vm3825_vm14, %vm3825_vm14  ;;  %v5180_v12 = vunpack.i.h.bf16 %v9670_v44  ;;  %v5179_v26 = vunpack.i.l.bf16 %v9670_v44  ;;  %v9677_v44 = vld [vmem:[#allocation21_spill] sm:$0xff] }
 0x166   :  { %1481 = vmatprep.mubr.f32.mxu0 %v9564_v13  ;;  %4377 = vmatprep.subr.bf16.mxu0 %v4376_v17  ;;  %v7878_v57 = vpop.permute.xlu1 %5382  ;;  %v5537_v17 = vld [vmem:[%s9398_s1 + $0x368] sm:$0xff]  ;;  %vm7993_vm1 = vmpackc.low %vm3828_vm15, %vm3828_vm15 }
 0x167   :  { %9651 = vst [vmem:[#allocation10_spill] sm:$0xff] %v7878_v57  ;;  %1690 = vmatprep.mubr.f32.mxu1 %v9564_v13  ;;  %v4382_v53 = vpack.c.bf16 %v5537_v17, %v5536_v40  ;;  %v9509_v40 = vunpack.i.h.bf16 %v7878_v57  ;;  %v7926_v17 = vsel %vm2240_vm3, %v9660_v15, %v5165_v55  ;;  %v9668_v16 = vunpack.i.l.bf16 %v7878_v57 }
 0x168   :  { %1482 = vmatmul.mubr.f32.gmra.mrb[12].mxu0 %v7700_v20  ;;  %v7905_v27 = vpop.permute.xlu0 %5377 }
 0x169   :  { %9657 = vst [vmem:[#allocation11_spill] sm:$0xff] %v7905_v27  ;;  %4379 = vmatpush1.bf16.msra.mxu0 %v4378_v62  ;;  %1691 = vmatmul.mubr.f32.gmra.mrb[28].mxu1 %v7876_v18  ;;  %v7920_v62 = vsel %vm2240_vm3, %v9659_v38, %v5164_v24  ;;  %v9663_v38 = vld [vmem:[#allocation15_spill] sm:$0xff]  ;;  %v9667_v15 = vunpack.i.h.bf16 %v7905_v27  ;;  %v9669_v45 = vunpack.i.l.bf16 %v7905_v27  ;;  %v9674_v27 = vunpack.i.l.bf16 %v9654_v4 }
 0x16a   :  { %1487 = vmatprep.mubr.f32.mxu0 %v9564_v13  ;;  %4381 = vmatprep.subr.bf16.mxu0 %v4380_v42  ;;  %v7935_v48 = vpop.permute.xlu1 %5392  ;;  %v9664_v42 = vmov 0 }
 0x16b   :  { %9662 = vst [vmem:[#allocation16_spill] sm:$0xff] %v7935_v48  ;;  %1696 = vmatprep.mubr.f32.mxu1 %v9564_v13  ;;  %v9665_v42 = vsel %vm7943_vm0, 4294967295, %v9664_v42  ;;  %v2348_v48 = vsel %vm2240_vm3, %v9667_v15, %v9509_v40  ;;  %v2347_v2 = vsel %vm2240_vm3, %v9669_v45, %v9668_v16  ;;  %v9673_v15 = vunpack.i.h.bf16 %v9654_v4  ;;  %v9675_v16 = vld [vmem:[#allocation20_spill] sm:$0xff] }
 0x16c   :  { %9666 = vst [vmem:[#allocation17_spill] sm:$0xff] %v9665_v42  ;;  %1488 = vmatmul.mubr.f32.gmra.mrb[14].mxu0 %v7724_v37  ;;  %v7962_v31 = vpack.c.bf16 %v2348_v48, %v2347_v2  ;;  %v7964_v54 = vpop.permute.xlu0 %5387  ;;  %v2275_v45 = vsel %vm2240_vm3, %v5164_v24, %v9674_v27  ;;  %v9515_v3 = vunpack.i.l.bf16 %v9675_v16  ;;  %v5195_v2 = vunpack.i.h.bf16 %v9676_v25 }
 0x16d   :  { %9672 = vst [vmem:[#allocation9_spill] sm:$0xff] %v7964_v54  ;;  %v2276_v40 = vsel %vm2240_vm3, %v5165_v55, %v9673_v15  ;;  %4383 = vmatpush1.bf16.msra.mxu0 %v4382_v53  ;;  %1697 = vmatmul.mubr.f32.gmra.mrb[30].mxu1 %v7932_v59  ;;  %v5194_v48 = vunpack.i.l.bf16 %v9676_v25  ;;  %v4467_v24 = vpack.c.bf16 %v2290_v43, %v7884_v19  ;;  %v9678_v53 = vld [vmem:[#allocation24_spill] sm:$0xff]  ;;  %v9681_v55 = vunpack.i.h.bf16 %v9663_v38 }
 0x16e   :  { %9671 = vst [vmem:[#allocation12_spill] sm:$0xff] %v7962_v31  ;;  %4418 = vmatprep.subr.msk.bf16.mxu0 %vm7943_vm0, %v4416_v39  ;;  %1493 = vmatprep.mubr.f32.mxu0 %v9564_v13  ;;  %v7984_v27 = vpop.permute.xlu1 %5402  ;;  %v4473_v39 = vpack.c.bf16 %v7926_v17, %v7920_v62  ;;  %v4470_v31 = vpack.c.bf16 %v2276_v40, %v2275_v45  ;;  %v9682_v43 = vunpack.i.l.bf16 %v9663_v38  ;;  %v9684_v40 = vunpack.i.h.bf16 %v9675_v16 }
 0x16f   :  { %4016 = vmatprep.mubr.f32.mxu1 %v7556_v47  ;;  %v2278_v19 = vsel %vm2240_vm3, %v5180_v12, %v9681_v55  ;;  %v2293_v17 = vsel %vm2240_vm3, %v9515_v3, %v5179_v26  ;;  %v9689_v54 = vunpack.i.l.bf16 %v9678_v53 }
 0x170   :  { %v2277_v57 = vsel %vm2240_vm3, %v5179_v26, %v9682_v43  ;;  %1494 = vmatmul.mubr.f32.gmra.mrb[16].mxu0 %v7743_v30  ;;  %v8008_v49 = vpop.permute.xlu0 %5397  ;;  %v2294_v62 = vsel %vm2240_vm3, %v9684_v40, %v5180_v12  ;;  %v9685_v43 = vunpack.i.l.bf16 %v9677_v44  ;;  %v9686_v26 = vunpack.i.h.bf16 %v9677_v44 }
 0x171   :  { %9683 = vst [vmem:[#allocation22_spill] sm:$0xff] %v8008_v49  ;;  %4017 = vmatmul.mubr.f32.vlgmr.msra.gmra.mrb[32].mxu1 %v7591_v56  ;;  %1499 = vmatprep.mubr.f32.mxu0 %v9564_v13  ;;  %v9690_v56 = vld [vmem:[#allocation25_spill] sm:$0xff]  ;;  %v9691_v12 = vunpack.i.h.bf16 %v7984_v27  ;;  %v9692_v40 = vunpack.i.h.bf16 %v8008_v49  ;;  %v4476_v42 = vpack.c.bf16 %v2278_v19, %v2277_v57 }
 0x172   :  { %v8026_v15 = vsel %vm2240_vm3, %v9685_v43, %v5194_v48  ;;  %v8032_v3 = vsel %vm2240_vm3, %v9686_v26, %v5195_v2  ;;  %4469 = vmatpush1.bf16.msk.msra.mxu1 %vm7993_vm1, %v4467_v24  ;;  %4019 = vmatprep.mubr.f32.mxu1 %v7612_v46  ;;  %v8039_v55 = vpop.permute.xlu1 %5412  ;;  %v9688_v43 = vunpack.i.h.bf16 %v9678_v53  ;;  %v2279_v26 = vsel %vm2240_vm3, %v5194_v48, %v9689_v54  ;;  %v9696_v53 = vld [vmem:[#allocation29_spill] sm:$0xff] }
 0x173   :  { %9687 = vst [vmem:[#allocation23_spill] sm:$0xff] %v8039_v55  ;;  %4472 = vmatprep.subr.msk.bf16.mxu1 %vm7727_vm13, %v4470_v31  ;;  %v2350_v55 = vsel %vm2240_vm3, %v9692_v40, %v9691_v12  ;;  %v9694_v54 = vunpack.i.l.bf16 %v7984_v27  ;;  %v9695_v48 = vunpack.i.l.bf16 %v8008_v49  ;;  %v4485_v57 = vpack.c.bf16 %v8032_v3, %v8026_v15  ;;  %v9701_v12 = vld [vmem:[#allocation28_spill] sm:$0xff] }
 0x174   :  { %v2280_v45 = vsel %vm2240_vm3, %v5195_v2, %v9688_v43  ;;  %v9693_v2 = vld [vmem:[#allocation26_spill] sm:$0xff]  ;;  %1500 = vmatmul.mubr.f32.gmra.mrb[18].mxu0 %v7765_v63  ;;  %v8068_v24 = vpop.permute.xlu0 %5407  ;;  %v5225_v40 = vunpack.i.h.bf16 %v9701_v12 }
 0x175   :  { %v5210_v43 = vunpack.i.h.bf16 %v9693_v2  ;;  %v5209_v44 = vunpack.i.l.bf16 %v9693_v2  ;;  %v2349_v31 = vsel %vm2240_vm3, %v9695_v48, %v9694_v54  ;;  %4020 = vmatmul.mubr.f32.gmra.mrb[34].mxu1 %v7643_v8  ;;  %1505 = vmatprep.mubr.f32.mxu0 %v9564_v13  ;;  %v4479_v54 = vpack.c.bf16 %v2294_v62, %v2293_v17 }
 0x176   :  { %v8074_v2 = vpack.c.bf16 %v2350_v55, %v2349_v31  ;;  %4475 = vmatpush1.bf16.msk.msra.mxu1 %vm7993_vm1, %v4473_v39  ;;  %4022 = vmatprep.mubr.f32.mxu1 %v7660_v50  ;;  %v8079_v46 = vpop.permute.xlu1 %5422  ;;  %v4482_v19 = vpack.c.bf16 %v2280_v45, %v2279_v26  ;;  %v9699_v48 = vunpack.i.h.bf16 %v9690_v56  ;;  %v9700_v31 = vunpack.i.l.bf16 %v9690_v56  ;;  %v9706_v26 = vld [vmem:[#allocation32_spill] sm:$0xff] }
 0x177   :  { %9698 = vst [vmem:[#allocation2_spill] sm:$0xff] %v8079_v46  ;;  %4478 = vmatprep.subr.msk.bf16.mxu1 %vm7727_vm13, %v4476_v42  ;;  %v5224_v17 = vunpack.i.l.bf16 %v9701_v12  ;;  %v9702_v42 = vunpack.i.l.bf16 %v9696_v53  ;;  %v9703_v62 = vunpack.i.h.bf16 %v9696_v53  ;;  %v9709_v49 = vunpack.i.l.bf16 %v8079_v46 }
 0x178   :  { %9697 = vst [vmem:[#allocation13_spill] sm:$0xff] %v8074_v2  ;;  %v2282_v55 = vsel %vm2240_vm3, %v5210_v43, %v9699_v48  ;;  %v2281_v39 = vsel %vm2240_vm3, %v5209_v44, %v9700_v31  ;;  %1506 = vmatmul.mubr.f32.gmra.mrb[20].mxu0 %v7786_v58  ;;  %v8096_v3 = vpop.permute.xlu0 %5417  ;;  %v9704_v48 = vld [vmem:[#allocation31_spill] sm:$0xff]  ;;  %v9707_v2 = vunpack.i.h.bf16 %v8079_v46  ;;  %v5255_v50 = vunpack.i.h.bf16 %v7321_v41 }
 0x179   :  { %v2297_v15 = vsel %vm2240_vm3, %v9702_v42, %v5209_v44  ;;  %v2298_v45 = vsel %vm2240_vm3, %v9703_v62, %v5210_v43  ;;  %4023 = vmatmul.mubr.f32.gmra.mrb[36].mxu1 %v7687_v7  ;;  %1511 = vmatprep.mubr.f32.mxu0 %v9564_v13  ;;  %v9530_v12 = vunpack.i.h.bf16 %v8096_v3  ;;  %v9705_v42 = vld [vmem:[#allocation30_spill] sm:$0xff]  ;;  %v9708_v44 = vld [vmem:[#allocation33_spill] sm:$0xff]  ;;  %v9710_v7 = vunpack.i.l.bf16 %v8096_v3 }
 0x17a   :  { %4481 = vmatpush1.bf16.msk.msra.mxu1 %vm7993_vm1, %v4479_v54  ;;  %4025 = vmatprep.mubr.f32.mxu1 %v7700_v20  ;;  %v5240_v43 = vunpack.i.h.bf16 %v9708_v44  ;;  %v5239_v62 = vunpack.i.l.bf16 %v9708_v44  ;;  %v4488_v20 = vpack.c.bf16 %v2282_v55, %v2281_v39  ;;  %v9711_v44 = vunpack.i.h.bf16 %v9704_v48  ;;  %v9717_v55 = vld [vmem:[#allocation34_spill] sm:$0xff] }
 0x17b   :  { %4484 = vmatprep.subr.msk.bf16.mxu1 %vm7727_vm13, %v4482_v19  ;;  %v2352_v54 = vsel %vm2240_vm3, %v9530_v12, %v9707_v2  ;;  %v2351_v19 = vsel %vm2240_vm3, %v9710_v7, %v9709_v49  ;;  %v9533_v2 = vunpack.i.h.bf16 %v7361_v60  ;;  %v9712_v46 = vunpack.i.l.bf16 %v9704_v48 }
 0x17c   :  { %1512 = vmatmul.mubr.f32.gmra.mrb[22].mxu0 %v7807_v36  ;;  %v8142_v12 = vpack.c.bf16 %v2352_v54, %v2351_v19  ;;  %v2284_v31 = vsel %vm2240_vm3, %v5225_v40, %v9711_v44  ;;  %v5254_v49 = vunpack.i.l.bf16 %v7321_v41  ;;  %v4491_v39 = vpack.c.bf16 %v2298_v45, %v2297_v15 }
 0x17d   :  { %4026 = vmatmul.mubr.f32.gmra.mrb[38].mxu1 %v7724_v37  ;;  %1517 = vmatprep.mubr.f32.mxu0 %v9564_v13  ;;  %v2283_v7 = vsel %vm2240_vm3, %v5224_v17, %v9712_v46  ;;  %v9713_v54 = vunpack.i.l.bf16 %v9705_v42  ;;  %v9714_v44 = vunpack.i.h.bf16 %v9705_v42  ;;  %v9715_v41 = vunpack.i.h.bf16 %v9706_v26 }
 0x17e   :  { %4487 = vmatpush1.bf16.msk.msra.mxu1 %vm7993_vm1, %v4485_v57  ;;  %4028 = vmatprep.mubr.f32.mxu1 %v7743_v30  ;;  %v9716_v15 = vunpack.i.l.bf16 %v9706_v26 }
 0x17f   :  { %v2299_v19 = vsel %vm2240_vm3, %v9713_v54, %v5224_v17  ;;  %v2300_v46 = vsel %vm2240_vm3, %v9714_v44, %v5225_v40  ;;  %4490 = vmatprep.subr.msk.bf16.mxu1 %vm7727_vm13, %v4488_v20  ;;  %v2286_v57 = vsel %vm2240_vm3, %v5240_v43, %v9715_v41  ;;  %v4494_v40 = vpack.c.bf16 %v2284_v31, %v2283_v7 }
 0x180   :  { %v2285_v45 = vsel %vm2240_vm3, %v5239_v62, %v9716_v15  ;;  %1518 = vmatmul.mubr.f32.gmra.mrb[24].mxu0 %v7828_v61  ;;  %v2288_v41 = vsel %vm2240_vm3, %v5255_v50, %v9533_v2  ;;  %v9718_v15 = vunpack.i.l.bf16 %v7361_v60  ;;  %v9534_v20 = vunpack.i.l.bf16 %v7428_v32 }
 0x181   :  { %4029 = vmatmul.mubr.f32.gmra.mrb[40].mxu1 %v7765_v63  ;;  %1523 = vmatprep.mubr.f32.mxu0 %v9564_v13  ;;  %v4500_v2 = vpack.c.bf16 %v2286_v57, %v2285_v45  ;;  %v4497_v54 = vpack.c.bf16 %v2300_v46, %v2299_v19  ;;  %v9720_v7 = vunpack.i.h.bf16 %v9717_v55  ;;  %v9722_v45 = vunpack.i.h.bf16 %v7352_v0 }
 0x182   :  { %v2287_v17 = vsel %vm2240_vm3, %v5254_v49, %v9718_v15  ;;  %4493 = vmatpush1.bf16.msk.msra.mxu1 %vm7993_vm1, %v4491_v39  ;;  %4031 = vmatprep.mubr.f32.mxu1 %v7786_v58  ;;  %v9719_v15 = vunpack.i.l.bf16 %v9717_v55  ;;  %v9721_v39 = vunpack.i.l.bf16 %v7352_v0 }
 0x183   :  { %4496 = vmatprep.subr.msk.bf16.mxu1 %vm7727_vm13, %v4494_v40  ;;  %v2302_v44 = vsel %vm2240_vm3, %v9720_v7, %v5240_v43  ;;  %v2304_v19 = vsel %vm2240_vm3, %v9722_v45, %v5255_v50  ;;  %v4506_v46 = vpack.c.bf16 %v2288_v41, %v2287_v17  ;;  %v9724_v43 = vunpack.i.l.bf16 %v7423_v23 }
 0x184   :  { %v2301_v31 = vsel %vm2240_vm3, %v9719_v15, %v5239_v62  ;;  %1524 = vmatmul.mubr.f32.gmra.mrb[26].mxu0 %v7845_v35  ;;  %v2303_v57 = vsel %vm2240_vm3, %v9721_v39, %v5254_v49  ;;  %v9723_v62 = vunpack.i.l.bf16 %v7390_v34  ;;  %v9725_v49 = vunpack.i.h.bf16 %v7390_v34 }
 0x185   :  { %4032 = vmatmul.mubr.f32.gmra.mrb[42].mxu1 %v7807_v36  ;;  %1529 = vmatprep.mubr.f32.mxu0 %v9564_v13  ;;  %v9726_v7 = vunpack.i.h.bf16 %v7423_v23  ;;  %v9727_v17 = vunpack.i.h.bf16 %v7428_v32  ;;  %v9728_v41 = vunpack.i.h.bf16 %v7383_v21  ;;  %v5294_v39 = vunpack.i.l.bf16 %v7447_v33 }
 0x186   :  { %v8224_v40 = vsel %vm2240_vm3, %v9724_v43, %v9723_v62  ;;  %4499 = vmatpush1.bf16.msk.msra.mxu1 %vm7993_vm1, %v4497_v54  ;;  %4034 = vmatprep.mubr.f32.mxu1 %v7828_v61  ;;  %v9729_v34 = vunpack.i.l.bf16 %v7383_v21  ;;  %v5295_v62 = vunpack.i.h.bf16 %v7447_v33  ;;  %v5290_v43 = vunpack.i.h.bf16 %v7452_v14  ;;  %v9731_v54 = vld [vmem:[#allocation8_spill] sm:$0xff] }
 0x187   :  { %v8232_v50 = vsel %vm2240_vm3, %v9726_v7, %v9725_v49  ;;  %v2242_v15 = vsel %vm2240_vm3, %v9728_v41, %v9727_v17  ;;  %v5289_v49 = vunpack.i.l.bf16 %v7452_v14  ;;  %4502 = vmatprep.subr.msk.bf16.mxu1 %vm7727_vm13, %v4500_v2  ;;  %v9730_v7 = vld [vmem:[#allocation6_spill] sm:$0xff]  ;;  %vm3830_vm4 = vcmp.ne.s32.totalorder %v9731_v54, 27 }
 0x188   :  { %v2241_v45 = vsel %vm2240_vm3, %v9729_v34, %v9534_v20  ;;  %vm3829_vm2 = vcmp.ne.s32.totalorder %v9730_v7, 27  ;;  %v4503_v17 = vpack.c.bf16 %v2302_v44, %v2301_v31  ;;  %v5315_v41 = vunpack.i.h.bf16 %v7505_v28  ;;  %1530 = vmatmul.mubr.f32.gmra.mrb[28].mxu0 %v7876_v18  ;;  %vm8364_vm10 = vmpackc.low %vm3830_vm4, %vm3830_vm4 }
 0x189   :  { %v4509_v21 = vpack.c.bf16 %v2304_v19, %v2303_v57  ;;  %v5314_v34 = vunpack.i.l.bf16 %v7505_v28  ;;  %v5310_v33 = vunpack.i.h.bf16 %v7516_v52  ;;  %v5309_v20 = vunpack.i.l.bf16 %v7516_v52  ;;  %4035 = vmatmul.mubr.f32.gmra.mrb[44].mxu1 %v7845_v35  ;;  %1535 = vmatprep.mubr.f32.mxu0 %v9564_v13  ;;  %v9733_v28 = vld [vmem:[#allocation5_spill] sm:$0xff]  ;;  %vm8297_vm6 = vmpackc.low %vm3829_vm2, %vm3829_vm2 }
 0x18a   :  { %v4419_v14 = vpack.c.bf16 %v8232_v50, %v8224_v40  ;;  %v8266_v2 = vpack.c.bf16 %v2242_v15, %v2241_v45  ;;  %v9732_v44 = vunpack.i.l.bf16 %v9654_v4  ;;  %4505 = vmatpush1.bf16.msk.msra.mxu1 %vm7993_vm1, %v4503_v17  ;;  %4037 = vmatprep.mubr.f32.mxu1 %v7876_v18  ;;  %vm3826_vm5 = vcmp.ne.s32.totalorder %v9733_v28, 27 }
 0x18b   :  { %v9734_v52 = vunpack.i.h.bf16 %v9654_v4  ;;  %v9735_v19 = vunpack.i.h.bf16 %v9650_v11  ;;  %v9736_v50 = vunpack.i.l.bf16 %v9650_v11  ;;  %v9737_v45 = vunpack.i.l.bf16 %v7471_v1  ;;  %4508 = vmatprep.subr.msk.bf16.mxu1 %vm7727_vm13, %v4506_v46  ;;  %vm8351_vm8 = vmpackc.low %vm3826_vm5, %vm3826_vm5 }
 0x18c   :  { %v2259_v31 = vsel %vm2240_vm3, %v9732_v44, %v5294_v39  ;;  %v9740_v11 = vunpack.i.h.bf16 %v7471_v1  ;;  %v2243_v46 = vsel %vm2240_vm3, %v5294_v39, %v9742_v22  ;;  %v9743_v7 = vunpack.i.h.bf16 %v9663_v38  ;;  %1536 = vmatmul.mubr.f32.gmra.mrb[30].mxu0 %v7932_v59 }
 0x18d   :  { %v2260_v57 = vsel %vm2240_vm3, %v9734_v52, %v5295_v62  ;;  %v2308_v40 = vsel %vm2240_vm3, %v5290_v43, %v9735_v19  ;;  %v2307_v15 = vsel %vm2240_vm3, %v5289_v49, %v9736_v50  ;;  %v2323_v17 = vsel %vm2240_vm3, %v9737_v45, %v5289_v49  ;;  %4038 = vmatmul.mubr.f32.gmra.mrb[46].mxu1 %v7932_v59 }
 0x18e   :  { %v2324_v44 = vsel %vm2240_vm3, %v9740_v11, %v5290_v43  ;;  %v9741_v52 = vunpack.i.h.bf16 %v7476_v29  ;;  %v2262_v19 = vsel %vm2240_vm3, %v9743_v7, %v5315_v41  ;;  %v9744_v1 = vunpack.i.l.bf16 %v9663_v38  ;;  %1767 = vmatprep.mubr.f32.mxu0 %v9564_v13  ;;  %4511 = vmatpush1.bf16.msk.msra.mxu1 %vm7993_vm1, %v4509_v21  ;;  %v9828_v7 = vld [vmem:[#allocation44_spill] sm:$0xff] }
 0x18f   :  { %v9745_v50 = vunpack.i.l.bf16 %v9675_v16  ;;  %v9747_v45 = vunpack.i.l.bf16 %v7537_v10  ;;  %v9748_v11 = vunpack.i.h.bf16 %v7537_v10  ;;  %v5334_v22 = vunpack.i.l.bf16 %v7572_v51  ;;  %2707 = vmatprep.mubr.f32.mxu1 %v9564_v13  ;;  %v8359_v10 = vld [vmem:[%s9399_s0 + $0x100] sm:$0xff]  ;;  %4608 = vmatprep.subr.msk.bf16.mxu1 %vm8297_vm6, %v8266_v2 }
 0x190   :  { %v2244_v49 = vsel %vm2240_vm3, %v5295_v62, %v9741_v52  ;;  %v2261_v43 = vsel %vm2240_vm3, %v9744_v1, %v5314_v34  ;;  %v9746_v62 = vunpack.i.h.bf16 %v9675_v16  ;;  %v5335_v16 = vunpack.i.h.bf16 %v7572_v51  ;;  %1768 = vmatmul.mubr.f32.vlgmr.msra.gmra.mrb[32].mxu0 %v7556_v47 }
 0x191   :  { %v2309_v29 = vsel %vm2240_vm3, %v5309_v20, %v9745_v50  ;;  %v8336_v38 = vsel %vm2240_vm3, %v9747_v45, %v5309_v20  ;;  %v8342_v52 = vsel %vm2240_vm3, %v9748_v11, %v5310_v33  ;;  %v8368_v25 = vpack.c.bf16 %v2260_v57, %v2259_v31  ;;  %4421 = vmatpush1.bf16.msk.msra.mxu0 %vm8351_vm8, %v4419_v14  ;;  %v9760_v14 = vld [vmem:[#allocation35_spill] sm:$0xff] }
 0x192   :  { %v2310_v39 = vsel %vm2240_vm3, %v5310_v33, %v9746_v62  ;;  %v4422_v20 = vpack.c.bf16 %v2308_v40, %v2307_v15  ;;  %v5330_v21 = vunpack.i.h.bf16 %v7581_v5  ;;  %v5329_v33 = vunpack.i.l.bf16 %v7581_v5  ;;  %2708 = vmatmul.mubr.f32.vlgmr.msra.gmra.mrb[0].mxu1 %v8359_v10  ;;  %v9761_v62 = vld [vmem:[#allocation21_spill] sm:$0xff]  ;;  %1773 = vmatprep.mubr.f32.mxu0 %v9564_v13 }
 0x193   :  { %v4425_v28 = vpack.c.bf16 %v2324_v44, %v2323_v17  ;;  %v8375_v1 = vpack.c.bf16 %v2244_v49, %v2243_v46  ;;  %v9753_v54 = vunpack.i.h.bf16 %v7546_v6  ;;  %v9754_v31 = vunpack.i.l.bf16 %v7546_v6  ;;  %v9755_v17 = vld [vmem:[#allocation24_spill] sm:$0xff]  ;;  %v9758_v44 = vld [vmem:[#allocation43_spill] sm:$0xff]  ;;  %4616 = vmatpush1.bf16.msk.msra.mxu1 %vm8364_vm10, %v9760_v14  ;;  %2713 = vmatprep.mubr.f32.mxu1 %v9564_v13 }
 0x194   :  { %v8386_v5 = vpack.c.bf16 %v2262_v19, %v2261_v43  ;;  %v4428_v40 = vpack.c.bf16 %v2310_v39, %v2309_v29  ;;  %v4431_v15 = vpack.c.bf16 %v8342_v52, %v8336_v38  ;;  %v5350_v49 = vunpack.i.h.bf16 %v9758_v44  ;;  %4424 = vmatprep.subr.msk.bf16.mxu0 %vm7943_vm0, %v4422_v20  ;;  %v8411_v43 = vld [vmem:[%s9399_s0 + $0x108] sm:$0xff] }
 0x195   :  { %v2246_v50 = vsel %vm2240_vm3, %v5315_v41, %v9753_v54  ;;  %v2245_v57 = vsel %vm2240_vm3, %v5314_v34, %v9754_v31  ;;  %v9756_v41 = vunpack.i.l.bf16 %v9755_v17  ;;  %v9757_v34 = vunpack.i.h.bf16 %v9755_v17  ;;  %v9764_v52 = vld [vmem:[#allocation39_spill] sm:$0xff]  ;;  %4609 = vmatprep.subr.msk.bf16.mxu1 %vm8297_vm6, %v8375_v1  ;;  %4427 = vmatpush1.bf16.msk.msra.mxu0 %vm8351_vm8, %v4425_v28 }
 0x196   :  { %v5349_v46 = vunpack.i.l.bf16 %v9758_v44  ;;  %v8413_v29 = vpack.c.bf16 %v2246_v50, %v2245_v57  ;;  %v9762_v39 = vunpack.i.h.bf16 %v9761_v62  ;;  %v9763_v38 = vunpack.i.l.bf16 %v9761_v62  ;;  %v9767_v57 = vld [vmem:[#allocation42_spill] sm:$0xff]  ;;  %v9769_v62 = vld [vmem:[#allocation40_spill] sm:$0xff]  ;;  %2714 = vmatmul.mubr.f32.gmra.mrb[2].mxu1 %v8411_v43  ;;  %4430 = vmatprep.subr.msk.bf16.mxu0 %vm7943_vm0, %v4428_v40 }
 0x197   :  { %v2263_v6 = vsel %vm2240_vm3, %v9756_v41, %v5334_v22  ;;  %v2264_v47 = vsel %vm2240_vm3, %v9757_v34, %v5335_v16  ;;  %v9765_v20 = vunpack.i.l.bf16 %v9764_v52  ;;  %v9766_v50 = vunpack.i.h.bf16 %v9764_v52  ;;  %v9768_v34 = vld [vmem:[#allocation38_spill] sm:$0xff]  ;;  %4617 = vmatpush1.bf16.msk.msra.mxu1 %vm8364_vm10, %v8368_v25  ;;  %2719 = vmatprep.mubr.f32.mxu1 %v9564_v13 }
 0x198   :  { %v2312_v45 = vsel %vm2240_vm3, %v5330_v21, %v9762_v39  ;;  %v2311_v11 = vsel %vm2240_vm3, %v5329_v33, %v9763_v38  ;;  %v5355_v17 = vunpack.i.h.bf16 %v9767_v57  ;;  %v5354_v41 = vunpack.i.l.bf16 %v9767_v57  ;;  %1774 = vmatmul.mubr.f32.gmra.mrb[34].mxu0 %v9768_v34  ;;  %4610 = vmatprep.subr.msk.bf16.mxu1 %vm8297_vm6, %v8413_v29 }
 0x199   :  { %v2327_v54 = vsel %vm2240_vm3, %v9765_v20, %v5329_v33  ;;  %v2328_v31 = vsel %vm2240_vm3, %v9766_v50, %v5330_v21  ;;  %v8439_v44 = vpack.c.bf16 %v2264_v47, %v2263_v6  ;;  %v9770_v39 = vunpack.i.h.bf16 %v9769_v62  ;;  %v9774_v50 = vld [vmem:[#allocation3_spill] sm:$0xff]  ;;  %1779 = vmatprep.mubr.f32.mxu0 %v9564_v13  ;;  %4433 = vmatpush1.bf16.msk.msra.mxu0 %vm8351_vm8, %v4431_v15  ;;  %v8523_v15 = vld [vmem:[%s9399_s0 + $0x118] sm:$0xff] }
 0x19a   :  { %v9771_v38 = vunpack.i.l.bf16 %v9769_v62  ;;  %v4434_v52 = vpack.c.bf16 %v2312_v45, %v2311_v11  ;;  %v9772_v20 = vunpack.i.l.bf16 %v9696_v53  ;;  %v9773_v47 = vunpack.i.h.bf16 %v9696_v53  ;;  %v9775_v45 = vld [vmem:[#allocation46_spill] sm:$0xff] }
 0x19b   :  { %v2248_v33 = vsel %vm2240_vm3, %v5335_v16, %v9770_v39  ;;  %v5370_v57 = vunpack.i.h.bf16 %v9774_v50  ;;  %v4437_v28 = vpack.c.bf16 %v2328_v31, %v2327_v54  ;;  %v9776_v53 = vunpack.i.h.bf16 %v9775_v45  ;;  %4618 = vmatpush1.bf16.msk.msra.mxu1 %vm8364_vm10, %v8386_v5 }
 0x19c   :  { %v2247_v21 = vsel %vm2240_vm3, %v5334_v22, %v9771_v38  ;;  %v2313_v6 = vsel %vm2240_vm3, %v5349_v46, %v9772_v20  ;;  %v2314_v16 = vsel %vm2240_vm3, %v5350_v49, %v9773_v47  ;;  %v8469_v22 = vld [vmem:[%s9399_s0 + $0x110] sm:$0xff]  ;;  %v9777_v34 = vunpack.i.l.bf16 %v9775_v45  ;;  %v9780_v47 = vld [vmem:[#allocation41_spill] sm:$0xff]  ;;  %4436 = vmatprep.subr.msk.bf16.mxu0 %vm7943_vm0, %v4434_v52 }
 0x19d   :  { %v2250_v11 = vsel %vm2240_vm3, %v5355_v17, %v9776_v53  ;;  %v5369_v62 = vunpack.i.l.bf16 %v9774_v50  ;;  %v8482_v39 = vpack.c.bf16 %v2248_v33, %v2247_v21  ;;  %v9778_v54 = vunpack.i.h.bf16 %v9690_v56  ;;  %1780 = vmatmul.mubr.f32.gmra.mrb[36].mxu0 %v9780_v47  ;;  %v9781_v45 = vld [vmem:[#allocation45_spill] sm:$0xff]  ;;  %2720 = vmatmul.mubr.f32.gmra.mrb[4].mxu1 %v8469_v22 }
 0x19e   :  { %v2249_v40 = vsel %vm2240_vm3, %v5354_v41, %v9777_v34  ;;  %v9779_v38 = vunpack.i.l.bf16 %v9690_v56  ;;  %v4440_v50 = vpack.c.bf16 %v2314_v16, %v2313_v6  ;;  %v9782_v33 = vunpack.i.l.bf16 %v9781_v45  ;;  %1785 = vmatprep.mubr.f32.mxu0 %v9564_v13  ;;  %2725 = vmatprep.mubr.f32.mxu1 %v9564_v13 }
 0x19f   :  { %v2266_v31 = vsel %vm2240_vm3, %v9778_v54, %v5355_v17  ;;  %v9783_v53 = vunpack.i.h.bf16 %v9781_v45  ;;  %v8507_v17 = vpack.c.bf16 %v2250_v11, %v2249_v40  ;;  %v9785_v16 = vunpack.i.h.bf16 %v9705_v42  ;;  %v9787_v40 = vld [vmem:[#allocation10_spill] sm:$0xff]  ;;  %v9790_v45 = vld [vmem:[#allocation11_spill] sm:$0xff]  ;;  %4611 = vmatprep.subr.msk.bf16.mxu1 %vm8297_vm6, %v8482_v39  ;;  %4439 = vmatpush1.bf16.msk.msra.mxu0 %vm8351_vm8, %v4437_v28 }
 0x1a0   :  { %v2265_v20 = vsel %vm2240_vm3, %v9779_v38, %v5354_v41  ;;  %v2329_v21 = vsel %vm2240_vm3, %v9782_v33, %v5349_v46  ;;  %v9784_v41 = vld [vmem:[#allocation27_spill] sm:$0xff]  ;;  %v9788_v54 = vunpack.i.l.bf16 %v9787_v40  ;;  %v9789_v52 = vunpack.i.h.bf16 %v9787_v40  ;;  %4442 = vmatprep.subr.msk.bf16.mxu0 %vm7943_vm0, %v4440_v50  ;;  %4619 = vmatpush1.bf16.msk.msra.mxu1 %vm8364_vm10, %v8439_v44  ;;  %v8575_v28 = vld [vmem:[%s9399_s0 + $0x120] sm:$0xff] }
 0x1a1   :  { %v2330_v56 = vsel %vm2240_vm3, %v9783_v53, %v5350_v49  ;;  %v5375_v34 = vunpack.i.h.bf16 %v9784_v41  ;;  %v5374_v6 = vunpack.i.l.bf16 %v9784_v41  ;;  %v2316_v46 = vsel %vm2240_vm3, %v5370_v57, %v9785_v16  ;;  %1786 = vmatmul.mubr.f32.gmra.mrb[38].mxu0 %v7643_v8  ;;  %2726 = vmatmul.mubr.f32.gmra.mrb[6].mxu1 %v8523_v15 }
 0x1a2   :  { %v9786_v49 = vunpack.i.l.bf16 %v9705_v42  ;;  %v2331_v38 = vsel %vm2240_vm3, %v9788_v54, %v5369_v62  ;;  %v2332_v47 = vsel %vm2240_vm3, %v9789_v52, %v5370_v57  ;;  %v9791_v33 = vunpack.i.h.bf16 %v9790_v45  ;;  %1791 = vmatprep.mubr.f32.mxu0 %v9564_v13  ;;  %2731 = vmatprep.mubr.f32.mxu1 %v9564_v13 }
 0x1a3   :  { %v9792_v53 = vunpack.i.l.bf16 %v9790_v45  ;;  %v4443_v57 = vpack.c.bf16 %v2330_v56, %v2329_v21  ;;  %v8556_v40 = vpack.c.bf16 %v2266_v31, %v2265_v20  ;;  %v9794_v54 = vunpack.i.l.bf16 %v9704_v48  ;;  %4612 = vmatprep.subr.msk.bf16.mxu1 %vm8297_vm6, %v8507_v17 }
 0x1a4   :  { %v2315_v11 = vsel %vm2240_vm3, %v5369_v62, %v9786_v49  ;;  %v2252_v42 = vsel %vm2240_vm3, %v5375_v34, %v9791_v33  ;;  %v9793_v62 = vld [vmem:[#allocation9_spill] sm:$0xff]  ;;  %v9795_v45 = vunpack.i.h.bf16 %v9704_v48  ;;  %v9796_v33 = vld [vmem:[#allocation16_spill] sm:$0xff]  ;;  %v4449_v20 = vpack.c.bf16 %v2332_v47, %v2331_v38  ;;  %v9800_v47 = vld [vmem:[#allocation47_spill] sm:$0xff] }
 0x1a5   :  { %v2251_v41 = vsel %vm2240_vm3, %v5374_v6, %v9792_v53  ;;  %v5390_v16 = vunpack.i.h.bf16 %v9793_v62  ;;  %v5389_v49 = vunpack.i.l.bf16 %v9793_v62  ;;  %v2267_v52 = vsel %vm2240_vm3, %v9794_v54, %v5374_v6  ;;  %1792 = vmatmul.mubr.f32.gmra.mrb[40].mxu0 %v9800_v47  ;;  %2732 = vmatmul.mubr.f32.gmra.mrb[8].mxu1 %v8575_v28 }
 0x1a6   :  { %v2268_v8 = vsel %vm2240_vm3, %v9795_v45, %v5375_v34  ;;  %v5395_v53 = vunpack.i.h.bf16 %v9796_v33  ;;  %v4446_v31 = vpack.c.bf16 %v2316_v46, %v2315_v11  ;;  %v8577_v48 = vpack.c.bf16 %v2252_v42, %v2251_v41  ;;  %v9802_v41 = vld [vmem:[#allocation22_spill] sm:$0xff]  ;;  %4445 = vmatpush1.bf16.msk.msra.mxu0 %vm8351_vm8, %v4443_v57  ;;  %4620 = vmatpush1.bf16.msk.msra.mxu1 %vm8364_vm10, %v8556_v40 }
 0x1a7   :  { %v5394_v21 = vunpack.i.l.bf16 %v9796_v33  ;;  %v9797_v50 = vunpack.i.l.bf16 %v9717_v55  ;;  %v9798_v34 = vunpack.i.h.bf16 %v9717_v55  ;;  %v9799_v46 = vunpack.i.h.bf16 %v7984_v27  ;;  %1797 = vmatprep.mubr.f32.mxu0 %v9564_v13  ;;  %2737 = vmatprep.mubr.f32.mxu1 %v9564_v13 }
 0x1a8   :  { %v5410_v38 = vunpack.i.h.bf16 %v8068_v24  ;;  %v9801_v42 = vunpack.i.l.bf16 %v7984_v27  ;;  %v9803_v62 = vunpack.i.h.bf16 %v9802_v41  ;;  %v5409_v33 = vunpack.i.l.bf16 %v8068_v24  ;;  %4448 = vmatprep.subr.msk.bf16.mxu0 %vm7943_vm0, %v4446_v31  ;;  %v8629_v24 = vld [vmem:[%s9399_s0 + $0x128] sm:$0xff]  ;;  %4613 = vmatprep.subr.msk.bf16.mxu1 %vm8297_vm6, %v8577_v48 }
 0x1a9   :  { %v2317_v56 = vsel %vm2240_vm3, %v5389_v49, %v9797_v50  ;;  %v2318_v6 = vsel %vm2240_vm3, %v5390_v16, %v9798_v34  ;;  %v2334_v11 = vsel %vm2240_vm3, %v9799_v46, %v5390_v16  ;;  %v9804_v16 = vunpack.i.l.bf16 %v9802_v41  ;;  %v9807_v34 = vld [vmem:[#allocation23_spill] sm:$0xff]  ;;  %v9809_v41 = vld [vmem:[#allocation49_spill] sm:$0xff]  ;;  %2738 = vmatmul.mubr.f32.gmra.mrb[10].mxu1 %v8629_v24 }
 0x1aa   :  { %v2333_v55 = vsel %vm2240_vm3, %v9801_v42, %v5389_v49  ;;  %v2254_v54 = vsel %vm2240_vm3, %v5395_v53, %v9803_v62  ;;  %v8615_v27 = vpack.c.bf16 %v2268_v8, %v2267_v52  ;;  %v9805_v49 = vunpack.i.h.bf16 %v9706_v26  ;;  %1798 = vmatmul.mubr.f32.gmra.mrb[42].mxu0 %v9809_v41  ;;  %2743 = vmatprep.mubr.f32.mxu1 %v9564_v13 }
 0x1ab   :  { %v2253_v45 = vsel %vm2240_vm3, %v5394_v21, %v9804_v16  ;;  %v9806_v57 = vunpack.i.l.bf16 %v9706_v26  ;;  %v4452_v8 = vpack.c.bf16 %v2318_v6, %v2317_v56  ;;  %v5414_v46 = vunpack.i.l.bf16 %v9807_v34  ;;  %4451 = vmatpush1.bf16.msk.msra.mxu0 %vm8351_vm8, %v4449_v20  ;;  %1803 = vmatprep.mubr.f32.mxu0 %v9564_v13 }
 0x1ac   :  { %v2270_v50 = vsel %vm2240_vm3, %v9805_v49, %v5395_v53  ;;  %v5415_v53 = vunpack.i.h.bf16 %v9807_v34  ;;  %v4455_v31 = vpack.c.bf16 %v2334_v11, %v2333_v55  ;;  %v8639_v47 = vpack.c.bf16 %v2254_v54, %v2253_v45  ;;  %4621 = vmatpush1.bf16.msk.msra.mxu1 %vm8364_vm10, %v8615_v27  ;;  %v8680_v45 = vld [vmem:[%s9399_s0 + $0x130] sm:$0xff] }
 0x1ad   :  { %v2269_v52 = vsel %vm2240_vm3, %v9806_v57, %v5394_v21  ;;  %v9808_v42 = vunpack.i.h.bf16 %v7352_v0  ;;  %v9810_v21 = vunpack.i.l.bf16 %v7352_v0  ;;  %v9811_v6 = vunpack.i.h.bf16 %v8096_v3  ;;  %4454 = vmatprep.subr.msk.bf16.mxu0 %vm7943_vm0, %v4452_v8  ;;  %v9813_v0 = vld [vmem:[#allocation2_spill] sm:$0xff]  ;;  %2744 = vmatmul.mubr.f32.gmra.mrb[12].mxu1 %v8680_v45 }
 0x1ae   :  { %v9812_v55 = vunpack.i.l.bf16 %v8096_v3  ;;  %v9814_v20 = vunpack.i.l.bf16 %v9813_v0  ;;  %v9815_v16 = vunpack.i.h.bf16 %v9813_v0  ;;  %v8684_v49 = vpack.c.bf16 %v2270_v50, %v2269_v52  ;;  %4614 = vmatprep.subr.msk.bf16.mxu1 %vm8297_vm6, %v8639_v47  ;;  %2749 = vmatprep.mubr.f32.mxu1 %v9564_v13 }
 0x1af   :  { %v2320_v26 = vsel %vm2240_vm3, %v5410_v38, %v9808_v42  ;;  %v2319_v56 = vsel %vm2240_vm3, %v5409_v33, %v9810_v21  ;;  %v2256_v11 = vsel %vm2240_vm3, %v5415_v53, %v9811_v6  ;;  %v9818_v42 = vunpack.i.h.bf16 %v7361_v60  ;;  %4457 = vmatpush1.bf16.msk.msra.mxu0 %vm8351_vm8, %v4455_v31  ;;  %v8724_v31 = vld [vmem:[%s9399_s0 + $0x138] sm:$0xff] }
 0x1b0   :  { %v2255_v62 = vsel %vm2240_vm3, %v5414_v46, %v9812_v55  ;;  %v2335_v54 = vsel %vm2240_vm3, %v9814_v20, %v5409_v33  ;;  %v2336_v3 = vsel %vm2240_vm3, %v9815_v16, %v5410_v38  ;;  %v4458_v57 = vpack.c.bf16 %v2320_v26, %v2319_v56  ;;  %v9816_v33 = vld [vmem:[#allocation50_spill] sm:$0xff]  ;;  %v9819_v26 = vld [vmem:[#allocation7_spill] sm:$0xff]  ;;  %4622 = vmatpush1.bf16.msk.msra.mxu1 %vm8364_vm10, %v8684_v49 }
 0x1b1   :  { %v8686_v8 = vpack.c.bf16 %v2256_v11, %v2255_v62  ;;  %1804 = vmatmul.mubr.f32.gmra.mrb[44].mxu0 %v9816_v33  ;;  %v9817_v38 = vunpack.i.l.bf16 %v7361_v60  ;;  %v2272_v50 = vsel %vm2240_vm3, %v9818_v42, %v5415_v53  ;;  %v4461_v52 = vpack.c.bf16 %v2336_v3, %v2335_v54  ;;  %2750 = vmatmul.mubr.f32.gmra.mrb[14].mxu1 %v8724_v31 }
 0x1b2   :  { %vm3831_vm11 = vcmp.ne.s32.totalorder %v9819_v26, 27  ;;  %v9820_v41 = vunpack.i.h.bf16 %v7423_v23  ;;  %v9821_v21 = vunpack.i.h.bf16 %v7428_v32  ;;  %v9822_v60 = vunpack.i.l.bf16 %v7423_v23  ;;  %4460 = vmatprep.subr.msk.bf16.mxu0 %vm7943_vm0, %v4458_v57  ;;  %1809 = vmatprep.mubr.f32.mxu0 %v9564_v13 }
 0x1b3   :  { %v2271_v34 = vsel %vm2240_vm3, %v9817_v38, %v5414_v46  ;;  %v9823_v56 = vunpack.i.l.bf16 %v7428_v32  ;;  %4615 = vmatprep.subr.msk.bf16.mxu1 %vm8297_vm6, %v8686_v8  ;;  %vm8734_vm7 = vmpackc.low %vm3831_vm11, %vm3831_vm11  ;;  %4463 = vmatpush1.bf16.msk.msra.mxu0 %vm8351_vm8, %v4461_v52 }
 0x1b4   :  { %v2338_v46 = vsel %vm2240_vm3, %v9821_v21, %v9820_v41  ;;  %v8728_v23 = vpack.c.bf16 %v2272_v50, %v2271_v34  ;;  %4514 = vmatprep.subr.msk.bf16.mxu0 %vm8297_vm6, %v8266_v2  ;;  %2755 = vmatprep.mubr.f32.mxu1 %v9564_v13  ;;  %v8763_v2 = vld [vmem:[%s9399_s0 + $0x148] sm:$0xff] }
 0x1b5   :  { %v2337_v53 = vsel %vm2240_vm3, %v9823_v56, %v9822_v60  ;;  %1810 = vmatmul.mubr.f32.gmra.mrb[46].mxu0 %v7724_v37  ;;  %v8750_v37 = vld [vmem:[%s9399_s0 + $0x140] sm:$0xff] }
 0x1b6   :  { %v4560_v32 = vpack.c.bf16 %v2338_v46, %v2337_v53  ;;  %4623 = vmatpush1.bf16.msk.msra.mxu1 %vm8364_vm10, %v8728_v23  ;;  %1815 = vmatprep.mubr.f32.mxu0 %v9564_v13 }
 0x1b7   :  { %2756 = vmatmul.mubr.f32.gmra.mrb[16].mxu1 %v8750_v37 }
 0x1b8   :  { %4562 = vmatprep.subr.msk.bf16.mxu1 %vm8734_vm7, %v4560_v32  ;;  %2761 = vmatprep.mubr.f32.mxu1 %v9564_v13 }
 0x1b9   :  { %1816 = vmatmul.mubr.f32.gmra.mrb[48].mxu0 %v7743_v30  ;;  %v8772_v30 = vld [vmem:[%s9399_s0 + $0x150] sm:$0xff] }
 0x1ba   :  { %1821 = vmatprep.mubr.f32.mxu0 %v9564_v13 }
 0x1bb   :  { %2762 = vmatmul.mubr.f32.gmra.mrb[18].mxu1 %v8763_v2 }
 0x1bc   :  { %2767 = vmatprep.mubr.f32.mxu1 %v9564_v13 }
 0x1bd   :  { %1822 = vmatmul.mubr.f32.gmra.mrb[50].mxu0 %v7765_v63  ;;  %v8781_v63 = vld [vmem:[%s9399_s0 + $0x158] sm:$0xff] }
 0x1be   :  { %1827 = vmatprep.mubr.f32.mxu0 %v9564_v13 }
 0x1bf   :  { %2768 = vmatmul.mubr.f32.gmra.mrb[20].mxu1 %v8772_v30 }
 0x1c0   :  { %2773 = vmatprep.mubr.f32.mxu1 %v9564_v13 }
 0x1c1   :  { %1828 = vmatmul.mubr.f32.gmra.mrb[52].mxu0 %v7786_v58  ;;  %v8790_v58 = vld [vmem:[%s9399_s0 + $0x160] sm:$0xff] }
 0x1c2   :  { %1833 = vmatprep.mubr.f32.mxu0 %v9564_v13 }
 0x1c3   :  { %2774 = vmatmul.mubr.f32.gmra.mrb[22].mxu1 %v8781_v63 }
 0x1c4   :  { %2779 = vmatprep.mubr.f32.mxu1 %v9564_v13 }
 0x1c5   :  { %1834 = vmatmul.mubr.f32.gmra.mrb[54].mxu0 %v7807_v36  ;;  %v8799_v36 = vld [vmem:[%s9399_s0 + $0x168] sm:$0xff] }
 0x1c6   :  { %1839 = vmatprep.mubr.f32.mxu0 %v9564_v13 }
 0x1c7   :  { %2780 = vmatmul.mubr.f32.gmra.mrb[24].mxu1 %v8790_v58 }
 0x1c8   :  { %2785 = vmatprep.mubr.f32.mxu1 %v9564_v13 }
 0x1c9   :  { %1840 = vmatmul.mubr.f32.gmra.mrb[56].mxu0 %v7828_v61  ;;  %v8808_v61 = vld [vmem:[%s9399_s0 + $0x170] sm:$0xff] }
 0x1ca   :  { %1845 = vmatprep.mubr.f32.mxu0 %v9564_v13 }
 0x1cb   :  { %2786 = vmatmul.mubr.f32.gmra.mrb[26].mxu1 %v8799_v36 }
 0x1cc   :  { %2791 = vmatprep.mubr.f32.mxu1 %v9564_v13 }
 0x1cd   :  { %1846 = vmatmul.mubr.f32.gmra.mrb[58].mxu0 %v7845_v35  ;;  %v8817_v35 = vld [vmem:[%s9399_s0 + $0x178] sm:$0xff] }
 0x1ce   :  { %1851 = vmatprep.mubr.f32.mxu0 %v9564_v13 }
 0x1cf   :  { %2792 = vmatmul.mubr.f32.gmra.mrb[28].mxu1 %v8808_v61 }
 0x1d0   :  { %2797 = vmatprep.mubr.f32.mxu1 %v9564_v13 }
 0x1d1   :  { %1852 = vmatmul.mubr.f32.gmra.mrb[60].mxu0 %v7876_v18  ;;  %v9826_v18 = vld [vmem:[#allocation36_spill] sm:$0xff] }
 0x1d2   :  { %1857 = vmatprep.mubr.f32.mxu0 %v9564_v13 }
 0x1d3   :  { %2798 = vmatmul.mubr.f32.gmra.mrb[30].mxu1 %v8817_v35 }
 0x1d4   :  { %2892 = vmatprep.mubr.f32.mxu1 %v9564_v13 }
 0x1d5   :  { %1858 = vmatmul.mubr.f32.gmra.mrb[62].mxu0 %v7932_v59  ;;  %v9827_v59 = vld [vmem:[#allocation37_spill] sm:$0xff] }
 0x1d6   :  { %2546 = vmatprep.mubr.f32.mxu0 %v9564_v13 }
 0x1d7   :  { %2893 = vmatmul.mubr.f32.vlgmr.msra.gmra.mrb[48].mxu1 %v8575_v28 }
 0x1d8   :  { %4565 = vmatpush3.bf16.msk.msra.mxu1 %vm8734_vm7, %v4560_v32  ;;  %2898 = vmatprep.mubr.f32.mxu1 %v9564_v13 }
 0x1d9   :  { %2547 = vmatmul.mubr.f32.vlgmr.msra.gmra.mrb[0].mxu0 %v8359_v10  ;;  %4568 = vmatprep.subr.msk.bf16.mxu1 %vm8734_vm7, %v9826_v18 }
 0x1da   :  { %4517 = vmatpush1.bf16.msk.msra.mxu0 %vm8364_vm10, %v9760_v14  ;;  %2552 = vmatprep.mubr.f32.mxu0 %v9564_v13 }
 0x1db   :  { %4520 = vmatprep.subr.msk.bf16.mxu0 %vm8297_vm6, %v8375_v1  ;;  %2899 = vmatmul.mubr.f32.gmra.mrb[50].mxu1 %v8629_v24  ;;  %v9830_v1 = vld [vmem:[#allocation12_spill] sm:$0xff] }
 0x1dc   :  { %4571 = vmatpush3.bf16.msk.msra.mxu1 %vm8734_vm7, %v9826_v18  ;;  %2904 = vmatprep.mubr.f32.mxu1 %v9564_v13 }
 0x1dd   :  { %2553 = vmatmul.mubr.f32.gmra.mrb[2].mxu0 %v8411_v43  ;;  %4574 = vmatprep.subr.msk.bf16.mxu1 %vm8734_vm7, %v9827_v59 }
 0x1de   :  { %4523 = vmatpush1.bf16.msk.msra.mxu0 %vm8364_vm10, %v8368_v25  ;;  %2558 = vmatprep.mubr.f32.mxu0 %v9564_v13  ;;  %v9829_v25 = vld [vmem:[#allocation48_spill] sm:$0xff] }
 0x1df   :  { %4526 = vmatprep.subr.msk.bf16.mxu0 %vm8297_vm6, %v8413_v29  ;;  %2905 = vmatmul.mubr.f32.gmra.mrb[52].mxu1 %v8680_v45 }
 0x1e0   :  { %4577 = vmatpush3.bf16.msk.msra.mxu1 %vm8734_vm7, %v9827_v59  ;;  %2910 = vmatprep.mubr.f32.mxu1 %v9564_v13 }
 0x1e1   :  { %2559 = vmatmul.mubr.f32.gmra.mrb[4].mxu0 %v8469_v22  ;;  %4580 = vmatprep.subr.msk.bf16.mxu1 %vm8734_vm7, %v9828_v7 }
 0x1e2   :  { %4529 = vmatpush1.bf16.msk.msra.mxu0 %vm8364_vm10, %v8386_v5  ;;  %2564 = vmatprep.mubr.f32.mxu0 %v9564_v13  ;;  %v9831_v5 = vld [vmem:[#allocation13_spill] sm:$0xff] }
 0x1e3   :  { %4532 = vmatprep.subr.msk.bf16.mxu0 %vm8297_vm6, %v8482_v39  ;;  %2911 = vmatmul.mubr.f32.gmra.mrb[54].mxu1 %v8724_v31 }
 0x1e4   :  { %4583 = vmatpush3.bf16.msk.msra.mxu1 %vm8734_vm7, %v9828_v7  ;;  %2916 = vmatprep.mubr.f32.mxu1 %v9564_v13 }
 0x1e5   :  { %2565 = vmatmul.mubr.f32.gmra.mrb[6].mxu0 %v8523_v15  ;;  %4586 = vmatprep.subr.msk.bf16.mxu1 %vm8734_vm7, %v9829_v25 }
 0x1e6   :  { %4535 = vmatpush1.bf16.msk.msra.mxu0 %vm8364_vm10, %v8439_v44  ;;  %2570 = vmatprep.mubr.f32.mxu0 %v9564_v13 }
 0x1e7   :  { %4538 = vmatprep.subr.msk.bf16.mxu0 %vm8297_vm6, %v8507_v17  ;;  %2917 = vmatmul.mubr.f32.gmra.mrb[56].mxu1 %v8750_v37 }
 0x1e8   :  { %4589 = vmatpush3.bf16.msk.msra.mxu1 %vm8734_vm7, %v9829_v25  ;;  %2922 = vmatprep.mubr.f32.mxu1 %v9564_v13 }
 0x1e9   :  { %2571 = vmatmul.mubr.f32.gmra.mrb[8].mxu0 %v8575_v28  ;;  %4592 = vmatprep.subr.msk.bf16.mxu1 %vm8734_vm7, %v9830_v1 }
 0x1ea   :  { %4541 = vmatpush1.bf16.msk.msra.mxu0 %vm8364_vm10, %v8556_v40  ;;  %2576 = vmatprep.mubr.f32.mxu0 %v9564_v13 }
 0x1eb   :  { %4544 = vmatprep.subr.msk.bf16.mxu0 %vm8297_vm6, %v8577_v48  ;;  %2923 = vmatmul.mubr.f32.gmra.mrb[58].mxu1 %v8763_v2 }
 0x1ec   :  { %4595 = vmatpush3.bf16.msk.msra.mxu1 %vm8734_vm7, %v9830_v1  ;;  %2928 = vmatprep.mubr.f32.mxu1 %v9564_v13 }
 0x1ed   :  { %2577 = vmatmul.mubr.f32.gmra.mrb[10].mxu0 %v8629_v24  ;;  %4598 = vmatprep.subr.msk.bf16.mxu1 %vm8734_vm7, %v9831_v5 }
 0x1ee   :  { %4547 = vmatpush1.bf16.msk.msra.mxu0 %vm8364_vm10, %v8615_v27  ;;  %2582 = vmatprep.mubr.f32.mxu0 %v9564_v13 }
 0x1ef   :  { %4550 = vmatprep.subr.msk.bf16.mxu0 %vm8297_vm6, %v8639_v47  ;;  %2929 = vmatmul.mubr.f32.gmra.mrb[60].mxu1 %v8772_v30 }
 0x1f0   :  { %4601 = vmatpush3.bf16.msk.msra.mxu1 %vm8734_vm7, %v9831_v5  ;;  %2934 = vmatprep.mubr.f32.mxu1 %v9564_v13 }
 0x1f1   :  { %2583 = vmatmul.mubr.f32.gmra.mrb[12].mxu0 %v8680_v45  ;;  %4604 = vmatprep.subr.msk.bf16.mxu1 %vm8734_vm7, %v8142_v12 }
 0x1f2   :  { %4553 = vmatpush1.bf16.msk.msra.mxu0 %vm8364_vm10, %v8684_v49  ;;  %2588 = vmatprep.mubr.f32.mxu0 %v9564_v13 }
 0x1f3   :  { %4556 = vmatprep.subr.msk.bf16.mxu0 %vm8297_vm6, %v8686_v8  ;;  %2935 = vmatmul.mubr.f32.gmra.mrb[62].mxu1 %v8781_v63 }
 0x1f4   :  { %4607 = vmatpush3.bf16.msk.msra.mxu1 %vm8734_vm7, %v8142_v12  ;;  %2940 = vmatprep.mubr.f32.mxu1 %v9564_v13 }
 0x1f5   :  { %2589 = vmatmul.mubr.f32.gmra.mrb[14].mxu0 %v8724_v31 }
 0x1f6   :  { %4559 = vmatpush1.bf16.msk.msra.mxu0 %vm8364_vm10, %v8728_v23  ;;  %2594 = vmatprep.mubr.f32.mxu0 %v9564_v13 }
 0x1f7   :  { %2941 = vmatmul.mubr.f32.gmra.mrb[64].mxu1 %v8790_v58 }
 0x1f8   :  { %2946 = vmatprep.mubr.f32.mxu1 %v9564_v13 }
 0x1f9   :  { %2595 = vmatmul.mubr.f32.gmra.mrb[16].mxu0 %v8750_v37 }
 0x1fa   :  { %2600 = vmatprep.mubr.f32.mxu0 %v9564_v13 }
 0x1fb   :  { %2947 = vmatmul.mubr.f32.gmra.mrb[66].mxu1 %v8799_v36 }
 0x1fc   :  { %2952 = vmatprep.mubr.f32.mxu1 %v9564_v13 }
 0x1fd   :  { %2601 = vmatmul.mubr.f32.gmra.mrb[18].mxu0 %v8763_v2 }
 0x1fe   :  { %2606 = vmatprep.mubr.f32.mxu0 %v9564_v13 }
 0x1ff   :  { %2953 = vmatmul.mubr.f32.gmra.mrb[68].mxu1 %v8808_v61 }
 0x200   :  { %2958 = vmatprep.mubr.f32.mxu1 %v9564_v13 }
 0x201   :  { %2607 = vmatmul.mubr.f32.gmra.mrb[20].mxu0 %v8772_v30 }
 0x202   :  { %2612 = vmatprep.mubr.f32.mxu0 %v9564_v13 }
 0x203   :  { %2959 = vmatmul.mubr.f32.gmra.mrb[70].mxu1 %v8817_v35 }
 0x204   :  { %4072 = vmatprep.mubr.f32.mxu1 %v8359_v10 }
 0x205   :  { %2613 = vmatmul.mubr.f32.gmra.mrb[22].mxu0 %v8781_v63 }
 0x206   :  { %2618 = vmatprep.mubr.f32.mxu0 %v9564_v13 }
 0x207   :  { %4073 = vmatmul.mubr.f32.vlgmr.msra.gmra.mrb[32].mxu1 %v8411_v43 }
 0x208   :  { %4075 = vmatprep.mubr.f32.mxu1 %v8469_v22 }
 0x209   :  { %2619 = vmatmul.mubr.f32.gmra.mrb[24].mxu0 %v8790_v58 }
 0x20a   :  { %2624 = vmatprep.mubr.f32.mxu0 %v9564_v13 }
 0x20b   :  { %4076 = vmatmul.mubr.f32.gmra.mrb[34].mxu1 %v8523_v15 }
 0x20c   :  { %4078 = vmatprep.mubr.f32.mxu1 %v8575_v28 }
 0x20d   :  { %2625 = vmatmul.mubr.f32.gmra.mrb[26].mxu0 %v8799_v36 }
 0x20e   :  { %2630 = vmatprep.mubr.f32.mxu0 %v9564_v13 }
 0x20f   :  { %4079 = vmatmul.mubr.f32.gmra.mrb[36].mxu1 %v8629_v24 }
 0x210   :  { %4081 = vmatprep.mubr.f32.mxu1 %v8680_v45 }
 0x211   :  { %2631 = vmatmul.mubr.f32.gmra.mrb[28].mxu0 %v8808_v61 }
 0x212   :  { %2636 = vmatprep.mubr.f32.mxu0 %v9564_v13 }
 0x213   :  { %4082 = vmatmul.mubr.f32.gmra.mrb[38].mxu1 %v8724_v31 }
 0x214   :  { %4084 = vmatprep.mubr.f32.mxu1 %v8750_v37 }
 0x215   :  { %2637 = vmatmul.mubr.f32.gmra.mrb[30].mxu0 %v8817_v35 }
 0x216   :  { %2868 = vmatprep.mubr.f32.mxu0 %v9564_v13 }
 0x217   :  { %4085 = vmatmul.mubr.f32.gmra.mrb[40].mxu1 %v8763_v2 }
 0x218   :  { %4087 = vmatprep.mubr.f32.mxu1 %v8772_v30 }
 0x219   :  { %2869 = vmatmul.mubr.f32.vlgmr.msra.gmra.mrb[32].mxu0 %v8359_v10 }
 0x21a   :  { %2874 = vmatprep.mubr.f32.mxu0 %v9564_v13 }
 0x21b   :  { %4088 = vmatmul.mubr.f32.gmra.mrb[42].mxu1 %v8781_v63 }
 0x21c   :  { %4090 = vmatprep.mubr.f32.mxu1 %v8790_v58 }
 0x21d   :  { %2875 = vmatmul.mubr.f32.gmra.mrb[34].mxu0 %v8411_v43 }
 0x21e   :  { %2880 = vmatprep.mubr.f32.mxu0 %v9564_v13 }
 0x21f   :  { %4091 = vmatmul.mubr.f32.gmra.mrb[44].mxu1 %v8799_v36 }
 0x220   :  { %4093 = vmatprep.mubr.f32.mxu1 %v8808_v61 }
 0x221   :  { %2881 = vmatmul.mubr.f32.gmra.mrb[36].mxu0 %v8469_v22 }
 0x222   :  { %2886 = vmatprep.mubr.f32.mxu0 %v9564_v13 }
 0x223   :  { %4094 = vmatmul.mubr.f32.gmra.mrb[46].mxu1 %v8817_v35 }
 0x225   :  { %2887 = vmatmul.mubr.f32.gmra.mrb[38].mxu0 %v8523_v15 }
 0x265   :  { %v2709_v12 = vpop.f32.mrb[0].mxu1 }
 0x266   :  { %3224 = vst [vmem:[%s9400_s2 + $0x10] sm:$0xff] %v2709_v12  ;;  %v2711_v4 = vpop.f32.mrb[1].mxu1 }
 0x267   :  { %3225 = vst [vmem:[%s9400_s2 + $0x18] sm:$0xff] %v2711_v4 }
 0x269   :  { %v2715_v10 = vpop.f32.mrb[2].mxu1 }
 0x26a   :  { %3231 = vst [vmem:[%s9400_s2 + $0x48] sm:$0xff] %v2715_v10  ;;  %v2717_v13 = vpop.f32.mrb[3].mxu1 }
 0x26b   :  { %3232 = vst [vmem:[%s9400_s2 + $0x50] sm:$0xff] %v2717_v13 }
 0x270   :  { %v2721_v51 = vpop.f32.mrb[4].mxu1 }
 0x271   :  { %3238 = vst [vmem:[%s9400_s2 + $0x80] sm:$0xff] %v2721_v51  ;;  %v2723_v19 = vpop.f32.mrb[5].mxu1 }
 0x272   :  { %3239 = vst [vmem:[%s9400_s2 + $0x88] sm:$0xff] %v2723_v19 }
 0x274   :  { %v2727_v14 = vpop.f32.mrb[6].mxu1 }
 0x275   :  { %3245 = vst [vmem:[%s9400_s2 + $0xb8] sm:$0xff] %v2727_v14  ;;  %v2729_v43 = vpop.f32.mrb[7].mxu1 }
 0x276   :  { %3246 = vst [vmem:[%s9400_s2 + $0xc0] sm:$0xff] %v2729_v43 }
 0x278   :  { %v9014_v29 = vpop.f32.mrb[40].mxu0  ;;  %v2733_v22 = vpop.f32.mrb[8].mxu1 }
 0x279   :  { %v9016_v44 = vpop.f32.mrb[41].mxu0  ;;  %3252 = vst [vmem:[%s9400_s2 + $0xf0] sm:$0xff] %v2733_v22  ;;  %v2735_v39 = vpop.f32.mrb[9].mxu1 }
 0x27a   :  { %3253 = vst [vmem:[%s9400_s2 + $0xf8] sm:$0xff] %v2735_v39 }
 0x27c   :  { %v2739_v40 = vpop.f32.mrb[10].mxu1 }
 0x27d   :  { %v9024_v17 = vpop.f32.mrb[42].mxu0  ;;  %3259 = vst [vmem:[%s9400_s2 + $0x128] sm:$0xff] %v2739_v40  ;;  %v2741_v28 = vpop.f32.mrb[11].mxu1 }
 0x27e   :  { %v9026_v15 = vpop.f32.mrb[43].mxu0  ;;  %3260 = vst [vmem:[%s9400_s2 + $0x130] sm:$0xff] %v2741_v28 }
 0x280   :  { %v2745_v24 = vpop.f32.mrb[12].mxu1 }
 0x281   :  { %3266 = vst [vmem:[%s9400_s2 + $0x160] sm:$0xff] %v2745_v24  ;;  %v2747_v47 = vpop.f32.mrb[13].mxu1 }
 0x282   :  { %3267 = vst [vmem:[%s9400_s2 + $0x168] sm:$0xff] %v2747_v47 }
 0x284   :  { %v9034_v48 = vpop.f32.mrb[44].mxu0  ;;  %v2751_v55 = vpop.f32.mrb[14].mxu1 }
 0x285   :  { %v9036_v27 = vpop.f32.mrb[45].mxu0  ;;  %3273 = vst [vmem:[%s9400_s2 + $0x198] sm:$0xff] %v2751_v55  ;;  %v2753_v62 = vpop.f32.mrb[15].mxu1 }
 0x286   :  { %3274 = vst [vmem:[%s9400_s2 + $0x1a0] sm:$0xff] %v2753_v62 }
 0x288   :  { %v9044_v6 = vpop.f32.mrb[46].mxu0 }
 0x289   :  { %v9046_v11 = vpop.f32.mrb[47].mxu0 }
 0x28a   :  { %v2757_v54 = vpop.f32.mrb[16].mxu1 }
 0x28b   :  { %3280 = vst [vmem:[%s9400_s2 + $0x1d0] sm:$0xff] %v2757_v54  ;;  %v2759_v16 = vpop.f32.mrb[17].mxu1 }
 0x28c   :  { %v9054_v0 = vpop.f32.mrb[48].mxu0  ;;  %3281 = vst [vmem:[%s9400_s2 + $0x1d8] sm:$0xff] %v2759_v16 }
 0x28d   :  { %v9056_v20 = vpop.f32.mrb[49].mxu0 }
 0x28e   :  { %v2763_v49 = vpop.f32.mrb[18].mxu1 }
 0x28f   :  { %3287 = vst [vmem:[%s9400_s2 + $0x208] sm:$0xff] %v2763_v49  ;;  %v2765_v57 = vpop.f32.mrb[19].mxu1 }
 0x290   :  { %v9064_v3 = vpop.f32.mrb[50].mxu0  ;;  %3288 = vst [vmem:[%s9400_s2 + $0x210] sm:$0xff] %v2765_v57 }
 0x291   :  { %v9066_v45 = vpop.f32.mrb[51].mxu0 }
 0x292   :  { %v2769_v38 = vpop.f32.mrb[20].mxu1 }
 0x293   :  { %3294 = vst [vmem:[%s9400_s2 + $0x240] sm:$0xff] %v2769_v38  ;;  %v2771_v34 = vpop.f32.mrb[21].mxu1 }
 0x294   :  { %v9074_v8 = vpop.f32.mrb[52].mxu0  ;;  %3295 = vst [vmem:[%s9400_s2 + $0x248] sm:$0xff] %v2771_v34 }
 0x295   :  { %v9076_v33 = vpop.f32.mrb[53].mxu0 }
 0x296   :  { %v2775_v52 = vpop.f32.mrb[22].mxu1 }
 0x297   :  { %3301 = vst [vmem:[%s9400_s2 + $0x278] sm:$0xff] %v2775_v52  ;;  %v2777_v26 = vpop.f32.mrb[23].mxu1 }
 0x298   :  { %v9084_v42 = vpop.f32.mrb[54].mxu0  ;;  %3302 = vst [vmem:[%s9400_s2 + $0x280] sm:$0xff] %v2777_v26 }
 0x299   :  { %v9086_v50 = vpop.f32.mrb[55].mxu0 }
 0x29a   :  { %v2781_v46 = vpop.f32.mrb[24].mxu1 }
 0x29b   :  { %3308 = vst [vmem:[%s9400_s2 + $0x2b0] sm:$0xff] %v2781_v46  ;;  %v2783_v60 = vpop.f32.mrb[25].mxu1 }
 0x29c   :  { %v9094_v41 = vpop.f32.mrb[56].mxu0  ;;  %3309 = vst [vmem:[%s9400_s2 + $0x2b8] sm:$0xff] %v2783_v60 }
 0x29d   :  { %v9096_v21 = vpop.f32.mrb[57].mxu0 }
 0x29e   :  { %v2787_v31 = vpop.f32.mrb[26].mxu1 }
 0x29f   :  { %3315 = vst [vmem:[%s9400_s2 + $0x2e8] sm:$0xff] %v2787_v31  ;;  %v2789_v23 = vpop.f32.mrb[27].mxu1 }
 0x2a0   :  { %v9104_v56 = vpop.f32.mrb[58].mxu0  ;;  %3316 = vst [vmem:[%s9400_s2 + $0x2f0] sm:$0xff] %v2789_v23 }
 0x2a1   :  { %v9106_v53 = vpop.f32.mrb[59].mxu0 }
 0x2a2   :  { %v2793_v37 = vpop.f32.mrb[28].mxu1 }
 0x2a3   :  { %3322 = vst [vmem:[%s9400_s2 + $0x320] sm:$0xff] %v2793_v37  ;;  %v2795_v2 = vpop.f32.mrb[29].mxu1 }
 0x2a4   :  { %v9114_v9 = vpop.f32.mrb[60].mxu0  ;;  %3323 = vst [vmem:[%s9400_s2 + $0x328] sm:$0xff] %v2795_v2 }
 0x2a5   :  { %v9116_v32 = vpop.f32.mrb[61].mxu0 }
 0x2a6   :  { %v2799_v58 = vpop.f32.mrb[30].mxu1 }
 0x2a7   :  { %3329 = vst [vmem:[%s9400_s2 + $0x358] sm:$0xff] %v2799_v58  ;;  %v2801_v36 = vpop.f32.mrb[31].mxu1 }
 0x2a8   :  { %v9124_v30 = vpop.f32.mrb[62].mxu0  ;;  %3330 = vst [vmem:[%s9400_s2 + $0x360] sm:$0xff] %v2801_v36 }
 0x2a9   :  { %v9126_v63 = vpop.f32.mrb[63].mxu0 }
 0x2aa   :  { %v2894_v18 = vpop.f32.mrb[48].mxu1 }
 0x2ab   :  { %v4624_v59 = vadd.f32 %v2894_v18, %v9014_v29  ;;  %v2896_v7 = vpop.f32.mrb[49].mxu1 }
 0x2ac   :  { %v2548_v61 = vpop.f32.mrb[0].mxu0  ;;  %v4625_v25 = vadd.f32 %v2896_v7, %v9016_v44 }
 0x2ad   :  { %3222 = vst [vmem:[%s9400_s2] sm:$0xff] %v2548_v61  ;;  %v2550_v35 = vpop.f32.mrb[1].mxu0  ;;  %3254 = vst [vmem:[%s9400_s2 + $0x100] sm:$0xff] %v4624_v59 }
 0x2ae   :  { %3223 = vst [vmem:[%s9400_s2 + $0x8] sm:$0xff] %v2550_v35  ;;  %3255 = vst [vmem:[%s9400_s2 + $0x108] sm:$0xff] %v4625_v25  ;;  %v2900_v12 = vpop.f32.mrb[50].mxu1 }
 0x2af   :  { %v4626_v4 = vadd.f32 %v2900_v12, %v9024_v17  ;;  %v2902_v10 = vpop.f32.mrb[51].mxu1 }
 0x2b0   :  { %v2554_v1 = vpop.f32.mrb[2].mxu0  ;;  %v4627_v13 = vadd.f32 %v2902_v10, %v9026_v15 }
 0x2b1   :  { %3229 = vst [vmem:[%s9400_s2 + $0x38] sm:$0xff] %v2554_v1  ;;  %v2556_v5 = vpop.f32.mrb[3].mxu0  ;;  %3261 = vst [vmem:[%s9400_s2 + $0x138] sm:$0xff] %v4626_v4 }
 0x2b2   :  { %3230 = vst [vmem:[%s9400_s2 + $0x40] sm:$0xff] %v2556_v5  ;;  %3262 = vst [vmem:[%s9400_s2 + $0x140] sm:$0xff] %v4627_v13  ;;  %v2906_v14 = vpop.f32.mrb[52].mxu1 }
 0x2b3   :  { %v4628_v43 = vadd.f32 %v2906_v14, %v9034_v48  ;;  %v2908_v29 = vpop.f32.mrb[53].mxu1 }
 0x2b4   :  { %v2560_v51 = vpop.f32.mrb[4].mxu0  ;;  %v4629_v44 = vadd.f32 %v2908_v29, %v9036_v27 }
 0x2b5   :  { %3236 = vst [vmem:[%s9400_s2 + $0x70] sm:$0xff] %v2560_v51  ;;  %v2562_v19 = vpop.f32.mrb[5].mxu0  ;;  %3268 = vst [vmem:[%s9400_s2 + $0x170] sm:$0xff] %v4628_v43 }
 0x2b6   :  { %3237 = vst [vmem:[%s9400_s2 + $0x78] sm:$0xff] %v2562_v19  ;;  %3269 = vst [vmem:[%s9400_s2 + $0x178] sm:$0xff] %v4629_v44  ;;  %v2912_v17 = vpop.f32.mrb[54].mxu1 }
 0x2b7   :  { %v4630_v15 = vadd.f32 %v2912_v17, %v9044_v6  ;;  %v2914_v40 = vpop.f32.mrb[55].mxu1 }
 0x2b8   :  { %v2566_v22 = vpop.f32.mrb[6].mxu0  ;;  %v4631_v28 = vadd.f32 %v2914_v40, %v9046_v11 }
 0x2b9   :  { %3243 = vst [vmem:[%s9400_s2 + $0xa8] sm:$0xff] %v2566_v22  ;;  %v2568_v39 = vpop.f32.mrb[7].mxu0  ;;  %3275 = vst [vmem:[%s9400_s2 + $0x1a8] sm:$0xff] %v4630_v15 }
 0x2ba   :  { %3244 = vst [vmem:[%s9400_s2 + $0xb0] sm:$0xff] %v2568_v39  ;;  %3276 = vst [vmem:[%s9400_s2 + $0x1b0] sm:$0xff] %v4631_v28  ;;  %v2918_v24 = vpop.f32.mrb[56].mxu1 }
 0x2bb   :  { %v4632_v47 = vadd.f32 %v2918_v24, %v9054_v0  ;;  %v2920_v6 = vpop.f32.mrb[57].mxu1 }
 0x2bc   :  { %v2572_v48 = vpop.f32.mrb[8].mxu0  ;;  %v4633_v11 = vadd.f32 %v2920_v6, %v9056_v20 }
 0x2bd   :  { %3250 = vst [vmem:[%s9400_s2 + $0xe0] sm:$0xff] %v2572_v48  ;;  %v2574_v27 = vpop.f32.mrb[9].mxu0  ;;  %3282 = vst [vmem:[%s9400_s2 + $0x1e0] sm:$0xff] %v4632_v47 }
 0x2be   :  { %3251 = vst [vmem:[%s9400_s2 + $0xe8] sm:$0xff] %v2574_v27  ;;  %3283 = vst [vmem:[%s9400_s2 + $0x1e8] sm:$0xff] %v4633_v11  ;;  %v2924_v54 = vpop.f32.mrb[58].mxu1 }
 0x2bf   :  { %v4634_v0 = vadd.f32 %v2924_v54, %v9064_v3  ;;  %v2926_v20 = vpop.f32.mrb[59].mxu1 }
 0x2c0   :  { %v2578_v55 = vpop.f32.mrb[10].mxu0  ;;  %v4635_v16 = vadd.f32 %v2926_v20, %v9066_v45 }
 0x2c1   :  { %3257 = vst [vmem:[%s9400_s2 + $0x118] sm:$0xff] %v2578_v55  ;;  %v2580_v62 = vpop.f32.mrb[11].mxu0  ;;  %3289 = vst [vmem:[%s9400_s2 + $0x218] sm:$0xff] %v4634_v0 }
 0x2c2   :  { %3258 = vst [vmem:[%s9400_s2 + $0x120] sm:$0xff] %v2580_v62  ;;  %3290 = vst [vmem:[%s9400_s2 + $0x220] sm:$0xff] %v4635_v16  ;;  %v2930_v38 = vpop.f32.mrb[60].mxu1 }
 0x2c3   :  { %v4636_v3 = vadd.f32 %v2930_v38, %v9074_v8  ;;  %v2932_v45 = vpop.f32.mrb[61].mxu1 }
 0x2c4   :  { %v2584_v49 = vpop.f32.mrb[12].mxu0  ;;  %v4637_v34 = vadd.f32 %v2932_v45, %v9076_v33 }
 0x2c5   :  { %3264 = vst [vmem:[%s9400_s2 + $0x150] sm:$0xff] %v2584_v49  ;;  %v2586_v57 = vpop.f32.mrb[13].mxu0  ;;  %3296 = vst [vmem:[%s9400_s2 + $0x250] sm:$0xff] %v4636_v3 }
 0x2c6   :  { %3265 = vst [vmem:[%s9400_s2 + $0x158] sm:$0xff] %v2586_v57  ;;  %3297 = vst [vmem:[%s9400_s2 + $0x258] sm:$0xff] %v4637_v34  ;;  %v2936_v46 = vpop.f32.mrb[62].mxu1 }
 0x2c7   :  { %v4638_v8 = vadd.f32 %v2936_v46, %v9084_v42  ;;  %v2938_v33 = vpop.f32.mrb[63].mxu1 }
 0x2c8   :  { %v2590_v52 = vpop.f32.mrb[14].mxu0  ;;  %v4639_v60 = vadd.f32 %v2938_v33, %v9086_v50 }
 0x2c9   :  { %3271 = vst [vmem:[%s9400_s2 + $0x188] sm:$0xff] %v2590_v52  ;;  %v2592_v26 = vpop.f32.mrb[15].mxu0  ;;  %3303 = vst [vmem:[%s9400_s2 + $0x288] sm:$0xff] %v4638_v8 }
 0x2ca   :  { %3272 = vst [vmem:[%s9400_s2 + $0x190] sm:$0xff] %v2592_v26  ;;  %3304 = vst [vmem:[%s9400_s2 + $0x290] sm:$0xff] %v4639_v60  ;;  %v2942_v37 = vpop.f32.mrb[64].mxu1 }
 0x2cb   :  { %v4640_v42 = vadd.f32 %v2942_v37, %v9094_v41  ;;  %v2944_v50 = vpop.f32.mrb[65].mxu1 }
 0x2cc   :  { %v2596_v31 = vpop.f32.mrb[16].mxu0  ;;  %v4641_v2 = vadd.f32 %v2944_v50, %v9096_v21 }
 0x2cd   :  { %3278 = vst [vmem:[%s9400_s2 + $0x1c0] sm:$0xff] %v2596_v31  ;;  %v2598_v23 = vpop.f32.mrb[17].mxu0  ;;  %3310 = vst [vmem:[%s9400_s2 + $0x2c0] sm:$0xff] %v4640_v42 }
 0x2ce   :  { %3279 = vst [vmem:[%s9400_s2 + $0x1c8] sm:$0xff] %v2598_v23  ;;  %3311 = vst [vmem:[%s9400_s2 + $0x2c8] sm:$0xff] %v4641_v2  ;;  %v2948_v61 = vpop.f32.mrb[66].mxu1 }
 0x2cf   :  { %v4642_v41 = vadd.f32 %v2948_v61, %v9104_v56  ;;  %v2950_v21 = vpop.f32.mrb[67].mxu1 }
 0x2d0   :  { %v2602_v58 = vpop.f32.mrb[18].mxu0  ;;  %v4643_v35 = vadd.f32 %v2950_v21, %v9106_v53 }
 0x2d1   :  { %3285 = vst [vmem:[%s9400_s2 + $0x1f8] sm:$0xff] %v2602_v58  ;;  %v2604_v36 = vpop.f32.mrb[19].mxu0  ;;  %3317 = vst [vmem:[%s9400_s2 + $0x2f8] sm:$0xff] %v4642_v41 }
 0x2d2   :  { %3286 = vst [vmem:[%s9400_s2 + $0x200] sm:$0xff] %v2604_v36  ;;  %3318 = vst [vmem:[%s9400_s2 + $0x300] sm:$0xff] %v4643_v35  ;;  %v2954_v7 = vpop.f32.mrb[68].mxu1 }
 0x2d3   :  { %v4644_v56 = vadd.f32 %v2954_v7, %v9114_v9  ;;  %v2956_v53 = vpop.f32.mrb[69].mxu1 }
 0x2d4   :  { %v2608_v18 = vpop.f32.mrb[20].mxu0  ;;  %v4645_v25 = vadd.f32 %v2956_v53, %v9116_v32 }
 0x2d5   :  { %3292 = vst [vmem:[%s9400_s2 + $0x230] sm:$0xff] %v2608_v18  ;;  %v2610_v59 = vpop.f32.mrb[21].mxu0  ;;  %3324 = vst [vmem:[%s9400_s2 + $0x330] sm:$0xff] %v4644_v56 }
 0x2d6   :  { %3293 = vst [vmem:[%s9400_s2 + $0x238] sm:$0xff] %v2610_v59  ;;  %3325 = vst [vmem:[%s9400_s2 + $0x338] sm:$0xff] %v4645_v25  ;;  %v2960_v12 = vpop.f32.mrb[70].mxu1 }
 0x2d7   :  { %v4646_v9 = vadd.f32 %v2960_v12, %v9124_v30  ;;  %v2962_v32 = vpop.f32.mrb[71].mxu1 }
 0x2d8   :  { %v2614_v1 = vpop.f32.mrb[22].mxu0  ;;  %v4647_v4 = vadd.f32 %v2962_v32, %v9126_v63 }
 0x2d9   :  { %3299 = vst [vmem:[%s9400_s2 + $0x268] sm:$0xff] %v2614_v1  ;;  %v2616_v5 = vpop.f32.mrb[23].mxu0  ;;  %3331 = vst [vmem:[%s9400_s2 + $0x368] sm:$0xff] %v4646_v9 }
 0x2da   :  { %3300 = vst [vmem:[%s9400_s2 + $0x270] sm:$0xff] %v2616_v5  ;;  %3332 = vst [vmem:[%s9400_s2 + $0x370] sm:$0xff] %v4647_v4  ;;  %v4074_v51 = vpop.f32.mrb[32].mxu1 }
 0x2db   :  { %3235 = vst [vmem:[%s9400_s2 + $0x68] sm:$0xff] %v4074_v51  ;;  %v3031_v30 = vpop.f32.mrb[33].mxu1 }
 0x2dc   :  { %v2620_v10 = vpop.f32.mrb[24].mxu0  ;;  %3228 = vst [vmem:[%s9400_s2 + $0x30] sm:$0xff] %v3031_v30 }
 0x2dd   :  { %3306 = vst [vmem:[%s9400_s2 + $0x2a0] sm:$0xff] %v2620_v10  ;;  %v2622_v13 = vpop.f32.mrb[25].mxu0 }
 0x2de   :  { %3307 = vst [vmem:[%s9400_s2 + $0x2a8] sm:$0xff] %v2622_v13  ;;  %v4077_v14 = vpop.f32.mrb[34].mxu1 }
 0x2df   :  { %3249 = vst [vmem:[%s9400_s2 + $0xd8] sm:$0xff] %v4077_v14  ;;  %v3041_v43 = vpop.f32.mrb[35].mxu1 }
 0x2e0   :  { %v2626_v63 = vpop.f32.mrb[26].mxu0  ;;  %3242 = vst [vmem:[%s9400_s2 + $0xa0] sm:$0xff] %v3041_v43 }
 0x2e1   :  { %3313 = vst [vmem:[%s9400_s2 + $0x2d8] sm:$0xff] %v2626_v63  ;;  %v2628_v19 = vpop.f32.mrb[27].mxu0 }
 0x2e2   :  { %3314 = vst [vmem:[%s9400_s2 + $0x2e0] sm:$0xff] %v2628_v19  ;;  %v4080_v22 = vpop.f32.mrb[36].mxu1 }
 0x2e3   :  { %3263 = vst [vmem:[%s9400_s2 + $0x148] sm:$0xff] %v4080_v22  ;;  %v3051_v39 = vpop.f32.mrb[37].mxu1 }
 0x2e4   :  { %v2632_v29 = vpop.f32.mrb[28].mxu0  ;;  %3256 = vst [vmem:[%s9400_s2 + $0x110] sm:$0xff] %v3051_v39 }
 0x2e5   :  { %3320 = vst [vmem:[%s9400_s2 + $0x310] sm:$0xff] %v2632_v29  ;;  %v2634_v44 = vpop.f32.mrb[29].mxu0 }
 0x2e6   :  { %3321 = vst [vmem:[%s9400_s2 + $0x318] sm:$0xff] %v2634_v44  ;;  %v4083_v40 = vpop.f32.mrb[38].mxu1 }
 0x2e7   :  { %3277 = vst [vmem:[%s9400_s2 + $0x1b8] sm:$0xff] %v4083_v40  ;;  %v3061_v28 = vpop.f32.mrb[39].mxu1 }
 0x2e8   :  { %v2638_v17 = vpop.f32.mrb[30].mxu0  ;;  %3270 = vst [vmem:[%s9400_s2 + $0x180] sm:$0xff] %v3061_v28 }
 0x2e9   :  { %3327 = vst [vmem:[%s9400_s2 + $0x348] sm:$0xff] %v2638_v17  ;;  %v2640_v15 = vpop.f32.mrb[31].mxu0 }
 0x2ea   :  { %3328 = vst [vmem:[%s9400_s2 + $0x350] sm:$0xff] %v2640_v15  ;;  %v4086_v24 = vpop.f32.mrb[40].mxu1 }
 0x2eb   :  { %3291 = vst [vmem:[%s9400_s2 + $0x228] sm:$0xff] %v4086_v24  ;;  %v3071_v47 = vpop.f32.mrb[41].mxu1 }
 0x2ec   :  { %v2870_v48 = vpop.f32.mrb[32].mxu0  ;;  %3284 = vst [vmem:[%s9400_s2 + $0x1f0] sm:$0xff] %v3071_v47 }
 0x2ed   :  { %3226 = vst [vmem:[%s9400_s2 + $0x20] sm:$0xff] %v2870_v48  ;;  %v2872_v27 = vpop.f32.mrb[33].mxu0 }
 0x2ee   :  { %3227 = vst [vmem:[%s9400_s2 + $0x28] sm:$0xff] %v2872_v27  ;;  %v4089_v55 = vpop.f32.mrb[42].mxu1 }
 0x2ef   :  { %3305 = vst [vmem:[%s9400_s2 + $0x298] sm:$0xff] %v4089_v55  ;;  %v3081_v62 = vpop.f32.mrb[43].mxu1 }
 0x2f0   :  { %v2876_v6 = vpop.f32.mrb[34].mxu0  ;;  %3298 = vst [vmem:[%s9400_s2 + $0x260] sm:$0xff] %v3081_v62 }
 0x2f1   :  { %3233 = vst [vmem:[%s9400_s2 + $0x58] sm:$0xff] %v2876_v6  ;;  %v2878_v11 = vpop.f32.mrb[35].mxu0 }
 0x2f2   :  { %3234 = vst [vmem:[%s9400_s2 + $0x60] sm:$0xff] %v2878_v11  ;;  %v4092_v20 = vpop.f32.mrb[44].mxu1 }
 0x2f3   :  { %3319 = vst [vmem:[%s9400_s2 + $0x308] sm:$0xff] %v4092_v20  ;;  %v3091_v16 = vpop.f32.mrb[45].mxu1 }
 0x2f4   :  { %v2882_v54 = vpop.f32.mrb[36].mxu0  ;;  %3312 = vst [vmem:[%s9400_s2 + $0x2d0] sm:$0xff] %v3091_v16 }
 0x2f5   :  { %3240 = vst [vmem:[%s9400_s2 + $0x90] sm:$0xff] %v2882_v54  ;;  %v2884_v0 = vpop.f32.mrb[37].mxu0 }
 0x2f6   :  { %3241 = vst [vmem:[%s9400_s2 + $0x98] sm:$0xff] %v2884_v0  ;;  %v4095_v38 = vpop.f32.mrb[46].mxu1 }
 0x2f7   :  { %3333 = vst [vmem:[%s9400_s2 + $0x378] sm:$0xff] %v4095_v38  ;;  %v3101_v3 = vpop.f32.mrb[47].mxu1 }
 0x2f8   :  { %v2888_v49 = vpop.f32.mrb[38].mxu0  ;;  %3326 = vst [vmem:[%s9400_s2 + $0x340] sm:$0xff] %v3101_v3 }
 0x2f9   :  { %3247 = vst [vmem:[%s9400_s2 + $0xc8] sm:$0xff] %v2888_v49  ;;  %v2890_v57 = vpop.f32.mrb[39].mxu0 }
 0x2fa   :  { %3248 = vst [vmem:[%s9400_s2 + $0xd0] sm:$0xff] %v2890_v57 }

</bundles_post_ra>
